<compile_context>
chip_gen: v7x
topology: tpu7x:2x2x1
jax: 0.10.0
libtpu: 0.0.40
codegen_flags: <defaults>
</compile_context>

<pallas_src>
import functools

import jax
import jax.numpy as jnp
from jax.experimental import pallas as pl
from jax.experimental.pallas import tpu as pltpu

EPS = 1e-5                          # nn.BatchNorm2d default eps
# Scoped VMEM: generous on v5e/v6e (128 MiB physical) while staying under the
# v7x per-TensorCore 64 MiB.  Per-step footprints here are <~10 MiB anyway.
_VMEM_LIMIT = 48 * 1024 * 1024
# Lane-tile target.  Sweep per generation: 2048-4096 on v5e/v6e; on v7x keep
# it small enough that n_tiles >= 2 so the "parallel" axis feeds both cores.
P_TILE_DEFAULT = 2048


def _plan_p(P, target):
    """Pick (P_pad, pt): padded lane extent and lane tile, both multiples of
    128, with pt <= target so an oversized full-P block can never blow VMEM."""
    target = max(128, (target // 128) * 128)
    P128 = ((P + 127) // 128) * 128
    if P128 <= target:
        return P128, P128
    t = target
    while t >= 128:
        if P128 % t == 0:
            return P128, t
        t -= 128
    return P128, 128   # unreachable: 128 always divides P128


def _pad_cols(a, P_pad):
    P = a.shape[1]
    if P_pad == P:
        return a
    return jnp.pad(a, ((0, 0), (0, P_pad - P)))


# ------------------------------ Pallas kernels ------------------------------ #

def _gemm_stats_kernel(w_ref, p_ref, y_ref, psum_ref, pssq_ref):
    """One P-tile of (Cout, K) @ (K, P): bf16 MXU operands, f32 accumulate.
    Also emits per-channel partial sum / sum-of-squares (lane-axis reductions)
    feeding the global train-mode BatchNorm batch statistics.  Zero-padded
    lane columns produce exactly 0 and therefore do not bias the stats."""
    y = jnp.dot(w_ref[...], p_ref[...], preferred_element_type=jnp.float32)
    y_ref[...] = y.astype(y_ref.dtype)                 # bf16 store (half traffic)
    psum_ref[0] = jnp.sum(y, axis=1, keepdims=True)
    pssq_ref[0] = jnp.sum(y * y, axis=1, keepdims=True)


def _bn_relu_kernel(y_ref, sc_ref, sh_ref, o_ref):
    y = y_ref[...].astype(jnp.float32)
    o_ref[...] = jnp.maximum(y * sc_ref[...] + sh_ref[...], 0.0).astype(o_ref.dtype)


def _bn_relu_min_kernel(y_ref, sc_ref, sh_ref, s_ref, o_ref):
    y = y_ref[...].astype(jnp.float32)
    o = jnp.maximum(y * sc_ref[...] + sh_ref[...], 0.0)
    o_ref[...] = jnp.minimum(o, s_ref[...].astype(jnp.float32)).astype(o_ref.dtype)


# --------------------------- Pallas call wrappers --------------------------- #

def _conv_gemm_stats(w2, patches, pt):
    """(Cp, K) @ (K, P_pad) -> bf16 conv output + per-tile per-channel stats."""
    Cp, K = w2.shape
    P_pad = patches.shape[1]
    n_tiles = P_pad // pt
    return pl.pallas_call(
        _gemm_stats_kernel,
        out_shape=(jax.ShapeDtypeStruct((Cp, P_pad), jnp.bfloat16),
                   jax.ShapeDtypeStruct((n_tiles, Cp, 1), jnp.float32),
                   jax.ShapeDtypeStruct((n_tiles, Cp, 1), jnp.float32)),
        grid=(n_tiles,),
        in_specs=[pl.BlockSpec((Cp, K), lambda i: (0, 0)),
                  pl.BlockSpec((K, pt), lambda i: (0, i))],
        out_specs=(pl.BlockSpec((Cp, pt), lambda i: (0, i)),
                   pl.BlockSpec((1, Cp, 1), lambda i: (i, 0, 0)),
                   pl.BlockSpec((1, Cp, 1), lambda i: (i, 0, 0))),
        compiler_params=pltpu.CompilerParams(
            dimension_semantics=("parallel",),
            vmem_limit_bytes=_VMEM_LIMIT),
    )(w2, patches)


def _bn_scale_shift(sums, ssqs, gamma, beta, count):
    """Fold train-mode batch statistics + affine params into per-channel
    scale/shift (tiny XLA-side computation, removes per-tile rsqrt work)."""
    inv = 1.0 / count
    mean = sums * inv
    # NOTE: E[y^2]-E[y]^2 in f32; clamped to avoid tiny negative cancellation.
    var = jnp.maximum(ssqs * inv - mean * mean, 0.0)
    g = gamma.reshape(-1, 1).astype(jnp.float32)
    b = beta.reshape(-1, 1).astype(jnp.float32)
    scale = g * jax.lax.rsqrt(var + EPS)
    shift = b - mean * scale
    return scale, shift


def _bn_relu_apply(y, scale, shift, skip, pt):
    """Elementwise BatchNorm (precomputed scale/shift) + ReLU [+ fused min]."""
    Cp, P_pad = y.shape
    n_tiles = P_pad // pt
    vec = pl.BlockSpec((Cp, 1), lambda i: (0, 0))
    big = pl.BlockSpec((Cp, pt), lambda i: (0, i))
    in_specs = [big, vec, vec]
    args = [y, scale, shift]
    kernel = _bn_relu_kernel
    if skip is not None:
        kernel = _bn_relu_min_kernel
        in_specs.append(big)
        args.append(skip)
    return pl.pallas_call(
        kernel,
        out_shape=jax.ShapeDtypeStruct((Cp, P_pad), jnp.bfloat16),
        grid=(n_tiles,),
        in_specs=in_specs,
        out_specs=big,
        compiler_params=pltpu.CompilerParams(
            dimension_semantics=("parallel",),
            vmem_limit_bytes=_VMEM_LIMIT),
    )(*args)


# ---------------------------- layer-level wrappers --------------------------- #
# Activations are kept channels-major (C, N, H, W) and bf16 between layers, so
# the (Cout, P) GEMM output needs no transpose and inter-layer traffic is 2B/elem.

def conv_bn_relu(x, w, b, gamma, beta, *, stride, pad, skip=None,
                 p_tile=P_TILE_DEFAULT):
    """Conv2d(w: (Cout,Cin,k,k), stride, pad) -> BatchNorm(train) -> ReLU
    [-> min(., skip)].  x: (Cin, N, H, W)."""
    del b  # per-channel conv bias cancels exactly under train-mode BatchNorm
    Cin, N, H, W = x.shape
    Cout, _, k, _ = w.shape
    Ho = (H + 2 * pad - k) // stride + 1
    Wo = (W + 2 * pad - k) // stride + 1
    P = N * Ho * Wo
    x = x.astype(jnp.bfloat16)
    xp = jnp.pad(x, ((0, 0), (0, 0), (pad, pad), (pad, pad)))
    # im2col in channels-major layout, materialized directly in bf16.
    # TODO(synk): patches are still k*k-duplicated in HBM; an in-kernel direct
    # conv (tap loop over a halo'd VMEM tile) would remove that remaining traffic.
    cols = [xp[:, :, di:di + stride * Ho:stride, dj:dj + stride * Wo:stride]
            for di in range(k) for dj in range(k)]
    patches = jnp.stack(cols, axis=1).reshape(Cin * k * k, P)
    P_pad, pt = _plan_p(P, p_tile)
    patches = _pad_cols(patches, P_pad)
    w2 = w.reshape(Cout, Cin * k * k).astype(jnp.bfloat16)
    y, psum, pssq = _conv_gemm_stats(w2, patches, pt)
    scale, shift = _bn_scale_shift(jnp.sum(psum, axis=0), jnp.sum(pssq, axis=0),
                                   gamma, beta, P)
    skip2 = None if skip is None else _pad_cols(
        skip.astype(jnp.bfloat16).reshape(Cout, P), P_pad)
    out = _bn_relu_apply(y, scale, shift, skip2, pt)
    return out[:, :P].reshape(Cout, N, Ho, Wo)


def convT_bn_relu(x, w, b, gamma, beta, *, skip=None, p_tile=P_TILE_DEFAULT):
    """ConvTranspose2d(w: (Cin,Cout,3,3), stride=2, pad=1, out_pad=1)
    -> BatchNorm(train) -> ReLU [-> min(., skip)], via sub-pixel decomposition.
    x: (Cin, N, H, W) -> output (Cout, N, 2H, 2W)."""
    del b  # cancels under train-mode BatchNorm (same per output channel in all phases)
    Cin, N, H, W = x.shape
    Cout, k = w.shape[1], w.shape[2]
    assert k == 3, "sub-pixel lowering specialized for kernel_size=3, stride=2"
    Ho, Wo = 2 * H, 2 * W
    P_in, P_out = N * H * W, N * Ho * Wo
    x = x.astype(jnp.bfloat16)
    # Four shifted (undilated) views of x; zero pad one row/col on bottom/right.
    xe = jnp.pad(x, ((0, 0), (0, 0), (0, 1), (0, 1)))
    shifts = [xe[:, :, a:a + H, c:c + W] for a in range(2) for c in range(2)]
    patches = jnp.concatenate(shifts, axis=0).reshape(4 * Cin, P_in)   # bf16
    # Block-sparse phase weight matrix: rows = (phase r,s; cout),
    # cols = (shift a,c; cin).  Output phase (r,s) at (m,n) reads x[m+a, n+c]
    # with original tap (ky, kx) = (r+1-2a, s+1-2c) when that tap is in range.
    w_sub = jnp.zeros((4 * Cout, 4 * Cin), jnp.float32)
    for r in range(2):
        for s in range(2):
            for a in range(2):
                for c in range(2):
                    ky, kx = r + 1 - 2 * a, s + 1 - 2 * c
                    if 0 <= ky < k and 0 <= kx < k:
                        w_sub = w_sub.at[(2 * r + s) * Cout:(2 * r + s + 1) * Cout,
                                         (2 * a + c) * Cin:(2 * a + c + 1) * Cin
                                         ].set(w[:, :, ky, kx].T)
    Pg_pad, ptg = _plan_p(P_in, p_tile)
    patches = _pad_cols(patches, Pg_pad)
    y4, p4, q4 = _conv_gemm_stats(w_sub.astype(jnp.bfloat16), patches, ptg)
    # Per-output-channel stats = sum over the 4 phases (each phase covers P_in
    # output positions, so the total count is P_out).
    sums = jnp.sum(p4, axis=0).reshape(4, Cout, 1).sum(axis=0)
    ssqs = jnp.sum(q4, axis=0).reshape(4, Cout, 1).sum(axis=0)
    scale, shift = _bn_scale_shift(sums, ssqs, gamma, beta, P_out)
    # Interleave the 4 phases into (Cout, N, 2H, 2W) — on the bf16 tensor.
    y = (y4[:, :P_in].reshape(2, 2, Cout, N, H, W)
           .transpose(2, 3, 4, 0, 5, 1)            # (Cout, N, H, r, W, s)
           .reshape(Cout, P_out))
    Pb_pad, ptb = _plan_p(P_out, p_tile)
    y = _pad_cols(y, Pb_pad)
    skip2 = None if skip is None else _pad_cols(
        skip.astype(jnp.bfloat16).reshape(Cout, P_out), Pb_pad)
    out = _bn_relu_apply(y, scale, shift, skip2, ptb)
    return out[:, :P_out].reshape(Cout, N, Ho, Wo)


# ------------------------------- LearningConv -------------------------------- #

def learning_block1(p, x, *, p_tile):
    x1 = conv_bn_relu(x, **p["conv1"], stride=2, pad=1, p_tile=p_tile)
    x2 = conv_bn_relu(x1, **p["conv2"], stride=2, pad=1, p_tile=p_tile)
    x3 = conv_bn_relu(x2, **p["conv3"], stride=2, pad=1, p_tile=p_tile)
    x2 = convT_bn_relu(x3, **p["convT3"], skip=x2, p_tile=p_tile)   # min fused
    x1 = convT_bn_relu(x2, **p["convT2"], skip=x1, p_tile=p_tile)   # min fused
    return convT_bn_relu(x1, **p["convT1"], skip=x, p_tile=p_tile)  # min fused


def learning_conv(params, img, *, p_tile=P_TILE_DEFAULT):
    """img: (N, C, H, W) f32 -> (N, out_ch, H, W) f32; matches LearningConv.forward."""
    x = jnp.transpose(img.astype(jnp.bfloat16), (1, 0, 2, 3))   # NCHW -> CNHW once
    x = conv_bn_relu(x, **params["linear1"], stride=1, pad=1, p_tile=p_tile)
    x = learning_block1(params["block2"], x, p_tile=p_tile)
    x = learning_block1(params["block3"], x, p_tile=p_tile)
    x = learning_block1(params["block4"], x, p_tile=p_tile)
    x = conv_bn_relu(x, **params["linear6"], stride=1, pad=1, p_tile=p_tile)
    return jnp.transpose(x, (1, 0, 2, 3)).astype(jnp.float32)   # CNHW -> NCHW once


# --------------------------------- params ----------------------------------- #

def _init_conv(key, cin, cout, transpose=False):
    k1, k2, k3, k4 = jax.random.split(key, 4)
    wshape = (cin, cout, 3, 3) if transpose else (cout, cin, 3, 3)
    return dict(
        w=0.1 * jax.random.normal(k1, wshape, jnp.float32),
        b=0.05 * jax.random.normal(k2, (cout,), jnp.float32),
        gamma=1.0 + 0.1 * jax.random.normal(k3, (cout,), jnp.float32),
        beta=0.1 * jax.random.normal(k4, (cout,), jnp.float32),
    )


def _init_block(key, cin, cout):
    ks = jax.random.split(key, 6)
    return dict(
        conv1=_init_conv(ks[0], cin, cout),
        conv2=_init_conv(ks[1], cout, cout * 2),
        conv3=_init_conv(ks[2], cout * 2, cout * 4),
        convT3=_init_conv(ks[3], cout * 4, cout * 2, transpose=True),
        convT2=_init_conv(ks[4], cout * 2, cout, transpose=True),
        convT1=_init_conv(ks[5], cout, cin, transpose=True),
    )


if __name__ == "__main__":
    in_ch, out_ch = 4, 4
    key = jax.random.PRNGKey(0)
    ks = jax.random.split(key, 6)
    params = dict(
        linear1=_init_conv(ks[0], in_ch, 8),
        block2=_init_block(ks[1], 8, 16),
        block3=_init_block(ks[2], 8, 16),
        block4=_init_block(ks[3], 8, 16),
        linear6=_init_conv(ks[4], 8, out_ch),
    )
    img = jax.random.normal(ks[5], (2, in_ch, 16, 16), jnp.float32)

    # Small p_tile so the multi-tile pipelined path is exercised at toy shapes;
    # at production sizes leave the default (2048) or sweep 2048-4096.
    fwd = jax.jit(functools.partial(learning_conv, p_tile=128))
    out = fwd(params, img)
    jax.block_until_ready(out)
    assert out.shape == (2, out_ch, 16, 16) and out.dtype == jnp.float32
    assert bool(jnp.all(jnp.isfinite(out)))
    print("KERNEL_OK")
</pallas_src>

<mosaic_0001>
module attributes {stable_mosaic.version = 11 : i64} {
  func.func @_gemm_stats_kernel(%arg0: i32, %arg1: memref<8x36xbf16, #tpu.memory_space<vmem>>, %arg2: memref<36x128xbf16, #tpu.memory_space<vmem>>, %arg3: memref<8x128xbf16, #tpu.memory_space<vmem>>, %arg4: memref<1x8x1xf32, #tpu.memory_space<vmem>>, %arg5: memref<1x8x1xf32, #tpu.memory_space<vmem>>) attributes {dimension_semantics = [#tpu.dimension_semantics<parallel>], iteration_bounds = array<i64: 4>, scalar_prefetch = 0 : i64, scratch_operands = 0 : i64, tpu.core_type = #tpu.core_type<tc>, window_params = [{pipeline_mode = #tpu.pipeline_mode<synchronous>, transform_indices = @transform_0, window_bounds = array<i64: 8, 36>}, {transform_indices = @transform_1, window_bounds = array<i64: 36, 128>}, {transform_indices = @transform_2, window_bounds = array<i64: 8, 128>}, {transform_indices = @transform_3, window_bounds = array<i64: 1, 8, 1>}, {transform_indices = @transform_4, window_bounds = array<i64: 1, 8, 1>}]} {
    %c0 = arith.constant 0 : index
    %c0_0 = arith.constant 0 : index
    %0 = vector.load %arg1[%c0, %c0_0] : memref<8x36xbf16, #tpu.memory_space<vmem>>, vector<8x36xbf16>
    %c0_1 = arith.constant 0 : index
    %c0_2 = arith.constant 0 : index
    %1 = vector.load %arg2[%c0_1, %c0_2] : memref<36x128xbf16, #tpu.memory_space<vmem>>, vector<36x128xbf16>
    %cst = arith.constant dense<0.000000e+00> : vector<8x128xf32>
    %2 = tpu.matmul %0, %1, %cst {dimension_numbers = #tpu.dot_dimension_numbers<[1], [0], [0], [1], [0, 0, 1, 1], [], []>} : vector<8x36xbf16>, vector<36x128xbf16>, vector<8x128xf32> -> vector<8x128xf32>
    %3 = arith.truncf %2 : vector<8x128xf32> to vector<8x128xbf16>
    %c0_3 = arith.constant 0 : index
    %c0_4 = arith.constant 0 : index
    %4 = vector.load %arg3[%c0_3, %c0_4] : memref<8x128xbf16, #tpu.memory_space<vmem>>, vector<8x128xbf16>
    tpu.vector_store %arg3[%c0_3, %c0_4], %3 {strides = array<i32>} : memref<8x128xbf16, #tpu.memory_space<vmem>>, vector<8x128xbf16>,
    %cst_5 = arith.constant dense<0.000000e+00> : vector<8xf32>
    %5 = vector.multi_reduction <add>, %2, %cst_5 [1] : vector<8x128xf32> to vector<8xf32>
    %6 = vector.shape_cast %5 : vector<8xf32> to vector<8x1xf32>
    %c0_6 = arith.constant 0 : index
    %c0_7 = arith.constant 0 : index
    %c0_8 = arith.constant 0 : index
    %7 = vector.load %arg4[%c0_6, %c0_7, %c0_8] : memref<1x8x1xf32, #tpu.memory_space<vmem>>, vector<1x8x1xf32>
    %8 = vector.shape_cast %7 : vector<1x8x1xf32> to vector<8x1xf32>
    %9 = vector.shape_cast %6 : vector<8x1xf32> to vector<1x8x1xf32>
    tpu.vector_store %arg4[%c0_6, %c0_7, %c0_8], %9 {strides = array<i32>} : memref<1x8x1xf32, #tpu.memory_space<vmem>>, vector<1x8x1xf32>,
    %10 = arith.mulf %2, %2 : vector<8x128xf32>
    %cst_9 = arith.constant dense<0.000000e+00> : vector<8xf32>
    %11 = vector.multi_reduction <add>, %10, %cst_9 [1] : vector<8x128xf32> to vector<8xf32>
    %12 = vector.shape_cast %11 : vector<8xf32> to vector<8x1xf32>
    %c0_10 = arith.constant 0 : index
    %c0_11 = arith.constant 0 : index
    %c0_12 = arith.constant 0 : index
    %13 = vector.load %arg5[%c0_10, %c0_11, %c0_12] : memref<1x8x1xf32, #tpu.memory_space<vmem>>, vector<1x8x1xf32>
    %14 = vector.shape_cast %13 : vector<1x8x1xf32> to vector<8x1xf32>
    %15 = vector.shape_cast %12 : vector<8x1xf32> to vector<1x8x1xf32>
    tpu.vector_store %arg5[%c0_10, %c0_11, %c0_12], %15 {strides = array<i32>} : memref<1x8x1xf32, #tpu.memory_space<vmem>>, vector<1x8x1xf32>,
    return
  }
  func.func @transform_0(%arg0: i32) -> (i32, i32) {
    %c0_i32 = arith.constant 0 : i32
    %c0_i32_0 = arith.constant 0 : i32
    %c0_i32_1 = arith.constant 0 : i32
    return %c0_i32, %c0_i32_0 : i32, i32
  }
  func.func @transform_1(%arg0: i32) -> (i32, i32) {
    %c0_i32 = arith.constant 0 : i32
    %c0_i32_0 = arith.constant 0 : i32
    return %c0_i32, %arg0 : i32, i32
  }
  func.func @transform_2(%arg0: i32) -> (i32, i32) {
    %c0_i32 = arith.constant 0 : i32
    %c0_i32_0 = arith.constant 0 : i32
    return %c0_i32, %arg0 : i32, i32
  }
  func.func @transform_3(%arg0: i32) -> (i32, i32, i32) {
    %c0_i32 = arith.constant 0 : i32
    %c0_i32_0 = arith.constant 0 : i32
    %c0_i32_1 = arith.constant 0 : i32
    return %arg0, %c0_i32, %c0_i32_0 : i32, i32, i32
  }
  func.func @transform_4(%arg0: i32) -> (i32, i32, i32) {
    %c0_i32 = arith.constant 0 : i32
    %c0_i32_0 = arith.constant 0 : i32
    %c0_i32_1 = arith.constant 0 : i32
    return %arg0, %c0_i32, %c0_i32_0 : i32, i32, i32
  }
}

module attributes {stable_mosaic.version = 11 : i64} {
  func.func @_bn_relu_kernel(%arg0: i32, %arg1: memref<8x128xbf16, #tpu.memory_space<vmem>>, %arg2: memref<8x1xf32, #tpu.memory_space<vmem>>, %arg3: memref<8x1xf32, #tpu.memory_space<vmem>>, %arg4: memref<8x128xbf16, #tpu.memory_space<vmem>>) attributes {dimension_semantics = [#tpu.dimension_semantics<parallel>], iteration_bounds = array<i64: 4>, scalar_prefetch = 0 : i64, scratch_operands = 0 : i64, tpu.core_type = #tpu.core_type<tc>, window_params = [{transform_indices = @transform_0, window_bounds = array<i64: 8, 128>}, {pipeline_mode = #tpu.pipeline_mode<synchronous>, transform_indices = @transform_1, window_bounds = array<i64: 8, 1>}, {pipeline_mode = #tpu.pipeline_mode<synchronous>, transform_indices = @transform_2, window_bounds = array<i64: 8, 1>}, {transform_indices = @transform_3, window_bounds = array<i64: 8, 128>}]} {
    %c0 = arith.constant 0 : index
    %c0_0 = arith.constant 0 : index
    %0 = vector.load %arg1[%c0, %c0_0] : memref<8x128xbf16, #tpu.memory_space<vmem>>, vector<8x128xbf16>
    %1 = arith.extf %0 : vector<8x128xbf16> to vector<8x128xf32>
    %c0_1 = arith.constant 0 : index
    %c0_2 = arith.constant 0 : index
    %2 = vector.load %arg2[%c0_1, %c0_2] : memref<8x1xf32, #tpu.memory_space<vmem>>, vector<8x1xf32>
    %3 = vector.broadcast %2 : vector<8x1xf32> to vector<8x128xf32>
    %4 = arith.mulf %1, %3 : vector<8x128xf32>
    %c0_3 = arith.constant 0 : index
    %c0_4 = arith.constant 0 : index
    %5 = vector.load %arg3[%c0_3, %c0_4] : memref<8x1xf32, #tpu.memory_space<vmem>>, vector<8x1xf32>
    %6 = vector.broadcast %5 : vector<8x1xf32> to vector<8x128xf32>
    %7 = arith.addf %4, %6 : vector<8x128xf32>
    %cst = arith.constant 0.000000e+00 : f32
    %8 = vector.broadcast %cst : f32 to vector<8x128xf32>
    %9 = arith.maximumf %7, %8 : vector<8x128xf32>
    %10 = arith.truncf %9 : vector<8x128xf32> to vector<8x128xbf16>
    %c0_5 = arith.constant 0 : index
    %c0_6 = arith.constant 0 : index
    %11 = vector.load %arg4[%c0_5, %c0_6] : memref<8x128xbf16, #tpu.memory_space<vmem>>, vector<8x128xbf16>
    tpu.vector_store %arg4[%c0_5, %c0_6], %10 {strides = array<i32>} : memref<8x128xbf16, #tpu.memory_space<vmem>>, vector<8x128xbf16>,
    return
  }
  func.func @transform_0(%arg0: i32) -> (i32, i32) {
    %c0_i32 = arith.constant 0 : i32
    %c0_i32_0 = arith.constant 0 : i32
    return %c0_i32, %arg0 : i32, i32
  }
  func.func @transform_1(%arg0: i32) -> (i32, i32) {
    %c0_i32 = arith.constant 0 : i32
    %c0_i32_0 = arith.constant 0 : i32
    %c0_i32_1 = arith.constant 0 : i32
    return %c0_i32, %c0_i32_0 : i32, i32
  }
  func.func @transform_2(%arg0: i32) -> (i32, i32) {
    %c0_i32 = arith.constant 0 : i32
    %c0_i32_0 = arith.constant 0 : i32
    %c0_i32_1 = arith.constant 0 : i32
    return %c0_i32, %c0_i32_0 : i32, i32
  }
  func.func @transform_3(%arg0: i32) -> (i32, i32) {
    %c0_i32 = arith.constant 0 : i32
    %c0_i32_0 = arith.constant 0 : i32
    return %c0_i32, %arg0 : i32, i32
  }
}

module attributes {stable_mosaic.version = 11 : i64} {
  func.func @_gemm_stats_kernel(%arg0: i32, %arg1: memref<16x72xbf16, #tpu.memory_space<vmem>>, %arg2: memref<72x128xbf16, #tpu.memory_space<vmem>>, %arg3: memref<16x128xbf16, #tpu.memory_space<vmem>>, %arg4: memref<1x16x1xf32, #tpu.memory_space<vmem>>, %arg5: memref<1x16x1xf32, #tpu.memory_space<vmem>>) attributes {dimension_semantics = [#tpu.dimension_semantics<parallel>], iteration_bounds = array<i64: 1>, scalar_prefetch = 0 : i64, scratch_operands = 0 : i64, tpu.core_type = #tpu.core_type<tc>, window_params = [{pipeline_mode = #tpu.pipeline_mode<synchronous>, transform_indices = @transform_0, window_bounds = array<i64: 16, 72>}, {transform_indices = @transform_1, window_bounds = array<i64: 72, 128>}, {transform_indices = @transform_2, window_bounds = array<i64: 16, 128>}, {transform_indices = @transform_3, window_bounds = array<i64: 1, 16, 1>}, {transform_indices = @transform_4, window_bounds = array<i64: 1, 16, 1>}]} {
    %c0 = arith.constant 0 : index
    %c0_0 = arith.constant 0 : index
    %0 = vector.load %arg1[%c0, %c0_0] : memref<16x72xbf16, #tpu.memory_space<vmem>>, vector<16x72xbf16>
    %c0_1 = arith.constant 0 : index
    %c0_2 = arith.constant 0 : index
    %1 = vector.load %arg2[%c0_1, %c0_2] : memref<72x128xbf16, #tpu.memory_space<vmem>>, vector<72x128xbf16>
    %cst = arith.constant dense<0.000000e+00> : vector<16x128xf32>
    %2 = tpu.matmul %0, %1, %cst {dimension_numbers = #tpu.dot_dimension_numbers<[1], [0], [0], [1], [0, 0, 1, 1], [], []>} : vector<16x72xbf16>, vector<72x128xbf16>, vector<16x128xf32> -> vector<16x128xf32>
    %3 = arith.truncf %2 : vector<16x128xf32> to vector<16x128xbf16>
    %c0_3 = arith.constant 0 : index
    %c0_4 = arith.constant 0 : index
    %4 = vector.load %arg3[%c0_3, %c0_4] : memref<16x128xbf16, #tpu.memory_space<vmem>>, vector<16x128xbf16>
    tpu.vector_store %arg3[%c0_3, %c0_4], %3 {strides = array<i32>} : memref<16x128xbf16, #tpu.memory_space<vmem>>, vector<16x128xbf16>,
    %cst_5 = arith.constant dense<0.000000e+00> : vector<16xf32>
    %5 = vector.multi_reduction <add>, %2, %cst_5 [1] : vector<16x128xf32> to vector<16xf32>
    %6 = vector.shape_cast %5 : vector<16xf32> to vector<16x1xf32>
    %c0_6 = arith.constant 0 : index
    %c0_7 = arith.constant 0 : index
    %c0_8 = arith.constant 0 : index
    %7 = vector.load %arg4[%c0_6, %c0_7, %c0_8] : memref<1x16x1xf32, #tpu.memory_space<vmem>>, vector<1x16x1xf32>
    %8 = vector.shape_cast %7 : vector<1x16x1xf32> to vector<16x1xf32>
    %9 = vector.shape_cast %6 : vector<16x1xf32> to vector<1x16x1xf32>
    tpu.vector_store %arg4[%c0_6, %c0_7, %c0_8], %9 {strides = array<i32>} : memref<1x16x1xf32, #tpu.memory_space<vmem>>, vector<1x16x1xf32>,
    %10 = arith.mulf %2, %2 : vector<16x128xf32>
    %cst_9 = arith.constant dense<0.000000e+00> : vector<16xf32>
    %11 = vector.multi_reduction <add>, %10, %cst_9 [1] : vector<16x128xf32> to vector<16xf32>
    %12 = vector.shape_cast %11 : vector<16xf32> to vector<16x1xf32>
    %c0_10 = arith.constant 0 : index
    %c0_11 = arith.constant 0 : index
    %c0_12 = arith.constant 0 : index
    %13 = vector.load %arg5[%c0_10, %c0_11, %c0_12] : memref<1x16x1xf32, #tpu.memory_space<vmem>>, vector<1x16x1xf32>
    %14 = vector.shape_cast %13 : vector<1x16x1xf32> to vector<16x1xf32>
    %15 = vector.shape_cast %12 : vector<16x1xf32> to vector<1x16x1xf32>
    tpu.vector_store %arg5[%c0_10, %c0_11, %c0_12], %15 {strides = array<i32>} : memref<1x16x1xf32, #tpu.memory_space<vmem>>, vector<1x16x1xf32>,
    return
  }
  func.func @transform_0(%arg0: i32) -> (i32, i32) {
    %c0_i32 = arith.constant 0 : i32
    %c0_i32_0 = arith.constant 0 : i32
    %c0_i32_1 = arith.constant 0 : i32
    return %c0_i32, %c0_i32_0 : i32, i32
  }
  func.func @transform_1(%arg0: i32) -> (i32, i32) {
    %c0_i32 = arith.constant 0 : i32
    %c0_i32_0 = arith.constant 0 : i32
    return %c0_i32, %arg0 : i32, i32
  }
  func.func @transform_2(%arg0: i32) -> (i32, i32) {
    %c0_i32 = arith.constant 0 : i32
    %c0_i32_0 = arith.constant 0 : i32
    return %c0_i32, %arg0 : i32, i32
  }
  func.func @transform_3(%arg0: i32) -> (i32, i32, i32) {
    %c0_i32 = arith.constant 0 : i32
    %c0_i32_0 = arith.constant 0 : i32
    %c0_i32_1 = arith.constant 0 : i32
    return %arg0, %c0_i32, %c0_i32_0 : i32, i32, i32
  }
  func.func @transform_4(%arg0: i32) -> (i32, i32, i32) {
    %c0_i32 = arith.constant 0 : i32
    %c0_i32_0 = arith.constant 0 : i32
    %c0_i32_1 = arith.constant 0 : i32
    return %arg0, %c0_i32, %c0_i32_0 : i32, i32, i32
  }
}

module attributes {stable_mosaic.version = 11 : i64} {
  func.func @_bn_relu_kernel(%arg0: i32, %arg1: memref<16x128xbf16, #tpu.memory_space<vmem>>, %arg2: memref<16x1xf32, #tpu.memory_space<vmem>>, %arg3: memref<16x1xf32, #tpu.memory_space<vmem>>, %arg4: memref<16x128xbf16, #tpu.memory_space<vmem>>) attributes {dimension_semantics = [#tpu.dimension_semantics<parallel>], iteration_bounds = array<i64: 1>, scalar_prefetch = 0 : i64, scratch_operands = 0 : i64, tpu.core_type = #tpu.core_type<tc>, window_params = [{transform_indices = @transform_0, window_bounds = array<i64: 16, 128>}, {pipeline_mode = #tpu.pipeline_mode<synchronous>, transform_indices = @transform_1, window_bounds = array<i64: 16, 1>}, {pipeline_mode = #tpu.pipeline_mode<synchronous>, transform_indices = @transform_2, window_bounds = array<i64: 16, 1>}, {transform_indices = @transform_3, window_bounds = array<i64: 16, 128>}]} {
    %c0 = arith.constant 0 : index
    %c0_0 = arith.constant 0 : index
    %0 = vector.load %arg1[%c0, %c0_0] : memref<16x128xbf16, #tpu.memory_space<vmem>>, vector<16x128xbf16>
    %1 = arith.extf %0 : vector<16x128xbf16> to vector<16x128xf32>
    %c0_1 = arith.constant 0 : index
    %c0_2 = arith.constant 0 : index
    %2 = vector.load %arg2[%c0_1, %c0_2] : memref<16x1xf32, #tpu.memory_space<vmem>>, vector<16x1xf32>
    %3 = vector.broadcast %2 : vector<16x1xf32> to vector<16x128xf32>
    %4 = arith.mulf %1, %3 : vector<16x128xf32>
    %c0_3 = arith.constant 0 : index
    %c0_4 = arith.constant 0 : index
    %5 = vector.load %arg3[%c0_3, %c0_4] : memref<16x1xf32, #tpu.memory_space<vmem>>, vector<16x1xf32>
    %6 = vector.broadcast %5 : vector<16x1xf32> to vector<16x128xf32>
    %7 = arith.addf %4, %6 : vector<16x128xf32>
    %cst = arith.constant 0.000000e+00 : f32
    %8 = vector.broadcast %cst : f32 to vector<16x128xf32>
    %9 = arith.maximumf %7, %8 : vector<16x128xf32>
    %10 = arith.truncf %9 : vector<16x128xf32> to vector<16x128xbf16>
    %c0_5 = arith.constant 0 : index
    %c0_6 = arith.constant 0 : index
    %11 = vector.load %arg4[%c0_5, %c0_6] : memref<16x128xbf16, #tpu.memory_space<vmem>>, vector<16x128xbf16>
    tpu.vector_store %arg4[%c0_5, %c0_6], %10 {strides = array<i32>} : memref<16x128xbf16, #tpu.memory_space<vmem>>, vector<16x128xbf16>,
    return
  }
  func.func @transform_0(%arg0: i32) -> (i32, i32) {
    %c0_i32 = arith.constant 0 : i32
    %c0_i32_0 = arith.constant 0 : i32
    return %c0_i32, %arg0 : i32, i32
  }
  func.func @transform_1(%arg0: i32) -> (i32, i32) {
    %c0_i32 = arith.constant 0 : i32
    %c0_i32_0 = arith.constant 0 : i32
    %c0_i32_1 = arith.constant 0 : i32
    return %c0_i32, %c0_i32_0 : i32, i32
  }
  func.func @transform_2(%arg0: i32) -> (i32, i32) {
    %c0_i32 = arith.constant 0 : i32
    %c0_i32_0 = arith.constant 0 : i32
    %c0_i32_1 = arith.constant 0 : i32
    return %c0_i32, %c0_i32_0 : i32, i32
  }
  func.func @transform_3(%arg0: i32) -> (i32, i32) {
    %c0_i32 = arith.constant 0 : i32
    %c0_i32_0 = arith.constant 0 : i32
    return %c0_i32, %arg0 : i32, i32
  }
}

module attributes {stable_mosaic.version = 11 : i64} {
  func.func @_bn_relu_kernel(%arg0: i32, %arg1: memref<32x128xbf16, #tpu.memory_space<vmem>>, %arg2: memref<32x1xf32, #tpu.memory_space<vmem>>, %arg3: memref<32x1xf32, #tpu.memory_space<vmem>>, %arg4: memref<32x128xbf16, #tpu.memory_space<vmem>>) attributes {dimension_semantics = [#tpu.dimension_semantics<parallel>], iteration_bounds = array<i64: 1>, scalar_prefetch = 0 : i64, scratch_operands = 0 : i64, tpu.core_type = #tpu.core_type<tc>, window_params = [{transform_indices = @transform_0, window_bounds = array<i64: 32, 128>}, {pipeline_mode = #tpu.pipeline_mode<synchronous>, transform_indices = @transform_1, window_bounds = array<i64: 32, 1>}, {pipeline_mode = #tpu.pipeline_mode<synchronous>, transform_indices = @transform_2, window_bounds = array<i64: 32, 1>}, {transform_indices = @transform_3, window_bounds = array<i64: 32, 128>}]} {
    %c0 = arith.constant 0 : index
    %c0_0 = arith.constant 0 : index
    %0 = vector.load %arg1[%c0, %c0_0] : memref<32x128xbf16, #tpu.memory_space<vmem>>, vector<32x128xbf16>
    %1 = arith.extf %0 : vector<32x128xbf16> to vector<32x128xf32>
    %c0_1 = arith.constant 0 : index
    %c0_2 = arith.constant 0 : index
    %2 = vector.load %arg2[%c0_1, %c0_2] : memref<32x1xf32, #tpu.memory_space<vmem>>, vector<32x1xf32>
    %3 = vector.broadcast %2 : vector<32x1xf32> to vector<32x128xf32>
    %4 = arith.mulf %1, %3 : vector<32x128xf32>
    %c0_3 = arith.constant 0 : index
    %c0_4 = arith.constant 0 : index
    %5 = vector.load %arg3[%c0_3, %c0_4] : memref<32x1xf32, #tpu.memory_space<vmem>>, vector<32x1xf32>
    %6 = vector.broadcast %5 : vector<32x1xf32> to vector<32x128xf32>
    %7 = arith.addf %4, %6 : vector<32x128xf32>
    %cst = arith.constant 0.000000e+00 : f32
    %8 = vector.broadcast %cst : f32 to vector<32x128xf32>
    %9 = arith.maximumf %7, %8 : vector<32x128xf32>
    %10 = arith.truncf %9 : vector<32x128xf32> to vector<32x128xbf16>
    %c0_5 = arith.constant 0 : index
    %c0_6 = arith.constant 0 : index
    %11 = vector.load %arg4[%c0_5, %c0_6] : memref<32x128xbf16, #tpu.memory_space<vmem>>, vector<32x128xbf16>
    tpu.vector_store %arg4[%c0_5, %c0_6], %10 {strides = array<i32>} : memref<32x128xbf16, #tpu.memory_space<vmem>>, vector<32x128xbf16>,
    return
  }
  func.func @transform_0(%arg0: i32) -> (i32, i32) {
    %c0_i32 = arith.constant 0 : i32
    %c0_i32_0 = arith.constant 0 : i32
    return %c0_i32, %arg0 : i32, i32
  }
  func.func @transform_1(%arg0: i32) -> (i32, i32) {
    %c0_i32 = arith.constant 0 : i32
    %c0_i32_0 = arith.constant 0 : i32
    %c0_i32_1 = arith.constant 0 : i32
    return %c0_i32, %c0_i32_0 : i32, i32
  }
  func.func @transform_2(%arg0: i32) -> (i32, i32) {
    %c0_i32 = arith.constant 0 : i32
    %c0_i32_0 = arith.constant 0 : i32
    %c0_i32_1 = arith.constant 0 : i32
    return %c0_i32, %c0_i32_0 : i32, i32
  }
  func.func @transform_3(%arg0: i32) -> (i32, i32) {
    %c0_i32 = arith.constant 0 : i32
    %c0_i32_0 = arith.constant 0 : i32
    return %c0_i32, %arg0 : i32, i32
  }
}

module attributes {stable_mosaic.version = 11 : i64} {
  func.func @_gemm_stats_kernel(%arg0: i32, %arg1: memref<32x144xbf16, #tpu.memory_space<vmem>>, %arg2: memref<144x128xbf16, #tpu.memory_space<vmem>>, %arg3: memref<32x128xbf16, #tpu.memory_space<vmem>>, %arg4: memref<1x32x1xf32, #tpu.memory_space<vmem>>, %arg5: memref<1x32x1xf32, #tpu.memory_space<vmem>>) attributes {dimension_semantics = [#tpu.dimension_semantics<parallel>], iteration_bounds = array<i64: 1>, scalar_prefetch = 0 : i64, scratch_operands = 0 : i64, tpu.core_type = #tpu.core_type<tc>, window_params = [{pipeline_mode = #tpu.pipeline_mode<synchronous>, transform_indices = @transform_0, window_bounds = array<i64: 32, 144>}, {transform_indices = @transform_1, window_bounds = array<i64: 144, 128>}, {transform_indices = @transform_2, window_bounds = array<i64: 32, 128>}, {transform_indices = @transform_3, window_bounds = array<i64: 1, 32, 1>}, {transform_indices = @transform_4, window_bounds = array<i64: 1, 32, 1>}]} {
    %c0 = arith.constant 0 : index
    %c0_0 = arith.constant 0 : index
    %0 = vector.load %arg1[%c0, %c0_0] : memref<32x144xbf16, #tpu.memory_space<vmem>>, vector<32x144xbf16>
    %c0_1 = arith.constant 0 : index
    %c0_2 = arith.constant 0 : index
    %1 = vector.load %arg2[%c0_1, %c0_2] : memref<144x128xbf16, #tpu.memory_space<vmem>>, vector<144x128xbf16>
    %cst = arith.constant dense<0.000000e+00> : vector<32x128xf32>
    %2 = tpu.matmul %0, %1, %cst {dimension_numbers = #tpu.dot_dimension_numbers<[1], [0], [0], [1], [0, 0, 1, 1], [], []>} : vector<32x144xbf16>, vector<144x128xbf16>, vector<32x128xf32> -> vector<32x128xf32>
    %3 = arith.truncf %2 : vector<32x128xf32> to vector<32x128xbf16>
    %c0_3 = arith.constant 0 : index
    %c0_4 = arith.constant 0 : index
    %4 = vector.load %arg3[%c0_3, %c0_4] : memref<32x128xbf16, #tpu.memory_space<vmem>>, vector<32x128xbf16>
    tpu.vector_store %arg3[%c0_3, %c0_4], %3 {strides = array<i32>} : memref<32x128xbf16, #tpu.memory_space<vmem>>, vector<32x128xbf16>,
    %cst_5 = arith.constant dense<0.000000e+00> : vector<32xf32>
    %5 = vector.multi_reduction <add>, %2, %cst_5 [1] : vector<32x128xf32> to vector<32xf32>
    %6 = vector.shape_cast %5 : vector<32xf32> to vector<32x1xf32>
    %c0_6 = arith.constant 0 : index
    %c0_7 = arith.constant 0 : index
    %c0_8 = arith.constant 0 : index
    %7 = vector.load %arg4[%c0_6, %c0_7, %c0_8] : memref<1x32x1xf32, #tpu.memory_space<vmem>>, vector<1x32x1xf32>
    %8 = vector.shape_cast %7 : vector<1x32x1xf32> to vector<32x1xf32>
    %9 = vector.shape_cast %6 : vector<32x1xf32> to vector<1x32x1xf32>
    tpu.vector_store %arg4[%c0_6, %c0_7, %c0_8], %9 {strides = array<i32>} : memref<1x32x1xf32, #tpu.memory_space<vmem>>, vector<1x32x1xf32>,
    %10 = arith.mulf %2, %2 : vector<32x128xf32>
    %cst_9 = arith.constant dense<0.000000e+00> : vector<32xf32>
    %11 = vector.multi_reduction <add>, %10, %cst_9 [1] : vector<32x128xf32> to vector<32xf32>
    %12 = vector.shape_cast %11 : vector<32xf32> to vector<32x1xf32>
    %c0_10 = arith.constant 0 : index
    %c0_11 = arith.constant 0 : index
    %c0_12 = arith.constant 0 : index
    %13 = vector.load %arg5[%c0_10, %c0_11, %c0_12] : memref<1x32x1xf32, #tpu.memory_space<vmem>>, vector<1x32x1xf32>
    %14 = vector.shape_cast %13 : vector<1x32x1xf32> to vector<32x1xf32>
    %15 = vector.shape_cast %12 : vector<32x1xf32> to vector<1x32x1xf32>
    tpu.vector_store %arg5[%c0_10, %c0_11, %c0_12], %15 {strides = array<i32>} : memref<1x32x1xf32, #tpu.memory_space<vmem>>, vector<1x32x1xf32>,
    return
  }
  func.func @transform_0(%arg0: i32) -> (i32, i32) {
    %c0_i32 = arith.constant 0 : i32
    %c0_i32_0 = arith.constant 0 : i32
    %c0_i32_1 = arith.constant 0 : i32
    return %c0_i32, %c0_i32_0 : i32, i32
  }
  func.func @transform_1(%arg0: i32) -> (i32, i32) {
    %c0_i32 = arith.constant 0 : i32
    %c0_i32_0 = arith.constant 0 : i32
    return %c0_i32, %arg0 : i32, i32
  }
  func.func @transform_2(%arg0: i32) -> (i32, i32) {
    %c0_i32 = arith.constant 0 : i32
    %c0_i32_0 = arith.constant 0 : i32
    return %c0_i32, %arg0 : i32, i32
  }
  func.func @transform_3(%arg0: i32) -> (i32, i32, i32) {
    %c0_i32 = arith.constant 0 : i32
    %c0_i32_0 = arith.constant 0 : i32
    %c0_i32_1 = arith.constant 0 : i32
    return %arg0, %c0_i32, %c0_i32_0 : i32, i32, i32
  }
  func.func @transform_4(%arg0: i32) -> (i32, i32, i32) {
    %c0_i32 = arith.constant 0 : i32
    %c0_i32_0 = arith.constant 0 : i32
    %c0_i32_1 = arith.constant 0 : i32
    return %arg0, %c0_i32, %c0_i32_0 : i32, i32, i32
  }
}

module attributes {stable_mosaic.version = 11 : i64} {
  func.func @_gemm_stats_kernel(%arg0: i32, %arg1: memref<64x288xbf16, #tpu.memory_space<vmem>>, %arg2: memref<288x128xbf16, #tpu.memory_space<vmem>>, %arg3: memref<64x128xbf16, #tpu.memory_space<vmem>>, %arg4: memref<1x64x1xf32, #tpu.memory_space<vmem>>, %arg5: memref<1x64x1xf32, #tpu.memory_space<vmem>>) attributes {dimension_semantics = [#tpu.dimension_semantics<parallel>], iteration_bounds = array<i64: 1>, scalar_prefetch = 0 : i64, scratch_operands = 0 : i64, tpu.core_type = #tpu.core_type<tc>, window_params = [{pipeline_mode = #tpu.pipeline_mode<synchronous>, transform_indices = @transform_0, window_bounds = array<i64: 64, 288>}, {transform_indices = @transform_1, window_bounds = array<i64: 288, 128>}, {transform_indices = @transform_2, window_bounds = array<i64: 64, 128>}, {transform_indices = @transform_3, window_bounds = array<i64: 1, 64, 1>}, {transform_indices = @transform_4, window_bounds = array<i64: 1, 64, 1>}]} {
    %c0 = arith.constant 0 : index
    %c0_0 = arith.constant 0 : index
    %0 = vector.load %arg1[%c0, %c0_0] : memref<64x288xbf16, #tpu.memory_space<vmem>>, vector<64x288xbf16>
    %c0_1 = arith.constant 0 : index
    %c0_2 = arith.constant 0 : index
    %1 = vector.load %arg2[%c0_1, %c0_2] : memref<288x128xbf16, #tpu.memory_space<vmem>>, vector<288x128xbf16>
    %cst = arith.constant dense<0.000000e+00> : vector<64x128xf32>
    %2 = tpu.matmul %0, %1, %cst {dimension_numbers = #tpu.dot_dimension_numbers<[1], [0], [0], [1], [0, 0, 1, 1], [], []>} : vector<64x288xbf16>, vector<288x128xbf16>, vector<64x128xf32> -> vector<64x128xf32>
    %3 = arith.truncf %2 : vector<64x128xf32> to vector<64x128xbf16>
    %c0_3 = arith.constant 0 : index
    %c0_4 = arith.constant 0 : index
    %4 = vector.load %arg3[%c0_3, %c0_4] : memref<64x128xbf16, #tpu.memory_space<vmem>>, vector<64x128xbf16>
    tpu.vector_store %arg3[%c0_3, %c0_4], %3 {strides = array<i32>} : memref<64x128xbf16, #tpu.memory_space<vmem>>, vector<64x128xbf16>,
    %cst_5 = arith.constant dense<0.000000e+00> : vector<64xf32>
    %5 = vector.multi_reduction <add>, %2, %cst_5 [1] : vector<64x128xf32> to vector<64xf32>
    %6 = vector.shape_cast %5 : vector<64xf32> to vector<64x1xf32>
    %c0_6 = arith.constant 0 : index
    %c0_7 = arith.constant 0 : index
    %c0_8 = arith.constant 0 : index
    %7 = vector.load %arg4[%c0_6, %c0_7, %c0_8] : memref<1x64x1xf32, #tpu.memory_space<vmem>>, vector<1x64x1xf32>
    %8 = vector.shape_cast %7 : vector<1x64x1xf32> to vector<64x1xf32>
    %9 = vector.shape_cast %6 : vector<64x1xf32> to vector<1x64x1xf32>
    tpu.vector_store %arg4[%c0_6, %c0_7, %c0_8], %9 {strides = array<i32>} : memref<1x64x1xf32, #tpu.memory_space<vmem>>, vector<1x64x1xf32>,
    %10 = arith.mulf %2, %2 : vector<64x128xf32>
    %cst_9 = arith.constant dense<0.000000e+00> : vector<64xf32>
    %11 = vector.multi_reduction <add>, %10, %cst_9 [1] : vector<64x128xf32> to vector<64xf32>
    %12 = vector.shape_cast %11 : vector<64xf32> to vector<64x1xf32>
    %c0_10 = arith.constant 0 : index
    %c0_11 = arith.constant 0 : index
    %c0_12 = arith.constant 0 : index
    %13 = vector.load %arg5[%c0_10, %c0_11, %c0_12] : memref<1x64x1xf32, #tpu.memory_space<vmem>>, vector<1x64x1xf32>
    %14 = vector.shape_cast %13 : vector<1x64x1xf32> to vector<64x1xf32>
    %15 = vector.shape_cast %12 : vector<64x1xf32> to vector<1x64x1xf32>
    tpu.vector_store %arg5[%c0_10, %c0_11, %c0_12], %15 {strides = array<i32>} : memref<1x64x1xf32, #tpu.memory_space<vmem>>, vector<1x64x1xf32>,
    return
  }
  func.func @transform_0(%arg0: i32) -> (i32, i32) {
    %c0_i32 = arith.constant 0 : i32
    %c0_i32_0 = arith.constant 0 : i32
    %c0_i32_1 = arith.constant 0 : i32
    return %c0_i32, %c0_i32_0 : i32, i32
  }
  func.func @transform_1(%arg0: i32) -> (i32, i32) {
    %c0_i32 = arith.constant 0 : i32
    %c0_i32_0 = arith.constant 0 : i32
    return %c0_i32, %arg0 : i32, i32
  }
  func.func @transform_2(%arg0: i32) -> (i32, i32) {
    %c0_i32 = arith.constant 0 : i32
    %c0_i32_0 = arith.constant 0 : i32
    return %c0_i32, %arg0 : i32, i32
  }
  func.func @transform_3(%arg0: i32) -> (i32, i32, i32) {
    %c0_i32 = arith.constant 0 : i32
    %c0_i32_0 = arith.constant 0 : i32
    %c0_i32_1 = arith.constant 0 : i32
    return %arg0, %c0_i32, %c0_i32_0 : i32, i32, i32
  }
  func.func @transform_4(%arg0: i32) -> (i32, i32, i32) {
    %c0_i32 = arith.constant 0 : i32
    %c0_i32_0 = arith.constant 0 : i32
    %c0_i32_1 = arith.constant 0 : i32
    return %arg0, %c0_i32, %c0_i32_0 : i32, i32, i32
  }
}

module attributes {stable_mosaic.version = 11 : i64} {
  func.func @_bn_relu_kernel(%arg0: i32, %arg1: memref<64x128xbf16, #tpu.memory_space<vmem>>, %arg2: memref<64x1xf32, #tpu.memory_space<vmem>>, %arg3: memref<64x1xf32, #tpu.memory_space<vmem>>, %arg4: memref<64x128xbf16, #tpu.memory_space<vmem>>) attributes {dimension_semantics = [#tpu.dimension_semantics<parallel>], iteration_bounds = array<i64: 1>, scalar_prefetch = 0 : i64, scratch_operands = 0 : i64, tpu.core_type = #tpu.core_type<tc>, window_params = [{transform_indices = @transform_0, window_bounds = array<i64: 64, 128>}, {pipeline_mode = #tpu.pipeline_mode<synchronous>, transform_indices = @transform_1, window_bounds = array<i64: 64, 1>}, {pipeline_mode = #tpu.pipeline_mode<synchronous>, transform_indices = @transform_2, window_bounds = array<i64: 64, 1>}, {transform_indices = @transform_3, window_bounds = array<i64: 64, 128>}]} {
    %c0 = arith.constant 0 : index
    %c0_0 = arith.constant 0 : index
    %0 = vector.load %arg1[%c0, %c0_0] : memref<64x128xbf16, #tpu.memory_space<vmem>>, vector<64x128xbf16>
    %1 = arith.extf %0 : vector<64x128xbf16> to vector<64x128xf32>
    %c0_1 = arith.constant 0 : index
    %c0_2 = arith.constant 0 : index
    %2 = vector.load %arg2[%c0_1, %c0_2] : memref<64x1xf32, #tpu.memory_space<vmem>>, vector<64x1xf32>
    %3 = vector.broadcast %2 : vector<64x1xf32> to vector<64x128xf32>
    %4 = arith.mulf %1, %3 : vector<64x128xf32>
    %c0_3 = arith.constant 0 : index
    %c0_4 = arith.constant 0 : index
    %5 = vector.load %arg3[%c0_3, %c0_4] : memref<64x1xf32, #tpu.memory_space<vmem>>, vector<64x1xf32>
    %6 = vector.broadcast %5 : vector<64x1xf32> to vector<64x128xf32>
    %7 = arith.addf %4, %6 : vector<64x128xf32>
    %cst = arith.constant 0.000000e+00 : f32
    %8 = vector.broadcast %cst : f32 to vector<64x128xf32>
    %9 = arith.maximumf %7, %8 : vector<64x128xf32>
    %10 = arith.truncf %9 : vector<64x128xf32> to vector<64x128xbf16>
    %c0_5 = arith.constant 0 : index
    %c0_6 = arith.constant 0 : index
    %11 = vector.load %arg4[%c0_5, %c0_6] : memref<64x128xbf16, #tpu.memory_space<vmem>>, vector<64x128xbf16>
    tpu.vector_store %arg4[%c0_5, %c0_6], %10 {strides = array<i32>} : memref<64x128xbf16, #tpu.memory_space<vmem>>, vector<64x128xbf16>,
    return
  }
  func.func @transform_0(%arg0: i32) -> (i32, i32) {
    %c0_i32 = arith.constant 0 : i32
    %c0_i32_0 = arith.constant 0 : i32
    return %c0_i32, %arg0 : i32, i32
  }
  func.func @transform_1(%arg0: i32) -> (i32, i32) {
    %c0_i32 = arith.constant 0 : i32
    %c0_i32_0 = arith.constant 0 : i32
    %c0_i32_1 = arith.constant 0 : i32
    return %c0_i32, %c0_i32_0 : i32, i32
  }
  func.func @transform_2(%arg0: i32) -> (i32, i32) {
    %c0_i32 = arith.constant 0 : i32
    %c0_i32_0 = arith.constant 0 : i32
    %c0_i32_1 = arith.constant 0 : i32
    return %c0_i32, %c0_i32_0 : i32, i32
  }
  func.func @transform_3(%arg0: i32) -> (i32, i32) {
    %c0_i32 = arith.constant 0 : i32
    %c0_i32_0 = arith.constant 0 : i32
    return %c0_i32, %arg0 : i32, i32
  }
}

module attributes {stable_mosaic.version = 11 : i64} {
  func.func @_gemm_stats_kernel(%arg0: i32, %arg1: memref<128x256xbf16, #tpu.memory_space<vmem>>, %arg2: memref<256x128xbf16, #tpu.memory_space<vmem>>, %arg3: memref<128x128xbf16, #tpu.memory_space<vmem>>, %arg4: memref<1x128x1xf32, #tpu.memory_space<vmem>>, %arg5: memref<1x128x1xf32, #tpu.memory_space<vmem>>) attributes {dimension_semantics = [#tpu.dimension_semantics<parallel>], iteration_bounds = array<i64: 1>, scalar_prefetch = 0 : i64, scratch_operands = 0 : i64, tpu.core_type = #tpu.core_type<tc>, window_params = [{pipeline_mode = #tpu.pipeline_mode<synchronous>, transform_indices = @transform_0, window_bounds = array<i64: 128, 256>}, {transform_indices = @transform_1, window_bounds = array<i64: 256, 128>}, {transform_indices = @transform_2, window_bounds = array<i64: 128, 128>}, {transform_indices = @transform_3, window_bounds = array<i64: 1, 128, 1>}, {transform_indices = @transform_4, window_bounds = array<i64: 1, 128, 1>}]} {
    %c0 = arith.constant 0 : index
    %c0_0 = arith.constant 0 : index
    %0 = vector.load %arg1[%c0, %c0_0] : memref<128x256xbf16, #tpu.memory_space<vmem>>, vector<128x256xbf16>
    %c0_1 = arith.constant 0 : index
    %c0_2 = arith.constant 0 : index
    %1 = vector.load %arg2[%c0_1, %c0_2] : memref<256x128xbf16, #tpu.memory_space<vmem>>, vector<256x128xbf16>
    %cst = arith.constant dense<0.000000e+00> : vector<128x128xf32>
    %2 = tpu.matmul %0, %1, %cst {dimension_numbers = #tpu.dot_dimension_numbers<[1], [0], [0], [1], [0, 0, 1, 1], [], []>} : vector<128x256xbf16>, vector<256x128xbf16>, vector<128x128xf32> -> vector<128x128xf32>
    %3 = arith.truncf %2 : vector<128x128xf32> to vector<128x128xbf16>
    %c0_3 = arith.constant 0 : index
    %c0_4 = arith.constant 0 : index
    %4 = vector.load %arg3[%c0_3, %c0_4] : memref<128x128xbf16, #tpu.memory_space<vmem>>, vector<128x128xbf16>
    tpu.vector_store %arg3[%c0_3, %c0_4], %3 {strides = array<i32>} : memref<128x128xbf16, #tpu.memory_space<vmem>>, vector<128x128xbf16>,
    %cst_5 = arith.constant dense<0.000000e+00> : vector<128xf32>
    %5 = vector.multi_reduction <add>, %2, %cst_5 [1] : vector<128x128xf32> to vector<128xf32>
    %6 = vector.shape_cast %5 : vector<128xf32> to vector<128x1xf32>
    %c0_6 = arith.constant 0 : index
    %c0_7 = arith.constant 0 : index
    %c0_8 = arith.constant 0 : index
    %7 = vector.load %arg4[%c0_6, %c0_7, %c0_8] : memref<1x128x1xf32, #tpu.memory_space<vmem>>, vector<1x128x1xf32>
    %8 = vector.shape_cast %7 : vector<1x128x1xf32> to vector<128x1xf32>
    %9 = vector.shape_cast %6 : vector<128x1xf32> to vector<1x128x1xf32>
    tpu.vector_store %arg4[%c0_6, %c0_7, %c0_8], %9 {strides = array<i32>} : memref<1x128x1xf32, #tpu.memory_space<vmem>>, vector<1x128x1xf32>,
    %10 = arith.mulf %2, %2 : vector<128x128xf32>
    %cst_9 = arith.constant dense<0.000000e+00> : vector<128xf32>
    %11 = vector.multi_reduction <add>, %10, %cst_9 [1] : vector<128x128xf32> to vector<128xf32>
    %12 = vector.shape_cast %11 : vector<128xf32> to vector<128x1xf32>
    %c0_10 = arith.constant 0 : index
    %c0_11 = arith.constant 0 : index
    %c0_12 = arith.constant 0 : index
    %13 = vector.load %arg5[%c0_10, %c0_11, %c0_12] : memref<1x128x1xf32, #tpu.memory_space<vmem>>, vector<1x128x1xf32>
    %14 = vector.shape_cast %13 : vector<1x128x1xf32> to vector<128x1xf32>
    %15 = vector.shape_cast %12 : vector<128x1xf32> to vector<1x128x1xf32>
    tpu.vector_store %arg5[%c0_10, %c0_11, %c0_12], %15 {strides = array<i32>} : memref<1x128x1xf32, #tpu.memory_space<vmem>>, vector<1x128x1xf32>,
    return
  }
  func.func @transform_0(%arg0: i32) -> (i32, i32) {
    %c0_i32 = arith.constant 0 : i32
    %c0_i32_0 = arith.constant 0 : i32
    %c0_i32_1 = arith.constant 0 : i32
    return %c0_i32, %c0_i32_0 : i32, i32
  }
  func.func @transform_1(%arg0: i32) -> (i32, i32) {
    %c0_i32 = arith.constant 0 : i32
    %c0_i32_0 = arith.constant 0 : i32
    return %c0_i32, %arg0 : i32, i32
  }
  func.func @transform_2(%arg0: i32) -> (i32, i32) {
    %c0_i32 = arith.constant 0 : i32
    %c0_i32_0 = arith.constant 0 : i32
    return %c0_i32, %arg0 : i32, i32
  }
  func.func @transform_3(%arg0: i32) -> (i32, i32, i32) {
    %c0_i32 = arith.constant 0 : i32
    %c0_i32_0 = arith.constant 0 : i32
    %c0_i32_1 = arith.constant 0 : i32
    return %arg0, %c0_i32, %c0_i32_0 : i32, i32, i32
  }
  func.func @transform_4(%arg0: i32) -> (i32, i32, i32) {
    %c0_i32 = arith.constant 0 : i32
    %c0_i32_0 = arith.constant 0 : i32
    %c0_i32_1 = arith.constant 0 : i32
    return %arg0, %c0_i32, %c0_i32_0 : i32, i32, i32
  }
}

module attributes {stable_mosaic.version = 11 : i64} {
  func.func @_bn_relu_min_kernel(%arg0: i32, %arg1: memref<32x128xbf16, #tpu.memory_space<vmem>>, %arg2: memref<32x1xf32, #tpu.memory_space<vmem>>, %arg3: memref<32x1xf32, #tpu.memory_space<vmem>>, %arg4: memref<32x128xbf16, #tpu.memory_space<vmem>>, %arg5: memref<32x128xbf16, #tpu.memory_space<vmem>>) attributes {dimension_semantics = [#tpu.dimension_semantics<parallel>], iteration_bounds = array<i64: 1>, scalar_prefetch = 0 : i64, scratch_operands = 0 : i64, tpu.core_type = #tpu.core_type<tc>, window_params = [{transform_indices = @transform_0, window_bounds = array<i64: 32, 128>}, {pipeline_mode = #tpu.pipeline_mode<synchronous>, transform_indices = @transform_1, window_bounds = array<i64: 32, 1>}, {pipeline_mode = #tpu.pipeline_mode<synchronous>, transform_indices = @transform_2, window_bounds = array<i64: 32, 1>}, {transform_indices = @transform_3, window_bounds = array<i64: 32, 128>}, {transform_indices = @transform_4, window_bounds = array<i64: 32, 128>}]} {
    %c0 = arith.constant 0 : index
    %c0_0 = arith.constant 0 : index
    %0 = vector.load %arg1[%c0, %c0_0] : memref<32x128xbf16, #tpu.memory_space<vmem>>, vector<32x128xbf16>
    %1 = arith.extf %0 : vector<32x128xbf16> to vector<32x128xf32>
    %c0_1 = arith.constant 0 : index
    %c0_2 = arith.constant 0 : index
    %2 = vector.load %arg2[%c0_1, %c0_2] : memref<32x1xf32, #tpu.memory_space<vmem>>, vector<32x1xf32>
    %3 = vector.broadcast %2 : vector<32x1xf32> to vector<32x128xf32>
    %4 = arith.mulf %1, %3 : vector<32x128xf32>
    %c0_3 = arith.constant 0 : index
    %c0_4 = arith.constant 0 : index
    %5 = vector.load %arg3[%c0_3, %c0_4] : memref<32x1xf32, #tpu.memory_space<vmem>>, vector<32x1xf32>
    %6 = vector.broadcast %5 : vector<32x1xf32> to vector<32x128xf32>
    %7 = arith.addf %4, %6 : vector<32x128xf32>
    %cst = arith.constant 0.000000e+00 : f32
    %8 = vector.broadcast %cst : f32 to vector<32x128xf32>
    %9 = arith.maximumf %7, %8 : vector<32x128xf32>
    %c0_5 = arith.constant 0 : index
    %c0_6 = arith.constant 0 : index
    %10 = vector.load %arg4[%c0_5, %c0_6] : memref<32x128xbf16, #tpu.memory_space<vmem>>, vector<32x128xbf16>
    %11 = arith.extf %10 : vector<32x128xbf16> to vector<32x128xf32>
    %12 = arith.minimumf %9, %11 : vector<32x128xf32>
    %13 = arith.truncf %12 : vector<32x128xf32> to vector<32x128xbf16>
    %c0_7 = arith.constant 0 : index
    %c0_8 = arith.constant 0 : index
    %14 = vector.load %arg5[%c0_7, %c0_8] : memref<32x128xbf16, #tpu.memory_space<vmem>>, vector<32x128xbf16>
    tpu.vector_store %arg5[%c0_7, %c0_8], %13 {strides = array<i32>} : memref<32x128xbf16, #tpu.memory_space<vmem>>, vector<32x128xbf16>,
    return
  }
  func.func @transform_0(%arg0: i32) -> (i32, i32) {
    %c0_i32 = arith.constant 0 : i32
    %c0_i32_0 = arith.constant 0 : i32
    return %c0_i32, %arg0 : i32, i32
  }
  func.func @transform_1(%arg0: i32) -> (i32, i32) {
    %c0_i32 = arith.constant 0 : i32
    %c0_i32_0 = arith.constant 0 : i32
    %c0_i32_1 = arith.constant 0 : i32
    return %c0_i32, %c0_i32_0 : i32, i32
  }
  func.func @transform_2(%arg0: i32) -> (i32, i32) {
    %c0_i32 = arith.constant 0 : i32
    %c0_i32_0 = arith.constant 0 : i32
    %c0_i32_1 = arith.constant 0 : i32
    return %c0_i32, %c0_i32_0 : i32, i32
  }
  func.func @transform_3(%arg0: i32) -> (i32, i32) {
    %c0_i32 = arith.constant 0 : i32
    %c0_i32_0 = arith.constant 0 : i32
    return %c0_i32, %arg0 : i32, i32
  }
  func.func @transform_4(%arg0: i32) -> (i32, i32) {
    %c0_i32 = arith.constant 0 : i32
    %c0_i32_0 = arith.constant 0 : i32
    return %c0_i32, %arg0 : i32, i32
  }
}

module attributes {stable_mosaic.version = 11 : i64} {
  func.func @_gemm_stats_kernel(%arg0: i32, %arg1: memref<64x128xbf16, #tpu.memory_space<vmem>>, %arg2: memref<128x128xbf16, #tpu.memory_space<vmem>>, %arg3: memref<64x128xbf16, #tpu.memory_space<vmem>>, %arg4: memref<1x64x1xf32, #tpu.memory_space<vmem>>, %arg5: memref<1x64x1xf32, #tpu.memory_space<vmem>>) attributes {dimension_semantics = [#tpu.dimension_semantics<parallel>], iteration_bounds = array<i64: 1>, scalar_prefetch = 0 : i64, scratch_operands = 0 : i64, tpu.core_type = #tpu.core_type<tc>, window_params = [{pipeline_mode = #tpu.pipeline_mode<synchronous>, transform_indices = @transform_0, window_bounds = array<i64: 64, 128>}, {transform_indices = @transform_1, window_bounds = array<i64: 128, 128>}, {transform_indices = @transform_2, window_bounds = array<i64: 64, 128>}, {transform_indices = @transform_3, window_bounds = array<i64: 1, 64, 1>}, {transform_indices = @transform_4, window_bounds = array<i64: 1, 64, 1>}]} {
    %c0 = arith.constant 0 : index
    %c0_0 = arith.constant 0 : index
    %0 = vector.load %arg1[%c0, %c0_0] : memref<64x128xbf16, #tpu.memory_space<vmem>>, vector<64x128xbf16>
    %c0_1 = arith.constant 0 : index
    %c0_2 = arith.constant 0 : index
    %1 = vector.load %arg2[%c0_1, %c0_2] : memref<128x128xbf16, #tpu.memory_space<vmem>>, vector<128x128xbf16>
    %cst = arith.constant dense<0.000000e+00> : vector<64x128xf32>
    %2 = tpu.matmul %0, %1, %cst {dimension_numbers = #tpu.dot_dimension_numbers<[1], [0], [0], [1], [0, 0, 1, 1], [], []>} : vector<64x128xbf16>, vector<128x128xbf16>, vector<64x128xf32> -> vector<64x128xf32>
    %3 = arith.truncf %2 : vector<64x128xf32> to vector<64x128xbf16>
    %c0_3 = arith.constant 0 : index
    %c0_4 = arith.constant 0 : index
    %4 = vector.load %arg3[%c0_3, %c0_4] : memref<64x128xbf16, #tpu.memory_space<vmem>>, vector<64x128xbf16>
    tpu.vector_store %arg3[%c0_3, %c0_4], %3 {strides = array<i32>} : memref<64x128xbf16, #tpu.memory_space<vmem>>, vector<64x128xbf16>,
    %cst_5 = arith.constant dense<0.000000e+00> : vector<64xf32>
    %5 = vector.multi_reduction <add>, %2, %cst_5 [1] : vector<64x128xf32> to vector<64xf32>
    %6 = vector.shape_cast %5 : vector<64xf32> to vector<64x1xf32>
    %c0_6 = arith.constant 0 : index
    %c0_7 = arith.constant 0 : index
    %c0_8 = arith.constant 0 : index
    %7 = vector.load %arg4[%c0_6, %c0_7, %c0_8] : memref<1x64x1xf32, #tpu.memory_space<vmem>>, vector<1x64x1xf32>
    %8 = vector.shape_cast %7 : vector<1x64x1xf32> to vector<64x1xf32>
    %9 = vector.shape_cast %6 : vector<64x1xf32> to vector<1x64x1xf32>
    tpu.vector_store %arg4[%c0_6, %c0_7, %c0_8], %9 {strides = array<i32>} : memref<1x64x1xf32, #tpu.memory_space<vmem>>, vector<1x64x1xf32>,
    %10 = arith.mulf %2, %2 : vector<64x128xf32>
    %cst_9 = arith.constant dense<0.000000e+00> : vector<64xf32>
    %11 = vector.multi_reduction <add>, %10, %cst_9 [1] : vector<64x128xf32> to vector<64xf32>
    %12 = vector.shape_cast %11 : vector<64xf32> to vector<64x1xf32>
    %c0_10 = arith.constant 0 : index
    %c0_11 = arith.constant 0 : index
    %c0_12 = arith.constant 0 : index
    %13 = vector.load %arg5[%c0_10, %c0_11, %c0_12] : memref<1x64x1xf32, #tpu.memory_space<vmem>>, vector<1x64x1xf32>
    %14 = vector.shape_cast %13 : vector<1x64x1xf32> to vector<64x1xf32>
    %15 = vector.shape_cast %12 : vector<64x1xf32> to vector<1x64x1xf32>
    tpu.vector_store %arg5[%c0_10, %c0_11, %c0_12], %15 {strides = array<i32>} : memref<1x64x1xf32, #tpu.memory_space<vmem>>, vector<1x64x1xf32>,
    return
  }
  func.func @transform_0(%arg0: i32) -> (i32, i32) {
    %c0_i32 = arith.constant 0 : i32
    %c0_i32_0 = arith.constant 0 : i32
    %c0_i32_1 = arith.constant 0 : i32
    return %c0_i32, %c0_i32_0 : i32, i32
  }
  func.func @transform_1(%arg0: i32) -> (i32, i32) {
    %c0_i32 = arith.constant 0 : i32
    %c0_i32_0 = arith.constant 0 : i32
    return %c0_i32, %arg0 : i32, i32
  }
  func.func @transform_2(%arg0: i32) -> (i32, i32) {
    %c0_i32 = arith.constant 0 : i32
    %c0_i32_0 = arith.constant 0 : i32
    return %c0_i32, %arg0 : i32, i32
  }
  func.func @transform_3(%arg0: i32) -> (i32, i32, i32) {
    %c0_i32 = arith.constant 0 : i32
    %c0_i32_0 = arith.constant 0 : i32
    %c0_i32_1 = arith.constant 0 : i32
    return %arg0, %c0_i32, %c0_i32_0 : i32, i32, i32
  }
  func.func @transform_4(%arg0: i32) -> (i32, i32, i32) {
    %c0_i32 = arith.constant 0 : i32
    %c0_i32_0 = arith.constant 0 : i32
    %c0_i32_1 = arith.constant 0 : i32
    return %arg0, %c0_i32, %c0_i32_0 : i32, i32, i32
  }
}

module attributes {stable_mosaic.version = 11 : i64} {
  func.func @_bn_relu_min_kernel(%arg0: i32, %arg1: memref<16x128xbf16, #tpu.memory_space<vmem>>, %arg2: memref<16x1xf32, #tpu.memory_space<vmem>>, %arg3: memref<16x1xf32, #tpu.memory_space<vmem>>, %arg4: memref<16x128xbf16, #tpu.memory_space<vmem>>, %arg5: memref<16x128xbf16, #tpu.memory_space<vmem>>) attributes {dimension_semantics = [#tpu.dimension_semantics<parallel>], iteration_bounds = array<i64: 1>, scalar_prefetch = 0 : i64, scratch_operands = 0 : i64, tpu.core_type = #tpu.core_type<tc>, window_params = [{transform_indices = @transform_0, window_bounds = array<i64: 16, 128>}, {pipeline_mode = #tpu.pipeline_mode<synchronous>, transform_indices = @transform_1, window_bounds = array<i64: 16, 1>}, {pipeline_mode = #tpu.pipeline_mode<synchronous>, transform_indices = @transform_2, window_bounds = array<i64: 16, 1>}, {transform_indices = @transform_3, window_bounds = array<i64: 16, 128>}, {transform_indices = @transform_4, window_bounds = array<i64: 16, 128>}]} {
    %c0 = arith.constant 0 : index
    %c0_0 = arith.constant 0 : index
    %0 = vector.load %arg1[%c0, %c0_0] : memref<16x128xbf16, #tpu.memory_space<vmem>>, vector<16x128xbf16>
    %1 = arith.extf %0 : vector<16x128xbf16> to vector<16x128xf32>
    %c0_1 = arith.constant 0 : index
    %c0_2 = arith.constant 0 : index
    %2 = vector.load %arg2[%c0_1, %c0_2] : memref<16x1xf32, #tpu.memory_space<vmem>>, vector<16x1xf32>
    %3 = vector.broadcast %2 : vector<16x1xf32> to vector<16x128xf32>
    %4 = arith.mulf %1, %3 : vector<16x128xf32>
    %c0_3 = arith.constant 0 : index
    %c0_4 = arith.constant 0 : index
    %5 = vector.load %arg3[%c0_3, %c0_4] : memref<16x1xf32, #tpu.memory_space<vmem>>, vector<16x1xf32>
    %6 = vector.broadcast %5 : vector<16x1xf32> to vector<16x128xf32>
    %7 = arith.addf %4, %6 : vector<16x128xf32>
    %cst = arith.constant 0.000000e+00 : f32
    %8 = vector.broadcast %cst : f32 to vector<16x128xf32>
    %9 = arith.maximumf %7, %8 : vector<16x128xf32>
    %c0_5 = arith.constant 0 : index
    %c0_6 = arith.constant 0 : index
    %10 = vector.load %arg4[%c0_5, %c0_6] : memref<16x128xbf16, #tpu.memory_space<vmem>>, vector<16x128xbf16>
    %11 = arith.extf %10 : vector<16x128xbf16> to vector<16x128xf32>
    %12 = arith.minimumf %9, %11 : vector<16x128xf32>
    %13 = arith.truncf %12 : vector<16x128xf32> to vector<16x128xbf16>
    %c0_7 = arith.constant 0 : index
    %c0_8 = arith.constant 0 : index
    %14 = vector.load %arg5[%c0_7, %c0_8] : memref<16x128xbf16, #tpu.memory_space<vmem>>, vector<16x128xbf16>
    tpu.vector_store %arg5[%c0_7, %c0_8], %13 {strides = array<i32>} : memref<16x128xbf16, #tpu.memory_space<vmem>>, vector<16x128xbf16>,
    return
  }
  func.func @transform_0(%arg0: i32) -> (i32, i32) {
    %c0_i32 = arith.constant 0 : i32
    %c0_i32_0 = arith.constant 0 : i32
    return %c0_i32, %arg0 : i32, i32
  }
  func.func @transform_1(%arg0: i32) -> (i32, i32) {
    %c0_i32 = arith.constant 0 : i32
    %c0_i32_0 = arith.constant 0 : i32
    %c0_i32_1 = arith.constant 0 : i32
    return %c0_i32, %c0_i32_0 : i32, i32
  }
  func.func @transform_2(%arg0: i32) -> (i32, i32) {
    %c0_i32 = arith.constant 0 : i32
    %c0_i32_0 = arith.constant 0 : i32
    %c0_i32_1 = arith.constant 0 : i32
    return %c0_i32, %c0_i32_0 : i32, i32
  }
  func.func @transform_3(%arg0: i32) -> (i32, i32) {
    %c0_i32 = arith.constant 0 : i32
    %c0_i32_0 = arith.constant 0 : i32
    return %c0_i32, %arg0 : i32, i32
  }
  func.func @transform_4(%arg0: i32) -> (i32, i32) {
    %c0_i32 = arith.constant 0 : i32
    %c0_i32_0 = arith.constant 0 : i32
    return %c0_i32, %arg0 : i32, i32
  }
}

module attributes {stable_mosaic.version = 11 : i64} {
  func.func @_gemm_stats_kernel(%arg0: i32, %arg1: memref<32x64xbf16, #tpu.memory_space<vmem>>, %arg2: memref<64x128xbf16, #tpu.memory_space<vmem>>, %arg3: memref<32x128xbf16, #tpu.memory_space<vmem>>, %arg4: memref<1x32x1xf32, #tpu.memory_space<vmem>>, %arg5: memref<1x32x1xf32, #tpu.memory_space<vmem>>) attributes {dimension_semantics = [#tpu.dimension_semantics<parallel>], iteration_bounds = array<i64: 1>, scalar_prefetch = 0 : i64, scratch_operands = 0 : i64, tpu.core_type = #tpu.core_type<tc>, window_params = [{pipeline_mode = #tpu.pipeline_mode<synchronous>, transform_indices = @transform_0, window_bounds = array<i64: 32, 64>}, {transform_indices = @transform_1, window_bounds = array<i64: 64, 128>}, {transform_indices = @transform_2, window_bounds = array<i64: 32, 128>}, {transform_indices = @transform_3, window_bounds = array<i64: 1, 32, 1>}, {transform_indices = @transform_4, window_bounds = array<i64: 1, 32, 1>}]} {
    %c0 = arith.constant 0 : index
    %c0_0 = arith.constant 0 : index
    %0 = vector.load %arg1[%c0, %c0_0] : memref<32x64xbf16, #tpu.memory_space<vmem>>, vector<32x64xbf16>
    %c0_1 = arith.constant 0 : index
    %c0_2 = arith.constant 0 : index
    %1 = vector.load %arg2[%c0_1, %c0_2] : memref<64x128xbf16, #tpu.memory_space<vmem>>, vector<64x128xbf16>
    %cst = arith.constant dense<0.000000e+00> : vector<32x128xf32>
    %2 = tpu.matmul %0, %1, %cst {dimension_numbers = #tpu.dot_dimension_numbers<[1], [0], [0], [1], [0, 0, 1, 1], [], []>} : vector<32x64xbf16>, vector<64x128xbf16>, vector<32x128xf32> -> vector<32x128xf32>
    %3 = arith.truncf %2 : vector<32x128xf32> to vector<32x128xbf16>
    %c0_3 = arith.constant 0 : index
    %c0_4 = arith.constant 0 : index
    %4 = vector.load %arg3[%c0_3, %c0_4] : memref<32x128xbf16, #tpu.memory_space<vmem>>, vector<32x128xbf16>
    tpu.vector_store %arg3[%c0_3, %c0_4], %3 {strides = array<i32>} : memref<32x128xbf16, #tpu.memory_space<vmem>>, vector<32x128xbf16>,
    %cst_5 = arith.constant dense<0.000000e+00> : vector<32xf32>
    %5 = vector.multi_reduction <add>, %2, %cst_5 [1] : vector<32x128xf32> to vector<32xf32>
    %6 = vector.shape_cast %5 : vector<32xf32> to vector<32x1xf32>
    %c0_6 = arith.constant 0 : index
    %c0_7 = arith.constant 0 : index
    %c0_8 = arith.constant 0 : index
    %7 = vector.load %arg4[%c0_6, %c0_7, %c0_8] : memref<1x32x1xf32, #tpu.memory_space<vmem>>, vector<1x32x1xf32>
    %8 = vector.shape_cast %7 : vector<1x32x1xf32> to vector<32x1xf32>
    %9 = vector.shape_cast %6 : vector<32x1xf32> to vector<1x32x1xf32>
    tpu.vector_store %arg4[%c0_6, %c0_7, %c0_8], %9 {strides = array<i32>} : memref<1x32x1xf32, #tpu.memory_space<vmem>>, vector<1x32x1xf32>,
    %10 = arith.mulf %2, %2 : vector<32x128xf32>
    %cst_9 = arith.constant dense<0.000000e+00> : vector<32xf32>
    %11 = vector.multi_reduction <add>, %10, %cst_9 [1] : vector<32x128xf32> to vector<32xf32>
    %12 = vector.shape_cast %11 : vector<32xf32> to vector<32x1xf32>
    %c0_10 = arith.constant 0 : index
    %c0_11 = arith.constant 0 : index
    %c0_12 = arith.constant 0 : index
    %13 = vector.load %arg5[%c0_10, %c0_11, %c0_12] : memref<1x32x1xf32, #tpu.memory_space<vmem>>, vector<1x32x1xf32>
    %14 = vector.shape_cast %13 : vector<1x32x1xf32> to vector<32x1xf32>
    %15 = vector.shape_cast %12 : vector<32x1xf32> to vector<1x32x1xf32>
    tpu.vector_store %arg5[%c0_10, %c0_11, %c0_12], %15 {strides = array<i32>} : memref<1x32x1xf32, #tpu.memory_space<vmem>>, vector<1x32x1xf32>,
    return
  }
  func.func @transform_0(%arg0: i32) -> (i32, i32) {
    %c0_i32 = arith.constant 0 : i32
    %c0_i32_0 = arith.constant 0 : i32
    %c0_i32_1 = arith.constant 0 : i32
    return %c0_i32, %c0_i32_0 : i32, i32
  }
  func.func @transform_1(%arg0: i32) -> (i32, i32) {
    %c0_i32 = arith.constant 0 : i32
    %c0_i32_0 = arith.constant 0 : i32
    return %c0_i32, %arg0 : i32, i32
  }
  func.func @transform_2(%arg0: i32) -> (i32, i32) {
    %c0_i32 = arith.constant 0 : i32
    %c0_i32_0 = arith.constant 0 : i32
    return %c0_i32, %arg0 : i32, i32
  }
  func.func @transform_3(%arg0: i32) -> (i32, i32, i32) {
    %c0_i32 = arith.constant 0 : i32
    %c0_i32_0 = arith.constant 0 : i32
    %c0_i32_1 = arith.constant 0 : i32
    return %arg0, %c0_i32, %c0_i32_0 : i32, i32, i32
  }
  func.func @transform_4(%arg0: i32) -> (i32, i32, i32) {
    %c0_i32 = arith.constant 0 : i32
    %c0_i32_0 = arith.constant 0 : i32
    %c0_i32_1 = arith.constant 0 : i32
    return %arg0, %c0_i32, %c0_i32_0 : i32, i32, i32
  }
}

module attributes {stable_mosaic.version = 11 : i64} {
  func.func @_bn_relu_min_kernel(%arg0: i32, %arg1: memref<8x128xbf16, #tpu.memory_space<vmem>>, %arg2: memref<8x1xf32, #tpu.memory_space<vmem>>, %arg3: memref<8x1xf32, #tpu.memory_space<vmem>>, %arg4: memref<8x128xbf16, #tpu.memory_space<vmem>>, %arg5: memref<8x128xbf16, #tpu.memory_space<vmem>>) attributes {dimension_semantics = [#tpu.dimension_semantics<parallel>], iteration_bounds = array<i64: 4>, scalar_prefetch = 0 : i64, scratch_operands = 0 : i64, tpu.core_type = #tpu.core_type<tc>, window_params = [{transform_indices = @transform_0, window_bounds = array<i64: 8, 128>}, {pipeline_mode = #tpu.pipeline_mode<synchronous>, transform_indices = @transform_1, window_bounds = array<i64: 8, 1>}, {pipeline_mode = #tpu.pipeline_mode<synchronous>, transform_indices = @transform_2, window_bounds = array<i64: 8, 1>}, {transform_indices = @transform_3, window_bounds = array<i64: 8, 128>}, {transform_indices = @transform_4, window_bounds = array<i64: 8, 128>}]} {
    %c0 = arith.constant 0 : index
    %c0_0 = arith.constant 0 : index
    %0 = vector.load %arg1[%c0, %c0_0] : memref<8x128xbf16, #tpu.memory_space<vmem>>, vector<8x128xbf16>
    %1 = arith.extf %0 : vector<8x128xbf16> to vector<8x128xf32>
    %c0_1 = arith.constant 0 : index
    %c0_2 = arith.constant 0 : index
    %2 = vector.load %arg2[%c0_1, %c0_2] : memref<8x1xf32, #tpu.memory_space<vmem>>, vector<8x1xf32>
    %3 = vector.broadcast %2 : vector<8x1xf32> to vector<8x128xf32>
    %4 = arith.mulf %1, %3 : vector<8x128xf32>
    %c0_3 = arith.constant 0 : index
    %c0_4 = arith.constant 0 : index
    %5 = vector.load %arg3[%c0_3, %c0_4] : memref<8x1xf32, #tpu.memory_space<vmem>>, vector<8x1xf32>
    %6 = vector.broadcast %5 : vector<8x1xf32> to vector<8x128xf32>
    %7 = arith.addf %4, %6 : vector<8x128xf32>
    %cst = arith.constant 0.000000e+00 : f32
    %8 = vector.broadcast %cst : f32 to vector<8x128xf32>
    %9 = arith.maximumf %7, %8 : vector<8x128xf32>
    %c0_5 = arith.constant 0 : index
    %c0_6 = arith.constant 0 : index
    %10 = vector.load %arg4[%c0_5, %c0_6] : memref<8x128xbf16, #tpu.memory_space<vmem>>, vector<8x128xbf16>
    %11 = arith.extf %10 : vector<8x128xbf16> to vector<8x128xf32>
    %12 = arith.minimumf %9, %11 : vector<8x128xf32>
    %13 = arith.truncf %12 : vector<8x128xf32> to vector<8x128xbf16>
    %c0_7 = arith.constant 0 : index
    %c0_8 = arith.constant 0 : index
    %14 = vector.load %arg5[%c0_7, %c0_8] : memref<8x128xbf16, #tpu.memory_space<vmem>>, vector<8x128xbf16>
    tpu.vector_store %arg5[%c0_7, %c0_8], %13 {strides = array<i32>} : memref<8x128xbf16, #tpu.memory_space<vmem>>, vector<8x128xbf16>,
    return
  }
  func.func @transform_0(%arg0: i32) -> (i32, i32) {
    %c0_i32 = arith.constant 0 : i32
    %c0_i32_0 = arith.constant 0 : i32
    return %c0_i32, %arg0 : i32, i32
  }
  func.func @transform_1(%arg0: i32) -> (i32, i32) {
    %c0_i32 = arith.constant 0 : i32
    %c0_i32_0 = arith.constant 0 : i32
    %c0_i32_1 = arith.constant 0 : i32
    return %c0_i32, %c0_i32_0 : i32, i32
  }
  func.func @transform_2(%arg0: i32) -> (i32, i32) {
    %c0_i32 = arith.constant 0 : i32
    %c0_i32_0 = arith.constant 0 : i32
    %c0_i32_1 = arith.constant 0 : i32
    return %c0_i32, %c0_i32_0 : i32, i32
  }
  func.func @transform_3(%arg0: i32) -> (i32, i32) {
    %c0_i32 = arith.constant 0 : i32
    %c0_i32_0 = arith.constant 0 : i32
    return %c0_i32, %arg0 : i32, i32
  }
  func.func @transform_4(%arg0: i32) -> (i32, i32) {
    %c0_i32 = arith.constant 0 : i32
    %c0_i32_0 = arith.constant 0 : i32
    return %c0_i32, %arg0 : i32, i32
  }
}

module attributes {stable_mosaic.version = 11 : i64} {
  func.func @_bn_relu_kernel(%arg0: i32, %arg1: memref<4x128xbf16, #tpu.memory_space<vmem>>, %arg2: memref<4x1xf32, #tpu.memory_space<vmem>>, %arg3: memref<4x1xf32, #tpu.memory_space<vmem>>, %arg4: memref<4x128xbf16, #tpu.memory_space<vmem>>) attributes {dimension_semantics = [#tpu.dimension_semantics<parallel>], iteration_bounds = array<i64: 4>, scalar_prefetch = 0 : i64, scratch_operands = 0 : i64, tpu.core_type = #tpu.core_type<tc>, window_params = [{transform_indices = @transform_0, window_bounds = array<i64: 4, 128>}, {pipeline_mode = #tpu.pipeline_mode<synchronous>, transform_indices = @transform_1, window_bounds = array<i64: 4, 1>}, {pipeline_mode = #tpu.pipeline_mode<synchronous>, transform_indices = @transform_2, window_bounds = array<i64: 4, 1>}, {transform_indices = @transform_3, window_bounds = array<i64: 4, 128>}]} {
    %c0 = arith.constant 0 : index
    %c0_0 = arith.constant 0 : index
    %0 = vector.load %arg1[%c0, %c0_0] : memref<4x128xbf16, #tpu.memory_space<vmem>>, vector<4x128xbf16>
    %1 = arith.extf %0 : vector<4x128xbf16> to vector<4x128xf32>
    %c0_1 = arith.constant 0 : index
    %c0_2 = arith.constant 0 : index
    %2 = vector.load %arg2[%c0_1, %c0_2] : memref<4x1xf32, #tpu.memory_space<vmem>>, vector<4x1xf32>
    %3 = vector.broadcast %2 : vector<4x1xf32> to vector<4x128xf32>
    %4 = arith.mulf %1, %3 : vector<4x128xf32>
    %c0_3 = arith.constant 0 : index
    %c0_4 = arith.constant 0 : index
    %5 = vector.load %arg3[%c0_3, %c0_4] : memref<4x1xf32, #tpu.memory_space<vmem>>, vector<4x1xf32>
    %6 = vector.broadcast %5 : vector<4x1xf32> to vector<4x128xf32>
    %7 = arith.addf %4, %6 : vector<4x128xf32>
    %cst = arith.constant 0.000000e+00 : f32
    %8 = vector.broadcast %cst : f32 to vector<4x128xf32>
    %9 = arith.maximumf %7, %8 : vector<4x128xf32>
    %10 = arith.truncf %9 : vector<4x128xf32> to vector<4x128xbf16>
    %c0_5 = arith.constant 0 : index
    %c0_6 = arith.constant 0 : index
    %11 = vector.load %arg4[%c0_5, %c0_6] : memref<4x128xbf16, #tpu.memory_space<vmem>>, vector<4x128xbf16>
    tpu.vector_store %arg4[%c0_5, %c0_6], %10 {strides = array<i32>} : memref<4x128xbf16, #tpu.memory_space<vmem>>, vector<4x128xbf16>,
    return
  }
  func.func @transform_0(%arg0: i32) -> (i32, i32) {
    %c0_i32 = arith.constant 0 : i32
    %c0_i32_0 = arith.constant 0 : i32
    return %c0_i32, %arg0 : i32, i32
  }
  func.func @transform_1(%arg0: i32) -> (i32, i32) {
    %c0_i32 = arith.constant 0 : i32
    %c0_i32_0 = arith.constant 0 : i32
    %c0_i32_1 = arith.constant 0 : i32
    return %c0_i32, %c0_i32_0 : i32, i32
  }
  func.func @transform_2(%arg0: i32) -> (i32, i32) {
    %c0_i32 = arith.constant 0 : i32
    %c0_i32_0 = arith.constant 0 : i32
    %c0_i32_1 = arith.constant 0 : i32
    return %c0_i32, %c0_i32_0 : i32, i32
  }
  func.func @transform_3(%arg0: i32) -> (i32, i32) {
    %c0_i32 = arith.constant 0 : i32
    %c0_i32_0 = arith.constant 0 : i32
    return %c0_i32, %arg0 : i32, i32
  }
}

module attributes {stable_mosaic.version = 11 : i64} {
  func.func @_gemm_stats_kernel(%arg0: i32, %arg1: memref<4x72xbf16, #tpu.memory_space<vmem>>, %arg2: memref<72x128xbf16, #tpu.memory_space<vmem>>, %arg3: memref<4x128xbf16, #tpu.memory_space<vmem>>, %arg4: memref<1x4x1xf32, #tpu.memory_space<vmem>>, %arg5: memref<1x4x1xf32, #tpu.memory_space<vmem>>) attributes {dimension_semantics = [#tpu.dimension_semantics<parallel>], iteration_bounds = array<i64: 4>, scalar_prefetch = 0 : i64, scratch_operands = 0 : i64, tpu.core_type = #tpu.core_type<tc>, window_params = [{pipeline_mode = #tpu.pipeline_mode<synchronous>, transform_indices = @transform_0, window_bounds = array<i64: 4, 72>}, {transform_indices = @transform_1, window_bounds = array<i64: 72, 128>}, {transform_indices = @transform_2, window_bounds = array<i64: 4, 128>}, {transform_indices = @transform_3, window_bounds = array<i64: 1, 4, 1>}, {transform_indices = @transform_4, window_bounds = array<i64: 1, 4, 1>}]} {
    %c0 = arith.constant 0 : index
    %c0_0 = arith.constant 0 : index
    %0 = vector.load %arg1[%c0, %c0_0] : memref<4x72xbf16, #tpu.memory_space<vmem>>, vector<4x72xbf16>
    %c0_1 = arith.constant 0 : index
    %c0_2 = arith.constant 0 : index
    %1 = vector.load %arg2[%c0_1, %c0_2] : memref<72x128xbf16, #tpu.memory_space<vmem>>, vector<72x128xbf16>
    %cst = arith.constant dense<0.000000e+00> : vector<4x128xf32>
    %2 = tpu.matmul %0, %1, %cst {dimension_numbers = #tpu.dot_dimension_numbers<[1], [0], [0], [1], [0, 0, 1, 1], [], []>} : vector<4x72xbf16>, vector<72x128xbf16>, vector<4x128xf32> -> vector<4x128xf32>
    %3 = arith.truncf %2 : vector<4x128xf32> to vector<4x128xbf16>
    %c0_3 = arith.constant 0 : index
    %c0_4 = arith.constant 0 : index
    %4 = vector.load %arg3[%c0_3, %c0_4] : memref<4x128xbf16, #tpu.memory_space<vmem>>, vector<4x128xbf16>
    tpu.vector_store %arg3[%c0_3, %c0_4], %3 {strides = array<i32>} : memref<4x128xbf16, #tpu.memory_space<vmem>>, vector<4x128xbf16>,
    %cst_5 = arith.constant dense<0.000000e+00> : vector<4xf32>
    %5 = vector.multi_reduction <add>, %2, %cst_5 [1] : vector<4x128xf32> to vector<4xf32>
    %6 = vector.shape_cast %5 : vector<4xf32> to vector<4x1xf32>
    %c0_6 = arith.constant 0 : index
    %c0_7 = arith.constant 0 : index
    %c0_8 = arith.constant 0 : index
    %7 = vector.load %arg4[%c0_6, %c0_7, %c0_8] : memref<1x4x1xf32, #tpu.memory_space<vmem>>, vector<1x4x1xf32>
    %8 = vector.shape_cast %7 : vector<1x4x1xf32> to vector<4x1xf32>
    %9 = vector.shape_cast %6 : vector<4x1xf32> to vector<1x4x1xf32>
    tpu.vector_store %arg4[%c0_6, %c0_7, %c0_8], %9 {strides = array<i32>} : memref<1x4x1xf32, #tpu.memory_space<vmem>>, vector<1x4x1xf32>,
    %10 = arith.mulf %2, %2 : vector<4x128xf32>
    %cst_9 = arith.constant dense<0.000000e+00> : vector<4xf32>
    %11 = vector.multi_reduction <add>, %10, %cst_9 [1] : vector<4x128xf32> to vector<4xf32>
    %12 = vector.shape_cast %11 : vector<4xf32> to vector<4x1xf32>
    %c0_10 = arith.constant 0 : index
    %c0_11 = arith.constant 0 : index
    %c0_12 = arith.constant 0 : index
    %13 = vector.load %arg5[%c0_10, %c0_11, %c0_12] : memref<1x4x1xf32, #tpu.memory_space<vmem>>, vector<1x4x1xf32>
    %14 = vector.shape_cast %13 : vector<1x4x1xf32> to vector<4x1xf32>
    %15 = vector.shape_cast %12 : vector<4x1xf32> to vector<1x4x1xf32>
    tpu.vector_store %arg5[%c0_10, %c0_11, %c0_12], %15 {strides = array<i32>} : memref<1x4x1xf32, #tpu.memory_space<vmem>>, vector<1x4x1xf32>,
    return
  }
  func.func @transform_0(%arg0: i32) -> (i32, i32) {
    %c0_i32 = arith.constant 0 : i32
    %c0_i32_0 = arith.constant 0 : i32
    %c0_i32_1 = arith.constant 0 : i32
    return %c0_i32, %c0_i32_0 : i32, i32
  }
  func.func @transform_1(%arg0: i32) -> (i32, i32) {
    %c0_i32 = arith.constant 0 : i32
    %c0_i32_0 = arith.constant 0 : i32
    return %c0_i32, %arg0 : i32, i32
  }
  func.func @transform_2(%arg0: i32) -> (i32, i32) {
    %c0_i32 = arith.constant 0 : i32
    %c0_i32_0 = arith.constant 0 : i32
    return %c0_i32, %arg0 : i32, i32
  }
  func.func @transform_3(%arg0: i32) -> (i32, i32, i32) {
    %c0_i32 = arith.constant 0 : i32
    %c0_i32_0 = arith.constant 0 : i32
    %c0_i32_1 = arith.constant 0 : i32
    return %arg0, %c0_i32, %c0_i32_0 : i32, i32, i32
  }
  func.func @transform_4(%arg0: i32) -> (i32, i32, i32) {
    %c0_i32 = arith.constant 0 : i32
    %c0_i32_0 = arith.constant 0 : i32
    %c0_i32_1 = arith.constant 0 : i32
    return %arg0, %c0_i32, %c0_i32_0 : i32, i32, i32
  }
}

</mosaic_0001>

<bundles_post_ra>
// kernel: learning_conv.40
= control target key start
LH: loop header
LB: loop body
LE: loop exit
PB: predicated region body
PF: predicated region fallthrough
CT: control target
= control target key end

     0   :  { %s586_s15 = smov 0   ;;  %s588_s16 = smov 0   ;;  %s649_s0 = inlined_call_operand.vmem [shape: bf16[8,36], index: 0, kind: input, shape index: {}]   ;;  %s650_s1 = inlined_call_operand.vmem [shape: bf16[36,512], index: 1, kind: input, shape index: {}]   ;;  %s651_s2 = inlined_call_operand.vmem [shape: bf16[8,512], index: 2, kind: output, shape index: {0}]   ;;  %s652_s3 = inlined_call_operand.vmem [shape: f32[4,8,1], index: 3, kind: output, shape index: {1}]   ;;  %s653_s4 = inlined_call_operand.vmem [shape: f32[4,8,1], index: 4, kind: output, shape index: {2}]  }
   0x1   :  { %s590_s17 = smov 0  }
   0x2 LB: > { %s475_s18 = sadd.s32 4294967295, %s557_s17   ;;  %s603_s19 = sadd.s32 1, %s557_s17   ;;  %s557_s17 = sphi %s590_s17, %s656_s17   ;;  %s553_s16 = sphi %s588_s16, %s655_s16   ;;  %s549_s15 = sphi %s586_s15, %s654_s15  }
   0x3   : > { %s40_s20 = ssub.s32 %s557_s17, %s603_s19  ;;  %s43_s21 = sadd.s32 1, %s553_s16 }
   0x4   : > { %p41_p0 = scmp.eq.s32.totalorder %s40_s20, 0  ;;  %p50_p1 = scmp.ne.s32.totalorder %s553_s16, %s549_s15 }
   0x5   : > { %p51_p2 = scmp.eq.s32.totalorder %s557_s17, 0  ;;  %p478_p4 = scmp.ge.s32.totalorder %s557_s17, 4 }
   0x6   : > { %s612_s22 = scalar_select %p41_p0, %s553_s16, %s43_s21  }
   0x7   : > { %p52_p3 = por %p51_p2, %p50_p1  ;;  %157 = sbr.rel (%p478_p4) target bundleno = 21 (0x15), region = 20 }
   0xe   : > { %160 = sbr.rel (!%p52_p3) target bundleno = 21 (0x15), region = 24  ;;  %s162_s23 = sand.u32 (%p52_p3), 1, %s553_s16  }
   0xf   : > { %s479_s24 = sshll.u32 (%p52_p3), %s557_s17, 2  ;;  %s504_s25 = smul.u32 (%p52_p3), 20, %s162_s23 }
  0x10   : > { %s166_s28 = scalar_lea.vmem (%p52_p3), %s650_s1, %s479_s24 }
  0x11   : > { %v182_v0 = vld [vmem:[%s166_s28] sm:$0xf] (%p52_p3)  ;;  %v184_v1 = vld [vmem:[%s166_s28 + $0x10] sm:$0xf] (%p52_p3)  ;;  %s164_s29 = scalar_lea.vmem (%p52_p3), [#allocation2], %s504_s25 }
  0x12   : > { %v186_v2 = vld [vmem:[%s166_s28 + $0x20] sm:$0xf] (%p52_p3)  ;;  %v188_v3 = vld [vmem:[%s166_s28 + $0x30] sm:$0xf] (%p52_p3)  ;;  %183 = vst [vmem:[%s164_s29] sm:$0xf] (%p52_p3), %v182_v0 }
  0x13   : > { %v190_v4 = vld [vmem:[%s166_s28 + $0x40] sm:$0xf] (%p52_p3)  ;;  %185 = vst [vmem:[%s164_s29 + $0x4] sm:$0xf] (%p52_p3), %v184_v1  ;;  %187 = vst [vmem:[%s164_s29 + $0x8] sm:$0xf] (%p52_p3), %v186_v2 }
  0x14   : > { %189 = vst [vmem:[%s164_s29 + $0xc] sm:$0xf] (%p52_p3), %v188_v3  ;;  %191 = vst [vmem:[%s164_s29 + $0x10] sm:$0xf] (%p52_p3), %v190_v4 }
  0x15 PF: > { %p480_p5 = scmp.ge.s32.totalorder %s557_s17, 1  ;;  %p223_p6 = scmp.lt.s32.totalorder %s557_s17, 5 }
  0x17   : > { %p224_p7 = pnand %p480_p5, %p223_p6 }
  0x18   : > { %s230_s30 = sand.u32 (!%p224_p7), 1, %s549_s15   ;;  %v559_v5 = vmov (!%p224_p7), 0.0   ;;  %vm560_vm0 = vmmov (!%p224_p7), 0   ;;  %vm300_vm1 = vcmask (!%p224_p7), 1041408   ;;  %v275_v10 = vld [vmem:[%s649_s0] sm:$0xf] (!%p224_p7) }
  0x19   : > { %227 = sbr.rel (%p224_p7) target bundleno = 400 (0x190), region = 65  ;;  %494 = vmatprep.subr.bf16.mxu0 (!%p224_p7), %v559_v5  ;;  %500 = vmatprep.mubr.msk.bf16.mxu0 (!%p224_p7), %vm560_vm0, %v559_v5  ;;  %vm296_vm2 = vcmask (!%p224_p7), 293888   ;;  %p262_p8 = scmp.lt.s32.totalorder (!%p224_p7), %s475_s18, 3  ;;  %vm348_vm3 = vcmask (!%p224_p7), 7168  }
  0x1a   : > { %s505_s5 = smul.u32 (!%p224_p7), 20, %s230_s30 }
  0x1c   : > { %s232_s6 = scalar_lea.vmem (!%p224_p7), [#allocation2], %s505_s5 }
  0x1d   : > { %v532_v6 = vld [vmem:[%s232_s6] sm:$0xff] (!%p224_p7)   ;;  %v533_v7 = vld [vmem:[%s232_s6 + $0x8] sm:$0xff] (!%p224_p7)   ;;  %v534_v8 = vld [vmem:[%s232_s6 + $0x10] ss:$0 sps:$4 sm:$0x33] (!%p224_p7)  }
  0x1e   : > { %495 = vmatpush3.bf16.msra.mxu0 (!%p224_p7), %v532_v6  ;;  %v302_v9 = vsel (!%p224_p7), %vm300_vm1, %v534_v8, 0 }
  0x1f   : > { %496 = vmatprep.subr.bf16.mxu0 (!%p224_p7), %v559_v5 }
  0x20   : > { %s658_s18 = smov (!%p262_p8, %s475_s18), 3 }
  0x21   : > { %s481_s9 = sshll.u32 %s658_s18, 2  ;;  %s482_s13 = sshll.u32 %s658_s18, 3 }
  0x22   : > { %497 = vmatpush3.bf16.msra.mxu0 %v533_v7  ;;  %s265_s12 = scalar_lea.vmem %s651_s2, %s481_s9  ;;  %s269_s17 = scalar_lea.vmem %s652_s3, %s482_s13 }
  0x23   : > { %498 = vmatprep.subr.bf16.mxu0 %v559_v5  ;;  %s273_s23 = scalar_lea.vmem %s653_s4, %s482_s13 }
  0x26   : > { %499 = vmatpush3.bf16.msra.mxu0 %v302_v9 }
  0x29   : > { %501 = vmatmul.mubr.msk.bf16.vlgmr.msra.gmra.mrb[0].mxu0 %vm296_vm2, %v275_v10 }
  0xfc   : > { %v338_v11 = vpop.f32.mrb[0].mxu0 }
  0xfd   : > { %v344_v12 = vpack.c.bf16 %v338_v11, %v338_v11  ;;  %346 = vadd.xlane.f32.xlu0 %v338_v11  ;;  %v502_v13 = vpop.f32.mrb[1].mxu0  ;;  %v350_v16 = vmul.f32 %v338_v11, %v338_v11 }
  0xfe   : > { %v341_v14 = vpop.f32.mrb[2].mxu0 }
  0xff   : > { %345 = vst [vmem:[%s265_s12] sm:$0xf] %v344_v12  ;;  %v503_v15 = vpop.f32.mrb[3].mxu0 }
 0x101   : > { %351 = vadd.xlane.f32.xlu0 %v350_v16 }
 0x18a   : > { %v347_v17 = vpop.xlane.xlu0 %346 }
 0x18b   : > { %349 = vst.msk [vmem:[%s269_s17] sm:$0xff] %vm348_vm3, %v347_v17 }
 0x18e   : > { %v352_v18 = vpop.xlane.xlu0 %351 }
 0x18f   : > { %353 = vst.msk [vmem:[%s273_s23] sm:$0xff] %vm348_vm3, %v352_v18 }
 0x190 PF: > { %p12_p9 = scmp.ge.s32.totalorder %s603_s19, 6   ;;  %s654_s15 = smov %s553_s16 }
 0x191   : > { %s655_s16 = smov %s612_s22  ;;  %s656_s17 = smov %s603_s19 }
 0x192   :  { %14 = sbr.rel (!%p12_p9) target bundleno = 2 (0x2), region = 128 }

// kernel: learning_conv.41
= control target key start
LH: loop header
LB: loop body
LE: loop exit
PB: predicated region body
PF: predicated region fallthrough
CT: control target
= control target key end

     0   :  { %s286_s12 = smov 0   ;;  %s309_s0 = inlined_call_operand.vmem [shape: bf16[8,512], index: 0, kind: input, shape index: {}]   ;;  %s310_s1 = inlined_call_operand.vmem [shape: f32[8,1], index: 1, kind: input, shape index: {}]   ;;  %s311_s2 = inlined_call_operand.vmem [shape: f32[8,1], index: 2, kind: input, shape index: {}]   ;;  %s312_s3 = inlined_call_operand.vmem [shape: bf16[8,512], index: 3, kind: output, shape index: {}]  }
   0x1 LB: > { %s238_s13 = sadd.s32 4294967295, %s263_s12   ;;  %p242_p0 = scmp.ge.s32.totalorder %s263_s12, 1  ;;  %s263_s12 = sphi %s286_s12, %s13_s12  }
   0x2   : > { %p136_p1 = scmp.lt.s32.totalorder %s263_s12, 5 }
   0x4   : > { %p137_p2 = pnand %p242_p0, %p136_p1 }
   0x5   : > { %v168_v0 = vld [vmem:[%s310_s1] sm:$0xff] (!%p137_p2)  ;;  %v265_v1 = vmov (!%p137_p2), 0   ;;  %p158_p3 = scmp.lt.s32.totalorder (!%p137_p2), %s238_s13, 3 }
   0x6   : > { %140 = sbr.rel (%p137_p2) target bundleno = 146 (0x92), region = 32  ;;  %256 = vset.pattern.permute.xlu0 (!%p137_p2), %v265_v1  ;;  %v175_v2 = vld [vmem:[%s311_s2] sm:$0xff] (!%p137_p2) }
   0x7   : > { %171 = vperm.xlu0 (!%p137_p2), %256, %v168_v0  }
   0xb   : > { %178 = vperm.xlu0 (!%p137_p2), %256, %v175_v2  }
   0xd   : > { %s314_s13 = smov (!%p158_p3, %s238_s13), 3 }
   0xe   : > { %s243_s18 = sshll.u32 %s314_s13, 2 }
   0xf   : > { %s161_s21 = scalar_lea.vmem %s309_s0, %s243_s18  ;;  %s165_s24 = scalar_lea.vmem %s312_s3, %s243_s18 }
  0x10   : > { %v166_v3 = vld [vmem:[%s161_s21] sm:$0xf] }
  0x11   : > { %v167_v4 = vunpack.c.l.bf16 %v166_v3 }
  0x86   : > { %v172_v5 = vpop.permute.xlu0 %171 }
  0x87   : > { %v174_v6 = vmul.f32 %v172_v5, %v167_v4 }
  0x8a   : > { %v179_v7 = vpop.permute.xlu0 %178 }
  0x8b   : > { %v181_v8 = vadd.f32 %v179_v7, %v174_v6 }
  0x8d   : > { %v182_v9 = vmax.f32 %v181_v8, 0.0 }
  0x8f   : > { %v183_v10 = vpack.c.bf16 %v182_v9, %v182_v9 }
  0x91   : > { %184 = vst [vmem:[%s165_s24] sm:$0xf] %v183_v10 }
  0x92 PF: > { %s13_s12 = sadd.s32 1, %s263_s12  }
  0x93   : > { %p10_p4 = scmp.ge.s32.totalorder %s13_s12, 6  }
  0x95   :  { %12 = sbr.rel (!%p10_p4) target bundleno = 1 (0x1), region = 62 }

// kernel: learning_conv.42
= control target key start
LH: loop header
LB: loop body
LE: loop exit
PB: predicated region body
PF: predicated region fallthrough
CT: control target
= control target key end

     0   :  { %v188_v0 = vmov 0.0   ;;  %vm189_vm0 = vmmov 0   ;;  %vm62_vm1 = vcmask 1043456   ;;  %vm58_vm2 = vcmask 588800   ;;  %s248_s1 = inlined_call_operand.vmem [shape: bf16[72,128], index: 1, kind: input, shape index: {}]   ;;  %s249_s0 = inlined_call_operand.vmem [shape: bf16[16,72], index: 0, kind: input, shape index: {}]   ;;  %s250_s2 = inlined_call_operand.vmem [shape: bf16[16,128], index: 2, kind: output, shape index: {0}]   ;;  %s251_s3 = inlined_call_operand.vmem [shape: f32[1,16,1], index: 3, kind: output, shape index: {1}]   ;;  %s252_s4 = inlined_call_operand.vmem [shape: f32[1,16,1], index: 4, kind: output, shape index: {2}]  }
   0x1   :  { %166 = vmatprep.subr.bf16.mxu0 %v188_v0  ;;  %v182_v1 = vld [vmem:[%s248_s1] sm:$0xff]   ;;  %176 = vmatprep.mubr.msk.bf16.mxu0 %vm189_vm0, %v188_v0  ;;  %v183_v2 = vld [vmem:[%s248_s1 + $0x8] sm:$0xff]   ;;  %v184_v3 = vld [vmem:[%s248_s1 + $0x10] sm:$0xff]   ;;  %vm121_vm3 = vcmask 7168  }
   0x2   :  { %167 = vmatpush3.bf16.msra.mxu0 %v182_v1  ;;  %v185_v4 = vld [vmem:[%s248_s1 + $0x18] sm:$0xff]   ;;  %v186_v5 = vld [vmem:[%s248_s1 + $0x20] ss:$0 sps:$4 sm:$0xff]  }
   0x3   :  { %168 = vmatprep.subr.bf16.mxu0 %v188_v0  ;;  %v64_v6 = vsel %vm62_vm1, %v186_v5, 0  ;;  %v187_v7 = vld [vmem:[%s249_s0] sm:$0xff]  }
   0x6   :  { %169 = vmatpush3.bf16.msra.mxu0 %v183_v2 }
   0x7   :  { %170 = vmatprep.subr.bf16.mxu0 %v188_v0 }
   0xa   :  { %171 = vmatpush3.bf16.msra.mxu0 %v184_v3 }
   0xb   :  { %172 = vmatprep.subr.bf16.mxu0 %v188_v0 }
   0xe   :  { %173 = vmatpush3.bf16.msra.mxu0 %v185_v4 }
   0xf   :  { %174 = vmatprep.subr.bf16.mxu0 %v188_v0 }
  0x12   :  { %175 = vmatpush3.bf16.msra.mxu0 %v64_v6 }
  0x15   :  { %177 = vmatmul.mubr.msk.bf16.vlgmr.msra.gmra.mrb[0].mxu0 %vm58_vm2, %v187_v7 }
  0xe8   :  { %v100_v8 = vpop.f32.mrb[0].mxu0 }
  0xe9   :  { %117 = vadd.xlane.f32.xlu0 %v100_v8  ;;  %v178_v9 = vpop.f32.mrb[1].mxu0  ;;  %v124_v10 = vmul.f32 %v100_v8, %v100_v8 }
  0xea   :  { %v103_v11 = vpop.f32.mrb[2].mxu0 }
  0xeb   :  { %v158_v12 = vpack.c.bf16 %v103_v11, %v100_v8  ;;  %126 = vadd.xlane.f32.xlu1 %v124_v10  ;;  %v179_v13 = vpop.f32.mrb[3].mxu0  ;;  %v125_v14 = vmul.f32 %v103_v11, %v103_v11 }
  0xed   :  { %159 = vst [vmem:[%s250_s2] sm:$0xff] %v158_v12   ;;  %119 = vadd.xlane.f32.xlu0 %v103_v11 }
  0xef   :  { %128 = vadd.xlane.f32.xlu1 %v125_v14 }
 0x176   :  { %v118_v15 = vpop.xlane.xlu0 %117 }
 0x177   :  { %122 = vst.msk [vmem:[%s251_s3] sm:$0xff] %vm121_vm3, %v118_v15 }
 0x178   :  { %v127_v16 = vpop.xlane.xlu1 %126 }
 0x179   :  { %130 = vst.msk [vmem:[%s252_s4] sm:$0xff] %vm121_vm3, %v127_v16 }
 0x17a   :  { %v120_v17 = vpop.xlane.xlu0 %119 }
 0x17b   :  { %123 = vst.msk [vmem:[%s251_s3 + $0x8] sm:$0xff] %vm121_vm3, %v120_v17 }
 0x17c   :  { %v129_v18 = vpop.xlane.xlu1 %128 }
 0x17d   :  { %131 = vst.msk [vmem:[%s252_s4 + $0x8] sm:$0xff] %vm121_vm3, %v129_v18 }

// kernel: learning_conv.43
= control target key start
LH: loop header
LB: loop body
LE: loop exit
PB: predicated region body
PF: predicated region fallthrough
CT: control target
= control target key end

     0   :  { %v78_v0 = vmov 0   ;;  %s117_s2 = inlined_call_operand.vmem [shape: f32[16,1], index: 2, kind: input, shape index: {}]   ;;  %s118_s1 = inlined_call_operand.vmem [shape: f32[16,1], index: 1, kind: input, shape index: {}]   ;;  %s119_s0 = inlined_call_operand.vmem [shape: bf16[16,128], index: 0, kind: input, shape index: {}]   ;;  %s120_s3 = inlined_call_operand.vmem [shape: bf16[16,128], index: 3, kind: output, shape index: {}]  }
   0x1   :  { %77 = vset.pattern.permute.xlu1 %v78_v0  ;;  %76 = vset.pattern.permute.xlu0 %v78_v0  ;;  %v32_v1 = vld [vmem:[%s117_s2] sm:$0xff]  ;;  %v33_v3 = vld [vmem:[%s117_s2 + $0x8] sm:$0xff] }
   0x2   :  { %v18_v2 = vld [vmem:[%s118_s1] sm:$0xff]  ;;  %36 = vperm.xlu1 %77, %v32_v1   ;;  %v19_v4 = vld [vmem:[%s118_s1 + $0x8] sm:$0xff] }
   0x3   :  { %22 = vperm.xlu0 %76, %v18_v2   ;;  %v67_v5 = vld [vmem:[%s119_s0] sm:$0xff]  }
   0x4   :  { %v68_v6 = vunpack.c.l.bf16 %v67_v5  ;;  %v69_v10 = vunpack.c.h.bf16 %v67_v5 }
   0x6   :  { %41 = vperm.xlu1 %77, %v33_v3  }
   0x7   :  { %27 = vperm.xlu0 %76, %v19_v4  }
  0x81   :  { %v37_v7 = vpop.permute.xlu1 %36 }
  0x82   :  { %v23_v8 = vpop.permute.xlu0 %22 }
  0x83   :  { %v30_v9 = vmul.f32 %v68_v6, %v23_v8 }
  0x85   :  { %v44_v12 = vadd.f32 %v37_v7, %v30_v9  ;;  %v42_v14 = vpop.permute.xlu1 %41 }
  0x86   :  { %v28_v11 = vpop.permute.xlu0 %27 }
  0x87   :  { %v31_v13 = vmul.f32 %v69_v10, %v28_v11  ;;  %v46_v16 = vmax.f32 %v44_v12, 0.0 }
  0x89   :  { %v45_v15 = vadd.f32 %v42_v14, %v31_v13 }
  0x8b   :  { %v47_v17 = vmax.f32 %v45_v15, 0.0 }
  0x8d   :  { %v73_v18 = vpack.c.bf16 %v47_v17, %v46_v16 }
  0x8f   :  { %74 = vst [vmem:[%s120_s3] sm:$0xff] %v73_v18  }

// kernel: learning_conv.45
= control target key start
LH: loop header
LB: loop body
LE: loop exit
PB: predicated region body
PF: predicated region fallthrough
CT: control target
= control target key end

     0   :  { %v137_v0 = vmov 0   ;;  %s194_s1 = inlined_call_operand.vmem [shape: f32[32,1], index: 1, kind: input, shape index: {}]   ;;  %s195_s2 = inlined_call_operand.vmem [shape: f32[32,1], index: 2, kind: input, shape index: {}]   ;;  %s196_s0 = inlined_call_operand.vmem [shape: bf16[32,128], index: 0, kind: input, shape index: {}]   ;;  %s197_s3 = inlined_call_operand.vmem [shape: bf16[32,128], index: 3, kind: output, shape index: {}]  }
   0x1   :  { %136 = vset.pattern.permute.xlu1 %v137_v0  ;;  %135 = vset.pattern.permute.xlu0 %v137_v0  ;;  %v24_v1 = vld [vmem:[%s194_s1 + $0x10] sm:$0xff]  ;;  %v22_v2 = vld [vmem:[%s194_s1] sm:$0xff]  ;;  %v25_v3 = vld [vmem:[%s194_s1 + $0x18] sm:$0xff] }
   0x2   :  { %38 = vperm.xlu1 %136, %v24_v1   ;;  %28 = vperm.xlu0 %135, %v22_v2   ;;  %v23_v4 = vld [vmem:[%s194_s1 + $0x8] sm:$0xff]  ;;  %v50_v6 = vld [vmem:[%s195_s2] sm:$0xff]  ;;  %v53_v7 = vld [vmem:[%s195_s2 + $0x18] sm:$0xff] }
   0x3   :  { %v51_v5 = vld [vmem:[%s195_s2 + $0x8] sm:$0xff]  ;;  %v52_v8 = vld [vmem:[%s195_s2 + $0x10] sm:$0xff]  ;;  %v115_v11 = vld [vmem:[%s196_s0] sm:$0xff]  }
   0x4   :  { %v116_v12 = vunpack.c.l.bf16 %v115_v11  ;;  %v117_v13 = vunpack.c.h.bf16 %v115_v11  ;;  %v132_v14 = vld [vmem:[%s196_s0 + $0x8] sm:$0xff]  }
   0x5   :  { %v120_v17 = vunpack.c.l.bf16 %v132_v14  ;;  %v121_v19 = vunpack.c.h.bf16 %v132_v14 }
   0x6   :  { %43 = vperm.xlu1 %136, %v25_v3   ;;  %33 = vperm.xlu0 %135, %v23_v4  }
   0xa   :  { %61 = vperm.xlu1 %136, %v51_v5   ;;  %56 = vperm.xlu0 %135, %v50_v6  }
   0xe   :  { %71 = vperm.xlu1 %136, %v53_v7   ;;  %66 = vperm.xlu0 %135, %v52_v8  }
  0x81   :  { %v39_v9 = vpop.permute.xlu1 %38  ;;  %v29_v10 = vpop.permute.xlu0 %28 }
  0x82   :  { %v46_v18 = vmul.f32 %v116_v12, %v29_v10  ;;  %v48_v25 = vmul.f32 %v120_v17, %v39_v9 }
  0x85   :  { %v44_v15 = vpop.permute.xlu1 %43  ;;  %v34_v16 = vpop.permute.xlu0 %33 }
  0x86   :  { %v47_v20 = vmul.f32 %v117_v13, %v34_v16  ;;  %v49_v26 = vmul.f32 %v121_v19, %v44_v15 }
  0x89   :  { %v62_v21 = vpop.permute.xlu1 %61  ;;  %v57_v22 = vpop.permute.xlu0 %56 }
  0x8a   :  { %v75_v23 = vadd.f32 %v62_v21, %v47_v20  ;;  %v74_v24 = vadd.f32 %v57_v22, %v46_v18 }
  0x8c   :  { %v79_v27 = vmax.f32 %v75_v23, 0.0  ;;  %v78_v28 = vmax.f32 %v74_v24, 0.0 }
  0x8d   :  { %v72_v29 = vpop.permute.xlu1 %71  ;;  %v67_v30 = vpop.permute.xlu0 %66 }
  0x8e   :  { %v125_v31 = vpack.c.bf16 %v79_v27, %v78_v28  ;;  %v77_v32 = vadd.f32 %v72_v29, %v49_v26  ;;  %v76_v33 = vadd.f32 %v67_v30, %v48_v25 }
  0x90   :  { %126 = vst [vmem:[%s197_s3] sm:$0xff] %v125_v31   ;;  %v81_v34 = vmax.f32 %v77_v32, 0.0  ;;  %v80_v35 = vmax.f32 %v76_v33, 0.0 }
  0x92   :  { %v130_v36 = vpack.c.bf16 %v81_v34, %v80_v35 }
  0x94   :  { %133 = vst [vmem:[%s197_s3 + $0x8] sm:$0xff] %v130_v36  }

// kernel: learning_conv.44
= control target key start
LH: loop header
LB: loop body
LE: loop exit
PB: predicated region body
PF: predicated region fallthrough
CT: control target
= control target key end

     0   :  { %v294_v0 = vmov 0   ;;  %vm109_vm0 = vcmask 130048   ;;  %vm193_vm1 = vcmask 7168   ;;  %s397_s1 = inlined_call_operand.vmem [shape: bf16[144,128], index: 1, kind: input, shape index: {}]   ;;  %s398_s0 = inlined_call_operand.vmem [shape: bf16[32,144], index: 0, kind: input, shape index: {}]   ;;  %s399_s2 = inlined_call_operand.vmem [shape: bf16[32,128], index: 2, kind: output, shape index: {0}]   ;;  %s400_s3 = inlined_call_operand.vmem [shape: f32[1,32,1], index: 3, kind: output, shape index: {1}]   ;;  %s401_s4 = inlined_call_operand.vmem [shape: f32[1,32,1], index: 4, kind: output, shape index: {2}]  }
   0x1   :  { %116 = vmatprep.subr.bf16.mxu0 %v294_v0  ;;  %260 = vmatprep.subr.bf16.mxu1 %v294_v0  ;;  %v279_v1 = vld [vmem:[%s397_s1] sm:$0xff]   ;;  %v280_v2 = vld [vmem:[%s397_s1 + $0x8] sm:$0xff]   ;;  %v281_v3 = vld [vmem:[%s397_s1 + $0x10] sm:$0xff]  }
   0x2   :  { %117 = vmatpush1.bf16.msra.mxu0 %v279_v1  ;;  %269 = vmatpush1.bf16.msra.mxu1 %v279_v1  ;;  %v282_v4 = vld [vmem:[%s397_s1 + $0x18] sm:$0xff]   ;;  %v290_v5 = vld [vmem:[%s398_s0 + $0x4] ss:$8 sps:$4 sm:$0xff]   ;;  %v285_v9 = vld [vmem:[%s397_s1 + $0x30] sm:$0xff]  }
   0x3   :  { %118 = vmatprep.subr.bf16.mxu0 %v294_v0  ;;  %261 = vmatprep.subr.bf16.mxu1 %v294_v0  ;;  %v293_v6 = vld [vmem:[%s398_s0 + $0x14] ss:$8 sps:$4 sm:$0xff]   ;;  %v283_v7 = vld [vmem:[%s397_s1 + $0x20] sm:$0xff]   ;;  %v284_v8 = vld [vmem:[%s397_s1 + $0x28] sm:$0xff]  }
   0x4   :  { %239 = vmatprep.mubr.msk.bf16.mxu0 %vm109_vm0, %v290_v5  ;;  %240 = vmatprep.mubr.msk.bf16.mxu1 %vm109_vm0, %v293_v6  ;;  %v286_v10 = vld [vmem:[%s397_s1 + $0x38] sm:$0xff]   ;;  %v287_v11 = vld [vmem:[%s397_s1 + $0x40] sm:$0xff]  }
   0x5   :  { %v288_v12 = vld [vmem:[%s398_s0] ss:$8 sps:$4 sm:$0xff]   ;;  %v291_v13 = vld [vmem:[%s398_s0 + $0x10] ss:$8 sps:$4 sm:$0xff]  }
   0x6   :  { %119 = vmatpush1.bf16.msra.mxu0 %v280_v2  ;;  %270 = vmatpush1.bf16.msra.mxu1 %v280_v2 }
   0x7   :  { %120 = vmatprep.subr.bf16.mxu0 %v294_v0  ;;  %262 = vmatprep.subr.bf16.mxu1 %v294_v0 }
   0xa   :  { %121 = vmatpush1.bf16.msra.mxu0 %v281_v3  ;;  %271 = vmatpush1.bf16.msra.mxu1 %v281_v3 }
   0xb   :  { %122 = vmatprep.subr.bf16.mxu0 %v294_v0  ;;  %263 = vmatprep.subr.bf16.mxu1 %v294_v0 }
   0xe   :  { %123 = vmatpush1.bf16.msra.mxu0 %v282_v4  ;;  %272 = vmatpush1.bf16.msra.mxu1 %v282_v4 }
   0xf   :  { %124 = vmatprep.subr.bf16.mxu0 %v294_v0  ;;  %264 = vmatprep.subr.bf16.mxu1 %v294_v0 }
  0x12   :  { %125 = vmatpush1.bf16.msra.mxu0 %v283_v7  ;;  %273 = vmatpush1.bf16.msra.mxu1 %v283_v7 }
  0x13   :  { %126 = vmatprep.subr.bf16.mxu0 %v294_v0  ;;  %265 = vmatprep.subr.bf16.mxu1 %v294_v0 }
  0x16   :  { %127 = vmatpush1.bf16.msra.mxu0 %v284_v8  ;;  %274 = vmatpush1.bf16.msra.mxu1 %v284_v8 }
  0x17   :  { %128 = vmatprep.subr.bf16.mxu0 %v294_v0  ;;  %266 = vmatprep.subr.bf16.mxu1 %v294_v0 }
  0x1a   :  { %129 = vmatpush1.bf16.msra.mxu0 %v285_v9  ;;  %275 = vmatpush1.bf16.msra.mxu1 %v285_v9 }
  0x1b   :  { %130 = vmatprep.subr.bf16.mxu0 %v294_v0  ;;  %267 = vmatprep.subr.bf16.mxu1 %v294_v0 }
  0x1e   :  { %131 = vmatpush1.bf16.msra.mxu0 %v286_v10  ;;  %276 = vmatpush1.bf16.msra.mxu1 %v286_v10 }
  0x1f   :  { %132 = vmatprep.subr.bf16.mxu0 %v294_v0  ;;  %268 = vmatprep.subr.bf16.mxu1 %v294_v0 }
  0x22   :  { %133 = vmatpush1.bf16.msra.mxu0 %v287_v11  ;;  %277 = vmatpush1.bf16.msra.mxu1 %v287_v11 }
  0x25   :  { %149 = vmatmul.mubr.bf16.vlgmr.msra.gmra.mrb[0].mxu0 %v288_v12  ;;  %157 = vmatmul.mubr.bf16.vlgmr.msra.gmra.mrb[0].mxu1 %v291_v13 }
  0xf8   :  { %v150_v14 = vpop.f32.mrb[0].mxu0  ;;  %v158_v15 = vpop.f32.mrb[0].mxu1 }
  0xf9   :  { %189 = vadd.xlane.f32.xlu1 %v158_v15  ;;  %v160_v16 = vpop.f32.mrb[1].mxu1  ;;  %185 = vadd.xlane.f32.xlu0 %v150_v14  ;;  %v152_v17 = vpop.f32.mrb[1].mxu0  ;;  %v198_v24 = vmul.f32 %v150_v14, %v150_v14  ;;  %v200_v26 = vmul.f32 %v158_v15, %v158_v15 }
  0xfa   :  { %v153_v18 = vpop.f32.mrb[2].mxu0  ;;  %v161_v19 = vpop.f32.mrb[2].mxu1 }
  0xfb   :  { %v252_v20 = vpack.c.bf16 %v153_v18, %v150_v14  ;;  %v257_v21 = vpack.c.bf16 %v161_v19, %v158_v15  ;;  %v155_v22 = vpop.f32.mrb[3].mxu0  ;;  %v163_v23 = vpop.f32.mrb[3].mxu1  ;;  %v199_v25 = vmul.f32 %v153_v18, %v153_v18  ;;  %v201_v27 = vmul.f32 %v161_v19, %v161_v19 }
  0xfd   :  { %253 = vst [vmem:[%s399_s2] sm:$0xff] %v252_v20   ;;  %259 = vst [vmem:[%s399_s2 + $0x8] sm:$0xff] %v257_v21   ;;  %191 = vadd.xlane.f32.xlu1 %v161_v19  ;;  %187 = vadd.xlane.f32.xlu0 %v153_v18 }
 0x101   :  { %202 = vadd.xlane.f32.xlu0 %v198_v24  ;;  %204 = vadd.xlane.f32.xlu1 %v199_v25 }
 0x105   :  { %206 = vadd.xlane.f32.xlu0 %v200_v26  ;;  %208 = vadd.xlane.f32.xlu1 %v201_v27 }
 0x186   :  { %v190_v28 = vpop.xlane.xlu1 %189  ;;  %v186_v29 = vpop.xlane.xlu0 %185 }
 0x187   :  { %196 = vst.msk [vmem:[%s400_s3 + $0x10] sm:$0xff] %vm193_vm1, %v190_v28  ;;  %194 = vst.msk [vmem:[%s400_s3] sm:$0xff] %vm193_vm1, %v186_v29 }
 0x18a   :  { %v192_v30 = vpop.xlane.xlu1 %191  ;;  %v188_v31 = vpop.xlane.xlu0 %187 }
 0x18b   :  { %197 = vst.msk [vmem:[%s400_s3 + $0x18] sm:$0xff] %vm193_vm1, %v192_v30  ;;  %195 = vst.msk [vmem:[%s400_s3 + $0x8] sm:$0xff] %vm193_vm1, %v188_v31 }
 0x18e   :  { %v203_v32 = vpop.xlane.xlu0 %202  ;;  %v205_v33 = vpop.xlane.xlu1 %204 }
 0x18f   :  { %210 = vst.msk [vmem:[%s401_s4] sm:$0xff] %vm193_vm1, %v203_v32  ;;  %211 = vst.msk [vmem:[%s401_s4 + $0x8] sm:$0xff] %vm193_vm1, %v205_v33 }
 0x192   :  { %v207_v34 = vpop.xlane.xlu0 %206  ;;  %v209_v35 = vpop.xlane.xlu1 %208 }
 0x193   :  { %212 = vst.msk [vmem:[%s401_s4 + $0x10] sm:$0xff] %vm193_vm1, %v207_v34  ;;  %213 = vst.msk [vmem:[%s401_s4 + $0x18] sm:$0xff] %vm193_vm1, %v209_v35 }

// kernel: learning_conv.46
= control target key start
LH: loop header
LB: loop body
LE: loop exit
PB: predicated region body
PF: predicated region fallthrough
CT: control target
= control target key end

     0   :  { %vm235_vm0 = vcmask 261120   ;;  %vm434_vm1 = vcmask 7168   ;;  %s863_s1 = inlined_call_operand.vmem [shape: bf16[288,128], index: 1, kind: input, shape index: {}]   ;;  %s864_s0 = inlined_call_operand.vmem [shape: bf16[64,288], index: 0, kind: input, shape index: {}]   ;;  %s865_s2 = inlined_call_operand.vmem [shape: bf16[64,128], index: 2, kind: output, shape index: {0}]   ;;  %s866_s3 = inlined_call_operand.vmem [shape: f32[1,64,1], index: 3, kind: output, shape index: {1}]   ;;  %s867_s4 = inlined_call_operand.vmem [shape: f32[1,64,1], index: 4, kind: output, shape index: {2}]  }
   0x1   :  { %v634_v0 = vld [vmem:[%s863_s1 + $0x40] sm:$0xff]   ;;  %v636_v2 = vld [vmem:[%s863_s1 + $0x48] sm:$0xff]   ;;  %v638_v4 = vld [vmem:[%s863_s1 + $0x50] sm:$0xff]  }
   0x2   :  { %v635_v1 = vld [vmem:[%s863_s1] sm:$0xff]   ;;  %560 = vmatprep.subr.bf16.mxu0 %v634_v0  ;;  %618 = vmatprep.subr.bf16.mxu1 %v634_v0  ;;  %v637_v3 = vld [vmem:[%s863_s1 + $0x8] sm:$0xff]   ;;  %v639_v5 = vld [vmem:[%s863_s1 + $0x10] sm:$0xff]  }
   0x3   :  { %561 = vmatpush3.bf16.msra.mxu0 %v635_v1  ;;  %626 = vmatpush3.bf16.msra.mxu1 %v635_v1  ;;  %v640_v6 = vld [vmem:[%s863_s1 + $0x58] sm:$0xff]   ;;  %v642_v8 = vld [vmem:[%s863_s1 + $0x60] sm:$0xff]   ;;  %v644_v10 = vld [vmem:[%s863_s1 + $0x68] sm:$0xff]  }
   0x4   :  { %562 = vmatprep.subr.bf16.mxu0 %v636_v2  ;;  %619 = vmatprep.subr.bf16.mxu1 %v636_v2  ;;  %v641_v7 = vld [vmem:[%s863_s1 + $0x18] sm:$0xff]   ;;  %v643_v9 = vld [vmem:[%s863_s1 + $0x20] sm:$0xff]   ;;  %v645_v13 = vld [vmem:[%s863_s1 + $0x28] sm:$0xff]  }
   0x5   :  { %v652_v11 = vld [vmem:[%s864_s0 + $0x4] ss:$12 sps:$4 sm:$0xff]   ;;  %v655_v12 = vld [vmem:[%s864_s0 + $0x4c] ss:$12 sps:$4 sm:$0xff]   ;;  %v653_v20 = vld [vmem:[%s864_s0 + $0x48] ss:$12 sps:$4 sm:$0xff]  }
   0x6   :  { %v646_v14 = vld [vmem:[%s863_s1 + $0x70] sm:$0xff]   ;;  %280 = vmatprep.mubr.bf16.mxu0 %v652_v11  ;;  %304 = vmatprep.mubr.bf16.mxu1 %v655_v12  ;;  %v648_v16 = vld [vmem:[%s863_s1 + $0x78] sm:$0xff]   ;;  %v656_v18 = vld [vmem:[%s863_s1 + $0x80] sm:$0xff]  }
   0x7   :  { %563 = vmatpush3.bf16.msra.mxu0 %v637_v3  ;;  %627 = vmatpush3.bf16.msra.mxu1 %v637_v3  ;;  %v647_v15 = vld [vmem:[%s863_s1 + $0x30] sm:$0xff]   ;;  %v649_v17 = vld [vmem:[%s863_s1 + $0x38] sm:$0xff]   ;;  %v650_v19 = vld [vmem:[%s864_s0] ss:$12 sps:$4 sm:$0xff]  }
   0x8   :  { %564 = vmatprep.subr.bf16.mxu0 %v638_v4  ;;  %620 = vmatprep.subr.bf16.mxu1 %v638_v4  ;;  %v658_v21 = vld [vmem:[%s864_s0 + $0x1c] ss:$12 sps:$4 sm:$0xff]   ;;  %v661_v24 = vld [vmem:[%s864_s0 + $0x18] ss:$12 sps:$4 sm:$0xff]   ;;  %v662_v25 = vld [vmem:[%s864_s0 + $0x20] ss:$12 sps:$4 sm:$0xff]  }
   0x9   :  { %v657_v22 = vld [vmem:[%s863_s1 + $0x88] sm:$0xff]   ;;  %v663_v26 = vld [vmem:[%s864_s0 + $0x38] ss:$12 sps:$4 sm:$0xff]   ;;  %v665_v27 = vld [vmem:[%s864_s0 + $0x34] ss:$12 sps:$4 sm:$0xff]  }
   0xa   :  { %v660_v23 = vld [vmem:[%s864_s0 + $0x8] ss:$12 sps:$4 sm:$0xff]   ;;  %v664_v28 = vld [vmem:[%s864_s0 + $0x50] ss:$12 sps:$4 sm:$0xff]  }
   0xb   :  { %565 = vmatpush3.bf16.msra.mxu0 %v639_v5  ;;  %628 = vmatpush3.bf16.msra.mxu1 %v639_v5  ;;  %v667_v29 = vld [vmem:[%s864_s0 + $0x30] ss:$12 sps:$4 sm:$0xff]  }
   0xc   :  { %566 = vmatprep.subr.bf16.mxu0 %v640_v6  ;;  %621 = vmatprep.subr.bf16.mxu1 %v640_v6 }
   0xf   :  { %567 = vmatpush3.bf16.msra.mxu0 %v641_v7  ;;  %629 = vmatpush3.bf16.msra.mxu1 %v641_v7 }
  0x10   :  { %568 = vmatprep.subr.bf16.mxu0 %v642_v8  ;;  %622 = vmatprep.subr.bf16.mxu1 %v642_v8 }
  0x13   :  { %569 = vmatpush3.bf16.msra.mxu0 %v643_v9  ;;  %630 = vmatpush3.bf16.msra.mxu1 %v643_v9 }
  0x14   :  { %570 = vmatprep.subr.bf16.mxu0 %v644_v10  ;;  %623 = vmatprep.subr.bf16.mxu1 %v644_v10 }
  0x17   :  { %571 = vmatpush3.bf16.msra.mxu0 %v645_v13  ;;  %631 = vmatpush3.bf16.msra.mxu1 %v645_v13 }
  0x18   :  { %572 = vmatprep.subr.bf16.mxu0 %v646_v14  ;;  %624 = vmatprep.subr.bf16.mxu1 %v646_v14 }
  0x1b   :  { %573 = vmatpush3.bf16.msra.mxu0 %v647_v15  ;;  %632 = vmatpush3.bf16.msra.mxu1 %v647_v15 }
  0x1c   :  { %574 = vmatprep.subr.bf16.mxu0 %v648_v16  ;;  %625 = vmatprep.subr.bf16.mxu1 %v648_v16 }
  0x1f   :  { %575 = vmatpush3.bf16.msra.mxu0 %v649_v17  ;;  %633 = vmatpush3.bf16.msra.mxu1 %v649_v17 }
  0x20   :  { %606 = vmatprep.subr.bf16.mxu1 %v656_v18 }
  0x22   :  { %281 = vmatmul.mubr.bf16.vlgmr.msra.gmra.mrb[0].mxu0 %v650_v19  ;;  %305 = vmatmul.mubr.bf16.vlgmr.msra.gmra.mrb[0].mxu1 %v653_v20 }
  0x23   :  { %607 = vmatpush3.bf16.msra.mxu1 %v656_v18  ;;  %288 = vmatprep.mubr.bf16.mxu0 %v658_v21 }
  0x24   :  { %608 = vmatprep.subr.bf16.mxu1 %v657_v22  ;;  %610 = vmatprep.mubr.msk.bf16.mxu1 %vm235_vm0, %v660_v23 }
  0x27   :  { %609 = vmatpush3.bf16.msra.mxu1 %v657_v22 }
  0x2a   :  { %289 = vmatmul.mubr.bf16.gmra.mrb[4].mxu0 %v661_v24  ;;  %611 = vmatmul.mubr.msk.bf16.vlgmr.msra.gmra.mrb[4].mxu1 %vm235_vm0, %v662_v25 }
  0x2b   :  { %614 = vmatprep.mubr.msk.bf16.mxu1 %vm235_vm0, %v663_v26  ;;  %296 = vmatprep.mubr.bf16.mxu0 %v665_v27 }
  0x32   :  { %615 = vmatmul.mubr.msk.bf16.gmra.mrb[8].mxu1 %vm235_vm0, %v664_v28  ;;  %297 = vmatmul.mubr.bf16.gmra.mrb[8].mxu0 %v667_v29 }
  0xf5   :  { %v576_v30 = vpop.f32.mrb[0].mxu0  ;;  %v594_v31 = vpop.f32.mrb[0].mxu1 }
  0xf6   :  { %v577_v32 = vpop.f32.mrb[1].mxu0  ;;  %v595_v33 = vpop.f32.mrb[1].mxu1 }
  0xf7   :  { %v578_v34 = vadd.f32 %v577_v32, %v576_v30  ;;  %v596_v35 = vadd.f32 %v595_v33, %v594_v31  ;;  %v579_v36 = vpop.f32.mrb[2].mxu0  ;;  %v597_v37 = vpop.f32.mrb[2].mxu1 }
  0xf8   :  { %v580_v38 = vpop.f32.mrb[3].mxu0  ;;  %v598_v39 = vpop.f32.mrb[3].mxu1 }
  0xf9   :  { %v581_v40 = vadd.f32 %v580_v38, %v579_v36  ;;  %v599_v41 = vadd.f32 %v598_v39, %v597_v37 }
  0xfd   :  { %v582_v42 = vpop.f32.mrb[4].mxu0  ;;  %v612_v43 = vpop.f32.mrb[4].mxu1 }
  0xfe   :  { %v583_v44 = vpop.f32.mrb[5].mxu0  ;;  %v347_v45 = vpop.f32.mrb[5].mxu1 }
  0xff   :  { %v584_v46 = vadd.f32 %v583_v44, %v582_v42  ;;  %v348_v47 = vadd.f32 %v578_v34, %v347_v45  ;;  %v585_v48 = vpop.f32.mrb[6].mxu0  ;;  %v613_v49 = vpop.f32.mrb[6].mxu1 }
 0x100   :  { %v586_v50 = vpop.f32.mrb[7].mxu0  ;;  %v350_v51 = vpop.f32.mrb[7].mxu1 }
 0x101   :  { %v356_v52 = vadd.f32 %v612_v43, %v584_v46  ;;  %v587_v53 = vadd.f32 %v586_v50, %v585_v48  ;;  %v351_v54 = vadd.f32 %v581_v40, %v350_v51  ;;  %418 = vadd.xlane.f32.xlu0 %v348_v47  ;;  %v443_v0 = vmul.f32 %v348_v47, %v348_v47 }
 0x103   :  { %v359_v55 = vadd.f32 %v613_v49, %v587_v53  ;;  %v540_v56 = vpack.c.bf16 %v351_v54, %v348_v47  ;;  %422 = vadd.xlane.f32.xlu1 %v356_v52  ;;  %v444_v7 = vmul.f32 %v351_v54, %v351_v54  ;;  %v445_v10 = vmul.f32 %v356_v52, %v356_v52 }
 0x105   :  { %v545_v57 = vpack.c.bf16 %v359_v55, %v356_v52  ;;  %541 = vst [vmem:[%s865_s2] sm:$0xff] %v540_v56   ;;  %v616_v58 = vpop.f32.mrb[8].mxu1  ;;  %420 = vadd.xlane.f32.xlu0 %v351_v54  ;;  %v588_v59 = vpop.f32.mrb[8].mxu0  ;;  %v446_v13 = vmul.f32 %v359_v55, %v359_v55 }
 0x106   :  { %v372_v60 = vadd.f32 %v616_v58, %v596_v35  ;;  %v363_v61 = vpop.f32.mrb[9].mxu1  ;;  %v589_v62 = vpop.f32.mrb[9].mxu0 }
 0x107   :  { %557 = vst [vmem:[%s865_s2 + $0x8] sm:$0xff] %v545_v57   ;;  %v617_v63 = vpop.f32.mrb[10].mxu1  ;;  %424 = vadd.xlane.f32.xlu1 %v359_v55  ;;  %v590_v1 = vadd.f32 %v589_v62, %v588_v59  ;;  %v591_v2 = vpop.f32.mrb[10].mxu0 }
 0x108   :  { %v375_v3 = vadd.f32 %v617_v63, %v599_v41  ;;  %v592_v4 = vpop.f32.mrb[11].mxu0  ;;  %v366_v5 = vpop.f32.mrb[11].mxu1  ;;  %v449_v16 = vmul.f32 %v372_v60, %v372_v60 }
 0x109   :  { %451 = vadd.xlane.f32.xlu0 %v443_v0  ;;  %v364_v6 = vadd.f32 %v590_v1, %v363_v61  ;;  %v593_v8 = vadd.f32 %v592_v4, %v591_v2 }
 0x10a   :  { %v555_v9 = vpack.c.bf16 %v375_v3, %v372_v60  ;;  %v450_v17 = vmul.f32 %v375_v3, %v375_v3 }
 0x10b   :  { %453 = vadd.xlane.f32.xlu1 %v444_v7  ;;  %v367_v11 = vadd.f32 %v593_v8, %v366_v5  ;;  %v447_v14 = vmul.f32 %v364_v6, %v364_v6 }
 0x10c   :  { %559 = vst [vmem:[%s865_s2 + $0x18] sm:$0xff] %v555_v9  }
 0x10d   :  { %455 = vadd.xlane.f32.xlu0 %v445_v10  ;;  %v550_v12 = vpack.c.bf16 %v367_v11, %v364_v6  ;;  %v448_v15 = vmul.f32 %v367_v11, %v367_v11 }
 0x10f   :  { %558 = vst [vmem:[%s865_s2 + $0x10] sm:$0xff] %v550_v12   ;;  %457 = vadd.xlane.f32.xlu1 %v446_v13 }
 0x111   :  { %430 = vadd.xlane.f32.xlu0 %v372_v60 }
 0x113   :  { %432 = vadd.xlane.f32.xlu1 %v375_v3 }
 0x115   :  { %426 = vadd.xlane.f32.xlu0 %v364_v6 }
 0x117   :  { %428 = vadd.xlane.f32.xlu1 %v367_v11 }
 0x119   :  { %459 = vadd.xlane.f32.xlu0 %v447_v14 }
 0x11b   :  { %461 = vadd.xlane.f32.xlu1 %v448_v15 }
 0x11d   :  { %463 = vadd.xlane.f32.xlu0 %v449_v16 }
 0x11f   :  { %465 = vadd.xlane.f32.xlu1 %v450_v17 }
 0x18e   :  { %v419_v18 = vpop.xlane.xlu0 %418 }
 0x18f   :  { %435 = vst.msk [vmem:[%s866_s3] sm:$0xff] %vm434_vm1, %v419_v18 }
 0x190   :  { %v423_v19 = vpop.xlane.xlu1 %422 }
 0x191   :  { %437 = vst.msk [vmem:[%s866_s3 + $0x10] sm:$0xff] %vm434_vm1, %v423_v19 }
 0x192   :  { %v421_v20 = vpop.xlane.xlu0 %420 }
 0x193   :  { %436 = vst.msk [vmem:[%s866_s3 + $0x8] sm:$0xff] %vm434_vm1, %v421_v20 }
 0x194   :  { %v425_v21 = vpop.xlane.xlu1 %424 }
 0x195   :  { %438 = vst.msk [vmem:[%s866_s3 + $0x18] sm:$0xff] %vm434_vm1, %v425_v21 }
 0x196   :  { %v452_v22 = vpop.xlane.xlu0 %451 }
 0x197   :  { %467 = vst.msk [vmem:[%s867_s4] sm:$0xff] %vm434_vm1, %v452_v22 }
 0x198   :  { %v454_v23 = vpop.xlane.xlu1 %453 }
 0x199   :  { %468 = vst.msk [vmem:[%s867_s4 + $0x8] sm:$0xff] %vm434_vm1, %v454_v23 }
 0x19a   :  { %v456_v24 = vpop.xlane.xlu0 %455 }
 0x19b   :  { %469 = vst.msk [vmem:[%s867_s4 + $0x10] sm:$0xff] %vm434_vm1, %v456_v24 }
 0x19c   :  { %v458_v25 = vpop.xlane.xlu1 %457 }
 0x19d   :  { %470 = vst.msk [vmem:[%s867_s4 + $0x18] sm:$0xff] %vm434_vm1, %v458_v25 }
 0x19e   :  { %v431_v26 = vpop.xlane.xlu0 %430 }
 0x19f   :  { %441 = vst.msk [vmem:[%s866_s3 + $0x30] sm:$0xff] %vm434_vm1, %v431_v26 }
 0x1a0   :  { %v433_v27 = vpop.xlane.xlu1 %432 }
 0x1a1   :  { %442 = vst.msk [vmem:[%s866_s3 + $0x38] sm:$0xff] %vm434_vm1, %v433_v27 }
 0x1a2   :  { %v427_v28 = vpop.xlane.xlu0 %426 }
 0x1a3   :  { %439 = vst.msk [vmem:[%s866_s3 + $0x20] sm:$0xff] %vm434_vm1, %v427_v28 }
 0x1a4   :  { %v429_v29 = vpop.xlane.xlu1 %428 }
 0x1a5   :  { %440 = vst.msk [vmem:[%s866_s3 + $0x28] sm:$0xff] %vm434_vm1, %v429_v29 }
 0x1a6   :  { %v460_v30 = vpop.xlane.xlu0 %459 }
 0x1a7   :  { %471 = vst.msk [vmem:[%s867_s4 + $0x20] sm:$0xff] %vm434_vm1, %v460_v30 }
 0x1a8   :  { %v462_v31 = vpop.xlane.xlu1 %461 }
 0x1a9   :  { %472 = vst.msk [vmem:[%s867_s4 + $0x28] sm:$0xff] %vm434_vm1, %v462_v31 }
 0x1aa   :  { %v464_v32 = vpop.xlane.xlu0 %463 }
 0x1ab   :  { %473 = vst.msk [vmem:[%s867_s4 + $0x30] sm:$0xff] %vm434_vm1, %v464_v32 }
 0x1ac   :  { %v466_v33 = vpop.xlane.xlu1 %465 }
 0x1ad   :  { %474 = vst.msk [vmem:[%s867_s4 + $0x38] sm:$0xff] %vm434_vm1, %v466_v33 }

// kernel: learning_conv.47
= control target key start
LH: loop header
LB: loop body
LE: loop exit
PB: predicated region body
PF: predicated region fallthrough
CT: control target
= control target key end

     0   :  { %v255_v0 = vmov 0   ;;  %s348_s1 = inlined_call_operand.vmem [shape: f32[64,1], index: 1, kind: input, shape index: {}]   ;;  %s349_s2 = inlined_call_operand.vmem [shape: f32[64,1], index: 2, kind: input, shape index: {}]   ;;  %s350_s0 = inlined_call_operand.vmem [shape: bf16[64,128], index: 0, kind: input, shape index: {}]   ;;  %s351_s3 = inlined_call_operand.vmem [shape: bf16[64,128], index: 3, kind: output, shape index: {}]  }
   0x1   :  { %254 = vset.pattern.permute.xlu1 %v255_v0  ;;  %253 = vset.pattern.permute.xlu0 %v255_v0  ;;  %v32_v1 = vld [vmem:[%s348_s1 + $0x10] sm:$0xff]  ;;  %v30_v2 = vld [vmem:[%s348_s1] sm:$0xff]  ;;  %v33_v3 = vld [vmem:[%s348_s1 + $0x18] sm:$0xff] }
   0x2   :  { %50 = vperm.xlu1 %254, %v32_v1   ;;  %40 = vperm.xlu0 %253, %v30_v2   ;;  %v31_v4 = vld [vmem:[%s348_s1 + $0x8] sm:$0xff]  ;;  %v34_v6 = vld [vmem:[%s348_s1 + $0x20] sm:$0xff]  ;;  %v37_v7 = vld [vmem:[%s348_s1 + $0x38] sm:$0xff] }
   0x3   :  { %v35_v5 = vld [vmem:[%s348_s1 + $0x28] sm:$0xff]  ;;  %v36_v8 = vld [vmem:[%s348_s1 + $0x30] sm:$0xff]  ;;  %v86_v10 = vld [vmem:[%s349_s2] sm:$0xff] }
   0x4   :  { %v87_v9 = vld [vmem:[%s349_s2 + $0x8] sm:$0xff]  ;;  %v89_v11 = vld [vmem:[%s349_s2 + $0x18] sm:$0xff]  ;;  %v88_v12 = vld [vmem:[%s349_s2 + $0x10] sm:$0xff] }
   0x5   :  { %v91_v13 = vld [vmem:[%s349_s2 + $0x28] sm:$0xff]  ;;  %v90_v14 = vld [vmem:[%s349_s2 + $0x20] sm:$0xff]  ;;  %v93_v15 = vld [vmem:[%s349_s2 + $0x38] sm:$0xff] }
   0x6   :  { %55 = vperm.xlu1 %254, %v33_v3   ;;  %45 = vperm.xlu0 %253, %v31_v4   ;;  %v92_v16 = vld [vmem:[%s349_s2 + $0x30] sm:$0xff]  ;;  %v211_v21 = vld [vmem:[%s350_s0] sm:$0xff]   ;;  %v246_v26 = vld [vmem:[%s350_s0 + $0x8] sm:$0xff]  }
   0x7   :  { %v212_v24 = vunpack.c.l.bf16 %v211_v21  ;;  %v213_v25 = vunpack.c.h.bf16 %v211_v21  ;;  %v216_v29 = vunpack.c.l.bf16 %v246_v26  ;;  %v217_v31 = vunpack.c.h.bf16 %v246_v26  ;;  %v247_v33 = vld [vmem:[%s350_s0 + $0x10] sm:$0xff]   ;;  %v248_v42 = vld [vmem:[%s350_s0 + $0x18] sm:$0xff]  }
   0x8   :  { %v221_v38 = vunpack.c.h.bf16 %v247_v33  ;;  %v220_v39 = vunpack.c.l.bf16 %v247_v33  ;;  %v225_v50 = vunpack.c.h.bf16 %v248_v42  ;;  %v224_v51 = vunpack.c.l.bf16 %v248_v42 }
   0xa   :  { %65 = vperm.xlu1 %254, %v35_v5   ;;  %60 = vperm.xlu0 %253, %v34_v6  }
   0xe   :  { %75 = vperm.xlu1 %254, %v37_v7   ;;  %70 = vperm.xlu0 %253, %v36_v8  }
  0x12   :  { %101 = vperm.xlu1 %254, %v87_v9   ;;  %96 = vperm.xlu0 %253, %v86_v10  }
  0x16   :  { %111 = vperm.xlu1 %254, %v89_v11   ;;  %106 = vperm.xlu0 %253, %v88_v12  }
  0x1a   :  { %121 = vperm.xlu1 %254, %v91_v13   ;;  %116 = vperm.xlu0 %253, %v90_v14  }
  0x1e   :  { %131 = vperm.xlu1 %254, %v93_v15   ;;  %126 = vperm.xlu0 %253, %v92_v16  }
  0x81   :  { %v51_v17 = vpop.permute.xlu1 %50  ;;  %v41_v18 = vpop.permute.xlu0 %40 }
  0x82   :  { %v78_v30 = vmul.f32 %v212_v24, %v41_v18  ;;  %v80_v40 = vmul.f32 %v216_v29, %v51_v17 }
  0x85   :  { %v56_v19 = vpop.permute.xlu1 %55  ;;  %v46_v20 = vpop.permute.xlu0 %45 }
  0x86   :  { %v79_v32 = vmul.f32 %v213_v25, %v46_v20  ;;  %v81_v41 = vmul.f32 %v217_v31, %v56_v19 }
  0x89   :  { %v66_v22 = vpop.permute.xlu1 %65  ;;  %v61_v23 = vpop.permute.xlu0 %60 }
  0x8a   :  { %v83_v52 = vmul.f32 %v221_v38, %v66_v22  ;;  %v82_v53 = vmul.f32 %v220_v39, %v61_v23 }
  0x8d   :  { %v76_v27 = vpop.permute.xlu1 %75  ;;  %v71_v28 = vpop.permute.xlu0 %70 }
  0x8e   :  { %v85_v61 = vmul.f32 %v225_v50, %v76_v27  ;;  %v84_v62 = vmul.f32 %v224_v51, %v71_v28 }
  0x91   :  { %v102_v34 = vpop.permute.xlu1 %101  ;;  %v97_v35 = vpop.permute.xlu0 %96 }
  0x92   :  { %v135_v36 = vadd.f32 %v102_v34, %v79_v32  ;;  %v134_v37 = vadd.f32 %v97_v35, %v78_v30 }
  0x94   :  { %v143_v43 = vmax.f32 %v135_v36, 0.0  ;;  %v142_v44 = vmax.f32 %v134_v37, 0.0 }
  0x95   :  { %v112_v45 = vpop.permute.xlu1 %111  ;;  %v107_v46 = vpop.permute.xlu0 %106 }
  0x96   :  { %v229_v47 = vpack.c.bf16 %v143_v43, %v142_v44  ;;  %v137_v48 = vadd.f32 %v112_v45, %v81_v41  ;;  %v136_v49 = vadd.f32 %v107_v46, %v80_v40 }
  0x98   :  { %230 = vst [vmem:[%s351_s3] sm:$0xff] %v229_v47   ;;  %v145_v54 = vmax.f32 %v137_v48, 0.0  ;;  %v144_v55 = vmax.f32 %v136_v49, 0.0 }
  0x99   :  { %v122_v56 = vpop.permute.xlu1 %121  ;;  %v117_v57 = vpop.permute.xlu0 %116 }
  0x9a   :  { %v234_v58 = vpack.c.bf16 %v145_v54, %v144_v55  ;;  %v139_v59 = vadd.f32 %v122_v56, %v83_v52  ;;  %v138_v60 = vadd.f32 %v117_v57, %v82_v53 }
  0x9c   :  { %249 = vst [vmem:[%s351_s3 + $0x8] sm:$0xff] %v234_v58   ;;  %v147_v63 = vmax.f32 %v139_v59, 0.0  ;;  %v146_v0 = vmax.f32 %v138_v60, 0.0 }
  0x9d   :  { %v132_v1 = vpop.permute.xlu1 %131  ;;  %v127_v2 = vpop.permute.xlu0 %126 }
  0x9e   :  { %v239_v3 = vpack.c.bf16 %v147_v63, %v146_v0  ;;  %v141_v4 = vadd.f32 %v132_v1, %v85_v61  ;;  %v140_v5 = vadd.f32 %v127_v2, %v84_v62 }
  0xa0   :  { %250 = vst [vmem:[%s351_s3 + $0x10] sm:$0xff] %v239_v3   ;;  %v149_v6 = vmax.f32 %v141_v4, 0.0  ;;  %v148_v7 = vmax.f32 %v140_v5, 0.0 }
  0xa2   :  { %v244_v8 = vpack.c.bf16 %v149_v6, %v148_v7 }
  0xa4   :  { %251 = vst [vmem:[%s351_s3 + $0x18] sm:$0xff] %v244_v8  }

// kernel: learning_conv.49
= control target key start
LH: loop header
LB: loop body
LE: loop exit
PB: predicated region body
PF: predicated region fallthrough
CT: control target
= control target key end

     0   :  { %v161_v0 = vmov 0   ;;  %s229_s1 = inlined_call_operand.vmem [shape: f32[32,1], index: 1, kind: input, shape index: {}]   ;;  %s230_s2 = inlined_call_operand.vmem [shape: f32[32,1], index: 2, kind: input, shape index: {}]   ;;  %s231_s0 = inlined_call_operand.vmem [shape: bf16[32,128], index: 0, kind: input, shape index: {}]   ;;  %s232_s3 = inlined_call_operand.vmem [shape: bf16[32,128], index: 3, kind: input, shape index: {}]   ;;  %s233_s4 = inlined_call_operand.vmem [shape: bf16[32,128], index: 4, kind: output, shape index: {}]  }
   0x1   :  { %160 = vset.pattern.permute.xlu1 %v161_v0  ;;  %159 = vset.pattern.permute.xlu0 %v161_v0  ;;  %v27_v1 = vld [vmem:[%s229_s1 + $0x10] sm:$0xff]  ;;  %v25_v2 = vld [vmem:[%s229_s1] sm:$0xff]  ;;  %v28_v3 = vld [vmem:[%s229_s1 + $0x18] sm:$0xff] }
   0x2   :  { %41 = vperm.xlu1 %160, %v27_v1   ;;  %31 = vperm.xlu0 %159, %v25_v2   ;;  %v26_v4 = vld [vmem:[%s229_s1 + $0x8] sm:$0xff]  ;;  %v53_v6 = vld [vmem:[%s230_s2] sm:$0xff]  ;;  %v56_v7 = vld [vmem:[%s230_s2 + $0x18] sm:$0xff] }
   0x3   :  { %v54_v5 = vld [vmem:[%s230_s2 + $0x8] sm:$0xff]  ;;  %v55_v8 = vld [vmem:[%s230_s2 + $0x10] sm:$0xff]  ;;  %v130_v11 = vld [vmem:[%s231_s0] sm:$0xff]  }
   0x4   :  { %v131_v12 = vunpack.c.l.bf16 %v130_v11  ;;  %v132_v13 = vunpack.c.h.bf16 %v130_v11  ;;  %v155_v14 = vld [vmem:[%s231_s0 + $0x8] sm:$0xff]   ;;  %v138_v17 = vld [vmem:[%s232_s3] sm:$0xff]  }
   0x5   :  { %v135_v18 = vunpack.c.l.bf16 %v155_v14  ;;  %v136_v20 = vunpack.c.h.bf16 %v155_v14  ;;  %v140_v24 = vunpack.c.h.bf16 %v138_v17  ;;  %v139_v26 = vunpack.c.l.bf16 %v138_v17  ;;  %v156_v28 = vld [vmem:[%s232_s3 + $0x8] sm:$0xff]  }
   0x6   :  { %46 = vperm.xlu1 %160, %v28_v3   ;;  %36 = vperm.xlu0 %159, %v26_v4   ;;  %v144_v33 = vunpack.c.h.bf16 %v156_v28  ;;  %v143_v35 = vunpack.c.l.bf16 %v156_v28 }
   0xa   :  { %64 = vperm.xlu1 %160, %v54_v5   ;;  %59 = vperm.xlu0 %159, %v53_v6  }
   0xe   :  { %74 = vperm.xlu1 %160, %v56_v7   ;;  %69 = vperm.xlu0 %159, %v55_v8  }
  0x81   :  { %v42_v9 = vpop.permute.xlu1 %41  ;;  %v32_v10 = vpop.permute.xlu0 %31 }
  0x82   :  { %v49_v19 = vmul.f32 %v131_v12, %v32_v10  ;;  %v51_v29 = vmul.f32 %v135_v18, %v42_v9 }
  0x85   :  { %v47_v15 = vpop.permute.xlu1 %46  ;;  %v37_v16 = vpop.permute.xlu0 %36 }
  0x86   :  { %v50_v21 = vmul.f32 %v132_v13, %v37_v16  ;;  %v52_v30 = vmul.f32 %v136_v20, %v47_v15 }
  0x89   :  { %v65_v22 = vpop.permute.xlu1 %64  ;;  %v60_v23 = vpop.permute.xlu0 %59 }
  0x8a   :  { %v78_v25 = vadd.f32 %v65_v22, %v50_v21  ;;  %v77_v27 = vadd.f32 %v60_v23, %v49_v19 }
  0x8c   :  { %v82_v31 = vmax.f32 %v78_v25, 0.0  ;;  %v81_v32 = vmax.f32 %v77_v27, 0.0 }
  0x8d   :  { %v75_v34 = vpop.permute.xlu1 %74  ;;  %v70_v36 = vpop.permute.xlu0 %69 }
  0x8e   :  { %v94_v37 = vmin.f32 %v82_v31, %v140_v24  ;;  %v93_v38 = vmin.f32 %v81_v32, %v139_v26  ;;  %v80_v39 = vadd.f32 %v75_v34, %v52_v30  ;;  %v79_v40 = vadd.f32 %v70_v36, %v51_v29 }
  0x90   :  { %v148_v41 = vpack.c.bf16 %v94_v37, %v93_v38  ;;  %v84_v42 = vmax.f32 %v80_v39, 0.0  ;;  %v83_v43 = vmax.f32 %v79_v40, 0.0 }
  0x92   :  { %149 = vst [vmem:[%s233_s4] sm:$0xff] %v148_v41   ;;  %v96_v44 = vmin.f32 %v84_v42, %v144_v33  ;;  %v95_v45 = vmin.f32 %v83_v43, %v143_v35 }
  0x94   :  { %v153_v46 = vpack.c.bf16 %v96_v44, %v95_v45 }
  0x96   :  { %157 = vst [vmem:[%s233_s4 + $0x8] sm:$0xff] %v153_v46  }

// kernel: learning_conv.48
= control target key start
LH: loop header
LB: loop body
LE: loop exit
PB: predicated region body
PF: predicated region fallthrough
CT: control target
= control target key end

     0   :  { %vm448_vm0 = vcmask 7168   ;;  %s1045_s1 = inlined_call_operand.vmem [shape: bf16[256,128], index: 1, kind: input, shape index: {}]   ;;  %s1046_s0 = inlined_call_operand.vmem [shape: bf16[128,256], index: 0, kind: input, shape index: {}]   ;;  %s1047_s2 = inlined_call_operand.vmem [shape: bf16[128,128], index: 2, kind: output, shape index: {0}]   ;;  %s1048_s3 = inlined_call_operand.vmem [shape: f32[1,128,1], index: 3, kind: output, shape index: {1}]   ;;  %s1049_s4 = inlined_call_operand.vmem [shape: f32[1,128,1], index: 4, kind: output, shape index: {2}]  }
   0x1   :  { %v732_v0 = vld [vmem:[%s1045_s1 + $0x40] sm:$0xff]   ;;  %v734_v2 = vld [vmem:[%s1045_s1 + $0x48] sm:$0xff]   ;;  %v736_v4 = vld [vmem:[%s1045_s1 + $0x50] sm:$0xff]  }
   0x2   :  { %v733_v1 = vld [vmem:[%s1045_s1] sm:$0xff]   ;;  %652 = vmatprep.subr.bf16.mxu0 %v732_v0  ;;  %716 = vmatprep.subr.bf16.mxu1 %v732_v0  ;;  %v735_v3 = vld [vmem:[%s1045_s1 + $0x8] sm:$0xff]   ;;  %v737_v5 = vld [vmem:[%s1045_s1 + $0x10] sm:$0xff]  }
   0x3   :  { %653 = vmatpush3.bf16.msra.mxu0 %v733_v1  ;;  %724 = vmatpush3.bf16.msra.mxu1 %v733_v1  ;;  %v738_v6 = vld [vmem:[%s1045_s1 + $0x58] sm:$0xff]   ;;  %v740_v8 = vld [vmem:[%s1045_s1 + $0x60] sm:$0xff]   ;;  %v742_v10 = vld [vmem:[%s1045_s1 + $0x68] sm:$0xff]  }
   0x4   :  { %654 = vmatprep.subr.bf16.mxu0 %v734_v2  ;;  %717 = vmatprep.subr.bf16.mxu1 %v734_v2  ;;  %v739_v7 = vld [vmem:[%s1045_s1 + $0x18] sm:$0xff]   ;;  %v741_v9 = vld [vmem:[%s1045_s1 + $0x20] sm:$0xff]   ;;  %v743_v13 = vld [vmem:[%s1045_s1 + $0x28] sm:$0xff]  }
   0x5   :  { %v750_v11 = vld [vmem:[%s1046_s0 + $0x4] ss:$8 sps:$4 sm:$0xff]   ;;  %v744_v14 = vld [vmem:[%s1045_s1 + $0x70] sm:$0xff]   ;;  %v746_v16 = vld [vmem:[%s1045_s1 + $0x78] sm:$0xff]  }
   0x6   :  { %v753_v12 = vld [vmem:[%s1046_s0 + $0x44] ss:$8 sps:$4 sm:$0xff]   ;;  %271 = vmatprep.mubr.bf16.mxu0 %v750_v11  ;;  %v745_v15 = vld [vmem:[%s1045_s1 + $0x30] sm:$0xff]   ;;  %v747_v17 = vld [vmem:[%s1045_s1 + $0x38] sm:$0xff]  }
   0x7   :  { %655 = vmatpush3.bf16.msra.mxu0 %v735_v3  ;;  %725 = vmatpush3.bf16.msra.mxu1 %v735_v3  ;;  %v748_v18 = vld [vmem:[%s1046_s0] ss:$8 sps:$4 sm:$0xff]   ;;  %v754_v20 = vld [vmem:[%s1046_s0 + $0x14] ss:$8 sps:$4 sm:$0xff]   ;;  %v756_v22 = vld [vmem:[%s1046_s0 + $0x10] ss:$8 sps:$4 sm:$0xff]  }
   0x8   :  { %656 = vmatprep.subr.bf16.mxu0 %v736_v4  ;;  %718 = vmatprep.subr.bf16.mxu1 %v736_v4  ;;  %v751_v19 = vld [vmem:[%s1046_s0 + $0x40] ss:$8 sps:$4 sm:$0xff]   ;;  %v757_v21 = vld [vmem:[%s1046_s0 + $0x54] ss:$8 sps:$4 sm:$0xff]   ;;  %v759_v23 = vld [vmem:[%s1046_s0 + $0x50] ss:$8 sps:$4 sm:$0xff]  }
   0x9   :  { %303 = vmatprep.mubr.bf16.mxu1 %v753_v12  ;;  %v760_v24 = vld [vmem:[%s1046_s0 + $0x24] ss:$8 sps:$4 sm:$0xff]   ;;  %v762_v26 = vld [vmem:[%s1046_s0 + $0x20] ss:$8 sps:$4 sm:$0xff]   ;;  %v766_v28 = vld [vmem:[%s1046_s0 + $0x34] ss:$8 sps:$4 sm:$0xff]  }
   0xa   :  { %v763_v25 = vld [vmem:[%s1046_s0 + $0x64] ss:$8 sps:$4 sm:$0xff]   ;;  %v765_v27 = vld [vmem:[%s1046_s0 + $0x60] ss:$8 sps:$4 sm:$0xff]   ;;  %v769_v29 = vld [vmem:[%s1046_s0 + $0x74] ss:$8 sps:$4 sm:$0xff]  }
   0xb   :  { %657 = vmatpush3.bf16.msra.mxu0 %v737_v5  ;;  %726 = vmatpush3.bf16.msra.mxu1 %v737_v5  ;;  %v768_v30 = vld [vmem:[%s1046_s0 + $0x30] ss:$8 sps:$4 sm:$0xff]  }
   0xc   :  { %658 = vmatprep.subr.bf16.mxu0 %v738_v6  ;;  %719 = vmatprep.subr.bf16.mxu1 %v738_v6  ;;  %v771_v31 = vld [vmem:[%s1046_s0 + $0x70] ss:$8 sps:$4 sm:$0xff]  }
   0xf   :  { %659 = vmatpush3.bf16.msra.mxu0 %v739_v7  ;;  %727 = vmatpush3.bf16.msra.mxu1 %v739_v7 }
  0x10   :  { %660 = vmatprep.subr.bf16.mxu0 %v740_v8  ;;  %720 = vmatprep.subr.bf16.mxu1 %v740_v8 }
  0x13   :  { %661 = vmatpush3.bf16.msra.mxu0 %v741_v9  ;;  %728 = vmatpush3.bf16.msra.mxu1 %v741_v9 }
  0x14   :  { %662 = vmatprep.subr.bf16.mxu0 %v742_v10  ;;  %721 = vmatprep.subr.bf16.mxu1 %v742_v10 }
  0x17   :  { %663 = vmatpush3.bf16.msra.mxu0 %v743_v13  ;;  %729 = vmatpush3.bf16.msra.mxu1 %v743_v13 }
  0x18   :  { %664 = vmatprep.subr.bf16.mxu0 %v744_v14  ;;  %722 = vmatprep.subr.bf16.mxu1 %v744_v14 }
  0x1b   :  { %665 = vmatpush3.bf16.msra.mxu0 %v745_v15  ;;  %730 = vmatpush3.bf16.msra.mxu1 %v745_v15 }
  0x1c   :  { %666 = vmatprep.subr.bf16.mxu0 %v746_v16  ;;  %723 = vmatprep.subr.bf16.mxu1 %v746_v16 }
  0x1f   :  { %667 = vmatpush3.bf16.msra.mxu0 %v747_v17  ;;  %731 = vmatpush3.bf16.msra.mxu1 %v747_v17 }
  0x22   :  { %272 = vmatmul.mubr.bf16.vlgmr.msra.gmra.mrb[0].mxu0 %v748_v18  ;;  %304 = vmatmul.mubr.bf16.vlgmr.msra.gmra.mrb[0].mxu1 %v751_v19 }
  0x23   :  { %279 = vmatprep.mubr.bf16.mxu0 %v754_v20  ;;  %311 = vmatprep.mubr.bf16.mxu1 %v757_v21 }
  0x2a   :  { %280 = vmatmul.mubr.bf16.gmra.mrb[4].mxu0 %v756_v22  ;;  %312 = vmatmul.mubr.bf16.gmra.mrb[4].mxu1 %v759_v23 }
  0x2b   :  { %287 = vmatprep.mubr.bf16.mxu0 %v760_v24  ;;  %319 = vmatprep.mubr.bf16.mxu1 %v763_v25 }
  0x32   :  { %288 = vmatmul.mubr.bf16.gmra.mrb[8].mxu0 %v762_v26  ;;  %320 = vmatmul.mubr.bf16.gmra.mrb[8].mxu1 %v765_v27 }
  0x33   :  { %295 = vmatprep.mubr.bf16.mxu0 %v766_v28  ;;  %327 = vmatprep.mubr.bf16.mxu1 %v769_v29 }
  0x3a   :  { %296 = vmatmul.mubr.bf16.gmra.mrb[12].mxu0 %v768_v30  ;;  %328 = vmatmul.mubr.bf16.gmra.mrb[12].mxu1 %v771_v31 }
  0xf5   :  { %v668_v32 = vpop.f32.mrb[0].mxu0  ;;  %v692_v33 = vpop.f32.mrb[0].mxu1 }
  0xf6   :  { %v669_v34 = vpop.f32.mrb[1].mxu0  ;;  %v693_v35 = vpop.f32.mrb[1].mxu1 }
  0xf7   :  { %v670_v36 = vadd.f32 %v669_v34, %v668_v32  ;;  %v694_v37 = vadd.f32 %v693_v35, %v692_v33  ;;  %v671_v38 = vpop.f32.mrb[2].mxu0  ;;  %v695_v39 = vpop.f32.mrb[2].mxu1 }
  0xf8   :  { %v672_v40 = vpop.f32.mrb[3].mxu0  ;;  %v696_v41 = vpop.f32.mrb[3].mxu1 }
  0xf9   :  { %v673_v42 = vadd.f32 %v672_v40, %v671_v38  ;;  %v697_v43 = vadd.f32 %v696_v41, %v695_v39  ;;  %416 = vadd.xlane.f32.xlu0 %v670_v36  ;;  %v465_v61 = vmul.f32 %v670_v36, %v670_v36  ;;  %v473_v3 = vmul.f32 %v694_v37, %v694_v37 }
  0xfb   :  { %v608_v44 = vpack.c.bf16 %v673_v42, %v670_v36  ;;  %v628_v45 = vpack.c.bf16 %v697_v43, %v694_v37  ;;  %434 = vadd.xlane.f32.xlu1 %v697_v43  ;;  %v466_v46 = vmul.f32 %v673_v42, %v673_v42  ;;  %v474_v58 = vmul.f32 %v697_v43, %v697_v43 }
  0xfd   :  { %609 = vst [vmem:[%s1047_s2] sm:$0xff] %v608_v44   ;;  %648 = vst [vmem:[%s1047_s2 + $0x20] sm:$0xff] %v628_v45   ;;  %432 = vadd.xlane.f32.xlu0 %v694_v37  ;;  %v674_v47 = vpop.f32.mrb[4].mxu0  ;;  %v698_v48 = vpop.f32.mrb[4].mxu1 }
  0xfe   :  { %v675_v49 = vpop.f32.mrb[5].mxu0  ;;  %v699_v50 = vpop.f32.mrb[5].mxu1 }
  0xff   :  { %483 = vadd.xlane.f32.xlu1 %v466_v46  ;;  %v676_v51 = vadd.f32 %v675_v49, %v674_v47  ;;  %v677_v52 = vpop.f32.mrb[6].mxu0  ;;  %v700_v53 = vadd.f32 %v699_v50, %v698_v48  ;;  %v701_v54 = vpop.f32.mrb[6].mxu1 }
 0x100   :  { %v678_v55 = vpop.f32.mrb[7].mxu0  ;;  %v702_v56 = vpop.f32.mrb[7].mxu1 }
 0x101   :  { %418 = vadd.xlane.f32.xlu0 %v673_v42  ;;  %v679_v57 = vadd.f32 %v678_v55, %v677_v52  ;;  %v703_v59 = vadd.f32 %v702_v56, %v701_v54  ;;  %v467_v18 = vmul.f32 %v676_v51, %v676_v51  ;;  %v475_v28 = vmul.f32 %v700_v53, %v700_v53 }
 0x103   :  { %v613_v60 = vpack.c.bf16 %v679_v57, %v676_v51  ;;  %499 = vadd.xlane.f32.xlu1 %v474_v58  ;;  %v633_v62 = vpack.c.bf16 %v703_v59, %v700_v53  ;;  %v468_v25 = vmul.f32 %v679_v57, %v679_v57  ;;  %v476_v31 = vmul.f32 %v703_v59, %v703_v59 }
 0x105   :  { %645 = vst [vmem:[%s1047_s2 + $0x8] sm:$0xff] %v613_v60   ;;  %481 = vadd.xlane.f32.xlu0 %v465_v61  ;;  %649 = vst [vmem:[%s1047_s2 + $0x28] sm:$0xff] %v633_v62   ;;  %v680_v63 = vpop.f32.mrb[8].mxu0  ;;  %v704_v0 = vpop.f32.mrb[8].mxu1 }
 0x106   :  { %v681_v1 = vpop.f32.mrb[9].mxu0  ;;  %v705_v2 = vpop.f32.mrb[9].mxu1 }
 0x107   :  { %420 = vadd.xlane.f32.xlu1 %v676_v51  ;;  %v682_v4 = vadd.f32 %v681_v1, %v680_v63  ;;  %v683_v5 = vpop.f32.mrb[10].mxu0  ;;  %v706_v6 = vadd.f32 %v705_v2, %v704_v0  ;;  %v707_v7 = vpop.f32.mrb[10].mxu1 }
 0x108   :  { %v684_v8 = vpop.f32.mrb[11].mxu0  ;;  %v708_v9 = vpop.f32.mrb[11].mxu1 }
 0x109   :  { %497 = vadd.xlane.f32.xlu0 %v473_v3  ;;  %v685_v10 = vadd.f32 %v684_v8, %v683_v5  ;;  %v709_v11 = vadd.f32 %v708_v9, %v707_v7  ;;  %v469_v32 = vmul.f32 %v682_v4, %v682_v4  ;;  %v477_v34 = vmul.f32 %v706_v6, %v706_v6 }
 0x10b   :  { %422 = vadd.xlane.f32.xlu1 %v679_v57  ;;  %v618_v12 = vpack.c.bf16 %v685_v10, %v682_v4  ;;  %v638_v13 = vpack.c.bf16 %v709_v11, %v706_v6  ;;  %v470_v33 = vmul.f32 %v685_v10, %v685_v10  ;;  %v478_v35 = vmul.f32 %v709_v11, %v709_v11 }
 0x10d   :  { %436 = vadd.xlane.f32.xlu0 %v700_v53  ;;  %646 = vst [vmem:[%s1047_s2 + $0x10] sm:$0xff] %v618_v12   ;;  %650 = vst [vmem:[%s1047_s2 + $0x30] sm:$0xff] %v638_v13   ;;  %v686_v14 = vpop.f32.mrb[12].mxu0  ;;  %v710_v15 = vpop.f32.mrb[12].mxu1 }
 0x10e   :  { %v687_v16 = vpop.f32.mrb[13].mxu0  ;;  %v711_v17 = vpop.f32.mrb[13].mxu1 }
 0x10f   :  { %438 = vadd.xlane.f32.xlu1 %v703_v59  ;;  %v688_v19 = vadd.f32 %v687_v16, %v686_v14  ;;  %v689_v20 = vpop.f32.mrb[14].mxu0  ;;  %v712_v21 = vadd.f32 %v711_v17, %v710_v15  ;;  %v713_v22 = vpop.f32.mrb[14].mxu1 }
 0x110   :  { %v690_v23 = vpop.f32.mrb[15].mxu0  ;;  %v714_v24 = vpop.f32.mrb[15].mxu1 }
 0x111   :  { %485 = vadd.xlane.f32.xlu0 %v467_v18  ;;  %v691_v26 = vadd.f32 %v690_v23, %v689_v20  ;;  %v715_v27 = vadd.f32 %v714_v24, %v713_v22  ;;  %v471_v36 = vmul.f32 %v688_v19, %v688_v19  ;;  %v479_v38 = vmul.f32 %v712_v21, %v712_v21 }
 0x113   :  { %487 = vadd.xlane.f32.xlu1 %v468_v25  ;;  %v623_v29 = vpack.c.bf16 %v691_v26, %v688_v19  ;;  %v643_v30 = vpack.c.bf16 %v715_v27, %v712_v21  ;;  %v472_v37 = vmul.f32 %v691_v26, %v691_v26  ;;  %v480_v39 = vmul.f32 %v715_v27, %v715_v27 }
 0x115   :  { %501 = vadd.xlane.f32.xlu0 %v475_v28  ;;  %647 = vst [vmem:[%s1047_s2 + $0x18] sm:$0xff] %v623_v29   ;;  %651 = vst [vmem:[%s1047_s2 + $0x38] sm:$0xff] %v643_v30  }
 0x117   :  { %503 = vadd.xlane.f32.xlu1 %v476_v31 }
 0x119   :  { %424 = vadd.xlane.f32.xlu0 %v682_v4 }
 0x11b   :  { %426 = vadd.xlane.f32.xlu1 %v685_v10 }
 0x11d   :  { %440 = vadd.xlane.f32.xlu0 %v706_v6 }
 0x11f   :  { %442 = vadd.xlane.f32.xlu1 %v709_v11 }
 0x121   :  { %489 = vadd.xlane.f32.xlu0 %v469_v32 }
 0x123   :  { %491 = vadd.xlane.f32.xlu1 %v470_v33 }
 0x125   :  { %505 = vadd.xlane.f32.xlu0 %v477_v34 }
 0x127   :  { %507 = vadd.xlane.f32.xlu1 %v478_v35 }
 0x129   :  { %428 = vadd.xlane.f32.xlu0 %v688_v19 }
 0x12b   :  { %430 = vadd.xlane.f32.xlu1 %v691_v26 }
 0x12d   :  { %444 = vadd.xlane.f32.xlu0 %v712_v21 }
 0x12f   :  { %446 = vadd.xlane.f32.xlu1 %v715_v27 }
 0x131   :  { %493 = vadd.xlane.f32.xlu0 %v471_v36 }
 0x133   :  { %495 = vadd.xlane.f32.xlu1 %v472_v37 }
 0x135   :  { %509 = vadd.xlane.f32.xlu0 %v479_v38 }
 0x137   :  { %511 = vadd.xlane.f32.xlu1 %v480_v39 }
 0x186   :  { %v417_v40 = vpop.xlane.xlu0 %416 }
 0x187   :  { %449 = vst.msk [vmem:[%s1048_s3] sm:$0xff] %vm448_vm0, %v417_v40 }
 0x188   :  { %v435_v41 = vpop.xlane.xlu1 %434 }
 0x189   :  { %458 = vst.msk [vmem:[%s1048_s3 + $0x48] sm:$0xff] %vm448_vm0, %v435_v41 }
 0x18a   :  { %v433_v42 = vpop.xlane.xlu0 %432 }
 0x18b   :  { %457 = vst.msk [vmem:[%s1048_s3 + $0x40] sm:$0xff] %vm448_vm0, %v433_v42 }
 0x18c   :  { %v484_v43 = vpop.xlane.xlu1 %483 }
 0x18d   :  { %514 = vst.msk [vmem:[%s1049_s4 + $0x8] sm:$0xff] %vm448_vm0, %v484_v43 }
 0x18e   :  { %v419_v44 = vpop.xlane.xlu0 %418 }
 0x18f   :  { %450 = vst.msk [vmem:[%s1048_s3 + $0x8] sm:$0xff] %vm448_vm0, %v419_v44 }
 0x190   :  { %v500_v45 = vpop.xlane.xlu1 %499 }
 0x191   :  { %522 = vst.msk [vmem:[%s1049_s4 + $0x48] sm:$0xff] %vm448_vm0, %v500_v45 }
 0x192   :  { %v482_v46 = vpop.xlane.xlu0 %481 }
 0x193   :  { %513 = vst.msk [vmem:[%s1049_s4] sm:$0xff] %vm448_vm0, %v482_v46 }
 0x194   :  { %v421_v47 = vpop.xlane.xlu1 %420 }
 0x195   :  { %451 = vst.msk [vmem:[%s1048_s3 + $0x10] sm:$0xff] %vm448_vm0, %v421_v47 }
 0x196   :  { %v498_v48 = vpop.xlane.xlu0 %497 }
 0x197   :  { %521 = vst.msk [vmem:[%s1049_s4 + $0x40] sm:$0xff] %vm448_vm0, %v498_v48 }
 0x198   :  { %v423_v49 = vpop.xlane.xlu1 %422 }
 0x199   :  { %452 = vst.msk [vmem:[%s1048_s3 + $0x18] sm:$0xff] %vm448_vm0, %v423_v49 }
 0x19a   :  { %v437_v50 = vpop.xlane.xlu0 %436 }
 0x19b   :  { %459 = vst.msk [vmem:[%s1048_s3 + $0x50] sm:$0xff] %vm448_vm0, %v437_v50 }
 0x19c   :  { %v439_v51 = vpop.xlane.xlu1 %438 }
 0x19d   :  { %460 = vst.msk [vmem:[%s1048_s3 + $0x58] sm:$0xff] %vm448_vm0, %v439_v51 }
 0x19e   :  { %v486_v52 = vpop.xlane.xlu0 %485 }
 0x19f   :  { %515 = vst.msk [vmem:[%s1049_s4 + $0x10] sm:$0xff] %vm448_vm0, %v486_v52 }
 0x1a0   :  { %v488_v53 = vpop.xlane.xlu1 %487 }
 0x1a1   :  { %516 = vst.msk [vmem:[%s1049_s4 + $0x18] sm:$0xff] %vm448_vm0, %v488_v53 }
 0x1a2   :  { %v502_v54 = vpop.xlane.xlu0 %501 }
 0x1a3   :  { %523 = vst.msk [vmem:[%s1049_s4 + $0x50] sm:$0xff] %vm448_vm0, %v502_v54 }
 0x1a4   :  { %v504_v55 = vpop.xlane.xlu1 %503 }
 0x1a5   :  { %524 = vst.msk [vmem:[%s1049_s4 + $0x58] sm:$0xff] %vm448_vm0, %v504_v55 }
 0x1a6   :  { %v425_v56 = vpop.xlane.xlu0 %424 }
 0x1a7   :  { %453 = vst.msk [vmem:[%s1048_s3 + $0x20] sm:$0xff] %vm448_vm0, %v425_v56 }
 0x1a8   :  { %v427_v57 = vpop.xlane.xlu1 %426 }
 0x1a9   :  { %454 = vst.msk [vmem:[%s1048_s3 + $0x28] sm:$0xff] %vm448_vm0, %v427_v57 }
 0x1aa   :  { %v441_v58 = vpop.xlane.xlu0 %440 }
 0x1ab   :  { %461 = vst.msk [vmem:[%s1048_s3 + $0x60] sm:$0xff] %vm448_vm0, %v441_v58 }
 0x1ac   :  { %v443_v59 = vpop.xlane.xlu1 %442 }
 0x1ad   :  { %462 = vst.msk [vmem:[%s1048_s3 + $0x68] sm:$0xff] %vm448_vm0, %v443_v59 }
 0x1ae   :  { %v490_v60 = vpop.xlane.xlu0 %489 }
 0x1af   :  { %517 = vst.msk [vmem:[%s1049_s4 + $0x20] sm:$0xff] %vm448_vm0, %v490_v60 }
 0x1b0   :  { %v492_v61 = vpop.xlane.xlu1 %491 }
 0x1b1   :  { %518 = vst.msk [vmem:[%s1049_s4 + $0x28] sm:$0xff] %vm448_vm0, %v492_v61 }
 0x1b2   :  { %v506_v62 = vpop.xlane.xlu0 %505 }
 0x1b3   :  { %525 = vst.msk [vmem:[%s1049_s4 + $0x60] sm:$0xff] %vm448_vm0, %v506_v62 }
 0x1b4   :  { %v508_v63 = vpop.xlane.xlu1 %507 }
 0x1b5   :  { %526 = vst.msk [vmem:[%s1049_s4 + $0x68] sm:$0xff] %vm448_vm0, %v508_v63 }
 0x1b6   :  { %v429_v0 = vpop.xlane.xlu0 %428 }
 0x1b7   :  { %455 = vst.msk [vmem:[%s1048_s3 + $0x30] sm:$0xff] %vm448_vm0, %v429_v0 }
 0x1b8   :  { %v431_v1 = vpop.xlane.xlu1 %430 }
 0x1b9   :  { %456 = vst.msk [vmem:[%s1048_s3 + $0x38] sm:$0xff] %vm448_vm0, %v431_v1 }
 0x1ba   :  { %v445_v2 = vpop.xlane.xlu0 %444 }
 0x1bb   :  { %463 = vst.msk [vmem:[%s1048_s3 + $0x70] sm:$0xff] %vm448_vm0, %v445_v2 }
 0x1bc   :  { %v447_v3 = vpop.xlane.xlu1 %446 }
 0x1bd   :  { %464 = vst.msk [vmem:[%s1048_s3 + $0x78] sm:$0xff] %vm448_vm0, %v447_v3 }
 0x1be   :  { %v494_v4 = vpop.xlane.xlu0 %493 }
 0x1bf   :  { %519 = vst.msk [vmem:[%s1049_s4 + $0x30] sm:$0xff] %vm448_vm0, %v494_v4 }
 0x1c0   :  { %v496_v5 = vpop.xlane.xlu1 %495 }
 0x1c1   :  { %520 = vst.msk [vmem:[%s1049_s4 + $0x38] sm:$0xff] %vm448_vm0, %v496_v5 }
 0x1c2   :  { %v510_v6 = vpop.xlane.xlu0 %509 }
 0x1c3   :  { %527 = vst.msk [vmem:[%s1049_s4 + $0x70] sm:$0xff] %vm448_vm0, %v510_v6 }
 0x1c4   :  { %v512_v7 = vpop.xlane.xlu1 %511 }
 0x1c5   :  { %528 = vst.msk [vmem:[%s1049_s4 + $0x78] sm:$0xff] %vm448_vm0, %v512_v7 }

// kernel: learning_conv.50
= control target key start
LH: loop header
LB: loop body
LE: loop exit
PB: predicated region body
PF: predicated region fallthrough
CT: control target
= control target key end

     0   :  { %vm232_vm0 = vcmask 7168   ;;  %s537_s1 = inlined_call_operand.vmem [shape: bf16[128,128], index: 1, kind: input, shape index: {}]   ;;  %s538_s0 = inlined_call_operand.vmem [shape: bf16[64,128], index: 0, kind: input, shape index: {}]   ;;  %s539_s2 = inlined_call_operand.vmem [shape: bf16[64,128], index: 2, kind: output, shape index: {0}]   ;;  %s540_s3 = inlined_call_operand.vmem [shape: f32[1,64,1], index: 3, kind: output, shape index: {1}]   ;;  %s541_s4 = inlined_call_operand.vmem [shape: f32[1,64,1], index: 4, kind: output, shape index: {2}]  }
   0x1   :  { %v388_v0 = vld [vmem:[%s537_s1] sm:$0xff]   ;;  %v389_v1 = vld [vmem:[%s537_s1 + $0x8] sm:$0xff]   ;;  %v390_v2 = vld [vmem:[%s537_s1 + $0x10] sm:$0xff]  }
   0x2   :  { %348 = vmatprep.subr.bf16.mxu0 %v388_v0  ;;  %372 = vmatprep.subr.bf16.mxu1 %v388_v0  ;;  %v391_v3 = vld [vmem:[%s537_s1 + $0x18] sm:$0xff]   ;;  %v396_v4 = vld [vmem:[%s538_s0] sm:$0xff]   ;;  %v397_v5 = vld [vmem:[%s538_s0 + $0x10] sm:$0xff]  }
   0x3   :  { %349 = vmatpush3.bf16.msra.mxu0 %v388_v0  ;;  %380 = vmatpush3.bf16.msra.mxu1 %v388_v0  ;;  %v392_v6 = vld [vmem:[%s537_s1 + $0x20] sm:$0xff]   ;;  %v393_v7 = vld [vmem:[%s537_s1 + $0x28] sm:$0xff]   ;;  %v394_v8 = vld [vmem:[%s537_s1 + $0x30] sm:$0xff]  }
   0x4   :  { %350 = vmatprep.subr.bf16.mxu0 %v389_v1  ;;  %373 = vmatprep.subr.bf16.mxu1 %v389_v1  ;;  %v395_v9 = vld [vmem:[%s537_s1 + $0x38] sm:$0xff]   ;;  %v398_v10 = vld [vmem:[%s538_s0 + $0x8] sm:$0xff]  }
   0x5   :  { %364 = vmatprep.mubr.bf16.mxu0 %v396_v4  ;;  %368 = vmatprep.mubr.bf16.mxu1 %v397_v5  ;;  %v399_v11 = vld [vmem:[%s538_s0 + $0x18] sm:$0xff]  }
   0x7   :  { %351 = vmatpush3.bf16.msra.mxu0 %v389_v1  ;;  %381 = vmatpush3.bf16.msra.mxu1 %v389_v1 }
   0x8   :  { %352 = vmatprep.subr.bf16.mxu0 %v390_v2  ;;  %374 = vmatprep.subr.bf16.mxu1 %v390_v2 }
   0xb   :  { %353 = vmatpush3.bf16.msra.mxu0 %v390_v2  ;;  %382 = vmatpush3.bf16.msra.mxu1 %v390_v2 }
   0xc   :  { %354 = vmatprep.subr.bf16.mxu0 %v391_v3  ;;  %375 = vmatprep.subr.bf16.mxu1 %v391_v3 }
   0xf   :  { %355 = vmatpush3.bf16.msra.mxu0 %v391_v3  ;;  %383 = vmatpush3.bf16.msra.mxu1 %v391_v3 }
  0x10   :  { %356 = vmatprep.subr.bf16.mxu0 %v392_v6  ;;  %376 = vmatprep.subr.bf16.mxu1 %v392_v6 }
  0x13   :  { %357 = vmatpush3.bf16.msra.mxu0 %v392_v6  ;;  %384 = vmatpush3.bf16.msra.mxu1 %v392_v6 }
  0x14   :  { %358 = vmatprep.subr.bf16.mxu0 %v393_v7  ;;  %377 = vmatprep.subr.bf16.mxu1 %v393_v7 }
  0x17   :  { %359 = vmatpush3.bf16.msra.mxu0 %v393_v7  ;;  %385 = vmatpush3.bf16.msra.mxu1 %v393_v7 }
  0x18   :  { %360 = vmatprep.subr.bf16.mxu0 %v394_v8  ;;  %378 = vmatprep.subr.bf16.mxu1 %v394_v8 }
  0x1b   :  { %361 = vmatpush3.bf16.msra.mxu0 %v394_v8  ;;  %386 = vmatpush3.bf16.msra.mxu1 %v394_v8 }
  0x1c   :  { %362 = vmatprep.subr.bf16.mxu0 %v395_v9  ;;  %379 = vmatprep.subr.bf16.mxu1 %v395_v9 }
  0x1f   :  { %363 = vmatpush3.bf16.msra.mxu0 %v395_v9  ;;  %387 = vmatpush3.bf16.msra.mxu1 %v395_v9 }
  0x22   :  { %365 = vmatmul.mubr.bf16.vlgmr.msra.gmra.mrb[0].mxu0 %v398_v10  ;;  %369 = vmatmul.mubr.bf16.vlgmr.msra.gmra.mrb[0].mxu1 %v399_v11 }
  0xf5   :  { %v366_v12 = vpop.f32.mrb[0].mxu0  ;;  %v370_v13 = vpop.f32.mrb[0].mxu1 }
  0xf6   :  { %228 = vadd.xlane.f32.xlu0 %v370_v13  ;;  %v161_v14 = vpop.f32.mrb[1].mxu1  ;;  %220 = vadd.xlane.f32.xlu1 %v366_v12  ;;  %v145_v15 = vpop.f32.mrb[1].mxu0  ;;  %v243_v24 = vmul.f32 %v366_v12, %v366_v12  ;;  %v247_v30 = vmul.f32 %v370_v13, %v370_v13 }
  0xf7   :  { %v367_v16 = vpop.f32.mrb[2].mxu0  ;;  %v371_v17 = vpop.f32.mrb[2].mxu1  ;;  %v241_v26 = vmul.f32 %v145_v15, %v145_v15  ;;  %v245_v28 = vmul.f32 %v161_v14, %v161_v14 }
  0xf8   :  { %v321_v18 = vpack.c.bf16 %v367_v16, %v366_v12  ;;  %v331_v19 = vpack.c.bf16 %v371_v17, %v370_v13  ;;  %v148_v20 = vpop.f32.mrb[3].mxu0  ;;  %v164_v21 = vpop.f32.mrb[3].mxu1  ;;  %v244_v25 = vmul.f32 %v367_v16, %v367_v16  ;;  %v248_v31 = vmul.f32 %v371_v17, %v371_v17 }
  0xf9   :  { %v316_v22 = vpack.c.bf16 %v148_v20, %v145_v15  ;;  %v326_v23 = vpack.c.bf16 %v164_v21, %v161_v14  ;;  %v242_v27 = vmul.f32 %v148_v20, %v148_v20  ;;  %v246_v29 = vmul.f32 %v164_v21, %v164_v21 }
  0xfa   :  { %333 = vst [vmem:[%s539_s2 + $0x8] sm:$0xff] %v321_v18   ;;  %335 = vst [vmem:[%s539_s2 + $0x18] sm:$0xff] %v331_v19   ;;  %216 = vadd.xlane.f32.xlu0 %v145_v15  ;;  %222 = vadd.xlane.f32.xlu1 %v367_v16 }
  0xfb   :  { %317 = vst [vmem:[%s539_s2] sm:$0xff] %v316_v22   ;;  %334 = vst [vmem:[%s539_s2 + $0x10] sm:$0xff] %v326_v23  }
  0xfe   :  { %224 = vadd.xlane.f32.xlu0 %v161_v14  ;;  %230 = vadd.xlane.f32.xlu1 %v371_v17 }
 0x102   :  { %253 = vadd.xlane.f32.xlu0 %v243_v24  ;;  %226 = vadd.xlane.f32.xlu1 %v164_v21 }
 0x106   :  { %255 = vadd.xlane.f32.xlu1 %v244_v25  ;;  %218 = vadd.xlane.f32.xlu0 %v148_v20 }
 0x10a   :  { %249 = vadd.xlane.f32.xlu0 %v241_v26  ;;  %251 = vadd.xlane.f32.xlu1 %v242_v27 }
 0x10e   :  { %257 = vadd.xlane.f32.xlu0 %v245_v28  ;;  %259 = vadd.xlane.f32.xlu1 %v246_v29 }
 0x112   :  { %261 = vadd.xlane.f32.xlu0 %v247_v30  ;;  %263 = vadd.xlane.f32.xlu1 %v248_v31 }
 0x183   :  { %v229_v32 = vpop.xlane.xlu0 %228  ;;  %v221_v33 = vpop.xlane.xlu1 %220 }
 0x184   :  { %239 = vst.msk [vmem:[%s540_s3 + $0x30] sm:$0xff] %vm232_vm0, %v229_v32  ;;  %235 = vst.msk [vmem:[%s540_s3 + $0x10] sm:$0xff] %vm232_vm0, %v221_v33 }
 0x187   :  { %v217_v34 = vpop.xlane.xlu0 %216  ;;  %v223_v35 = vpop.xlane.xlu1 %222 }
 0x188   :  { %233 = vst.msk [vmem:[%s540_s3] sm:$0xff] %vm232_vm0, %v217_v34  ;;  %236 = vst.msk [vmem:[%s540_s3 + $0x18] sm:$0xff] %vm232_vm0, %v223_v35 }
 0x18b   :  { %v225_v36 = vpop.xlane.xlu0 %224  ;;  %v231_v37 = vpop.xlane.xlu1 %230 }
 0x18c   :  { %237 = vst.msk [vmem:[%s540_s3 + $0x20] sm:$0xff] %vm232_vm0, %v225_v36  ;;  %240 = vst.msk [vmem:[%s540_s3 + $0x38] sm:$0xff] %vm232_vm0, %v231_v37 }
 0x18f   :  { %v254_v38 = vpop.xlane.xlu0 %253  ;;  %v227_v39 = vpop.xlane.xlu1 %226 }
 0x190   :  { %267 = vst.msk [vmem:[%s541_s4 + $0x10] sm:$0xff] %vm232_vm0, %v254_v38  ;;  %238 = vst.msk [vmem:[%s540_s3 + $0x28] sm:$0xff] %vm232_vm0, %v227_v39 }
 0x193   :  { %v256_v40 = vpop.xlane.xlu1 %255  ;;  %v219_v41 = vpop.xlane.xlu0 %218 }
 0x194   :  { %268 = vst.msk [vmem:[%s541_s4 + $0x18] sm:$0xff] %vm232_vm0, %v256_v40  ;;  %234 = vst.msk [vmem:[%s540_s3 + $0x8] sm:$0xff] %vm232_vm0, %v219_v41 }
 0x197   :  { %v250_v42 = vpop.xlane.xlu0 %249  ;;  %v252_v43 = vpop.xlane.xlu1 %251 }
 0x198   :  { %265 = vst.msk [vmem:[%s541_s4] sm:$0xff] %vm232_vm0, %v250_v42  ;;  %266 = vst.msk [vmem:[%s541_s4 + $0x8] sm:$0xff] %vm232_vm0, %v252_v43 }
 0x19b   :  { %v258_v44 = vpop.xlane.xlu0 %257  ;;  %v260_v45 = vpop.xlane.xlu1 %259 }
 0x19c   :  { %269 = vst.msk [vmem:[%s541_s4 + $0x20] sm:$0xff] %vm232_vm0, %v258_v44  ;;  %270 = vst.msk [vmem:[%s541_s4 + $0x28] sm:$0xff] %vm232_vm0, %v260_v45 }
 0x19f   :  { %v262_v46 = vpop.xlane.xlu0 %261  ;;  %v264_v47 = vpop.xlane.xlu1 %263 }
 0x1a0   :  { %271 = vst.msk [vmem:[%s541_s4 + $0x30] sm:$0xff] %vm232_vm0, %v262_v46  ;;  %272 = vst.msk [vmem:[%s541_s4 + $0x38] sm:$0xff] %vm232_vm0, %v264_v47 }

// kernel: learning_conv.51
= control target key start
LH: loop header
LB: loop body
LE: loop exit
PB: predicated region body
PF: predicated region fallthrough
CT: control target
= control target key end

     0   :  { %v91_v0 = vmov 0   ;;  %s138_s2 = inlined_call_operand.vmem [shape: f32[16,1], index: 2, kind: input, shape index: {}]   ;;  %s139_s1 = inlined_call_operand.vmem [shape: f32[16,1], index: 1, kind: input, shape index: {}]   ;;  %s140_s0 = inlined_call_operand.vmem [shape: bf16[16,128], index: 0, kind: input, shape index: {}]   ;;  %s141_s3 = inlined_call_operand.vmem [shape: bf16[16,128], index: 3, kind: input, shape index: {}]   ;;  %s142_s4 = inlined_call_operand.vmem [shape: bf16[16,128], index: 4, kind: output, shape index: {}]  }
   0x1   :  { %90 = vset.pattern.permute.xlu1 %v91_v0  ;;  %89 = vset.pattern.permute.xlu0 %v91_v0  ;;  %v35_v1 = vld [vmem:[%s138_s2] sm:$0xff]  ;;  %v36_v3 = vld [vmem:[%s138_s2 + $0x8] sm:$0xff] }
   0x2   :  { %v21_v2 = vld [vmem:[%s139_s1] sm:$0xff]  ;;  %39 = vperm.xlu1 %90, %v35_v1   ;;  %v22_v4 = vld [vmem:[%s139_s1 + $0x8] sm:$0xff] }
   0x3   :  { %25 = vperm.xlu0 %89, %v21_v2   ;;  %v76_v5 = vld [vmem:[%s140_s0] sm:$0xff]  }
   0x4   :  { %v77_v6 = vunpack.c.l.bf16 %v76_v5  ;;  %v78_v10 = vunpack.c.h.bf16 %v76_v5  ;;  %v80_v12 = vld [vmem:[%s141_s3] sm:$0xff]  }
   0x5   :  { %v81_v16 = vunpack.c.l.bf16 %v80_v12  ;;  %v82_v18 = vunpack.c.h.bf16 %v80_v12 }
   0x6   :  { %44 = vperm.xlu1 %90, %v36_v3  }
   0x7   :  { %30 = vperm.xlu0 %89, %v22_v4  }
  0x81   :  { %v40_v7 = vpop.permute.xlu1 %39 }
  0x82   :  { %v26_v8 = vpop.permute.xlu0 %25 }
  0x83   :  { %v33_v9 = vmul.f32 %v77_v6, %v26_v8 }
  0x85   :  { %v47_v11 = vadd.f32 %v40_v7, %v33_v9  ;;  %v45_v15 = vpop.permute.xlu1 %44 }
  0x86   :  { %v31_v13 = vpop.permute.xlu0 %30 }
  0x87   :  { %v34_v14 = vmul.f32 %v78_v10, %v31_v13  ;;  %v49_v17 = vmax.f32 %v47_v11, 0.0 }
  0x89   :  { %v48_v19 = vadd.f32 %v45_v15, %v34_v14  ;;  %v55_v21 = vmin.f32 %v49_v17, %v81_v16 }
  0x8b   :  { %v50_v20 = vmax.f32 %v48_v19, 0.0 }
  0x8d   :  { %v56_v22 = vmin.f32 %v50_v20, %v82_v18 }
  0x8f   :  { %v86_v23 = vpack.c.bf16 %v56_v22, %v55_v21 }
  0x91   :  { %87 = vst [vmem:[%s142_s4] sm:$0xff] %v86_v23  }

// kernel: learning_conv.52
= control target key start
LH: loop header
LB: loop body
LE: loop exit
PB: predicated region body
PF: predicated region fallthrough
CT: control target
= control target key end

     0   :  { %vm61_vm0 = vcmask 523264   ;;  %vm145_vm1 = vcmask 7168   ;;  %s310_s1 = inlined_call_operand.vmem [shape: bf16[64,128], index: 1, kind: input, shape index: {}]   ;;  %s311_s0 = inlined_call_operand.vmem [shape: bf16[32,64], index: 0, kind: input, shape index: {}]   ;;  %s312_s2 = inlined_call_operand.vmem [shape: bf16[32,128], index: 2, kind: output, shape index: {0}]   ;;  %s313_s3 = inlined_call_operand.vmem [shape: f32[1,32,1], index: 3, kind: output, shape index: {1}]   ;;  %s314_s4 = inlined_call_operand.vmem [shape: f32[1,32,1], index: 4, kind: output, shape index: {2}]  }
   0x1   :  { %v223_v0 = vld [vmem:[%s310_s1] sm:$0xff]   ;;  %v224_v1 = vld [vmem:[%s310_s1 + $0x8] sm:$0xff]   ;;  %v225_v2 = vld [vmem:[%s310_s1 + $0x10] sm:$0xff]  }
   0x2   :  { %211 = vmatprep.subr.bf16.mxu0 %v223_v0  ;;  %v227_v3 = vld [vmem:[%s311_s0] sm:$0xff]   ;;  %v226_v4 = vld [vmem:[%s310_s1 + $0x18] sm:$0xff]   ;;  %v228_v5 = vld [vmem:[%s311_s0 + $0x8] sm:$0xff]  }
   0x3   :  { %212 = vmatpush3.bf16.msra.mxu0 %v223_v0  ;;  %219 = vmatprep.mubr.msk.bf16.mxu0 %vm61_vm0, %v227_v3 }
   0x4   :  { %213 = vmatprep.subr.bf16.mxu0 %v224_v1 }
   0x7   :  { %214 = vmatpush3.bf16.msra.mxu0 %v224_v1 }
   0x8   :  { %215 = vmatprep.subr.bf16.mxu0 %v225_v2 }
   0xb   :  { %216 = vmatpush3.bf16.msra.mxu0 %v225_v2 }
   0xc   :  { %217 = vmatprep.subr.bf16.mxu0 %v226_v4 }
   0xf   :  { %218 = vmatpush3.bf16.msra.mxu0 %v226_v4 }
  0x12   :  { %220 = vmatmul.mubr.msk.bf16.vlgmr.msra.gmra.mrb[0].mxu0 %vm61_vm0, %v228_v5 }
  0xe5   :  { %v221_v6 = vpop.f32.mrb[0].mxu0 }
  0xe6   :  { %141 = vadd.xlane.f32.xlu1 %v221_v6  ;;  %v102_v7 = vpop.f32.mrb[1].mxu0  ;;  %v152_v15 = vmul.f32 %v221_v6, %v221_v6 }
  0xe7   :  { %137 = vadd.xlane.f32.xlu0 %v102_v7  ;;  %v222_v8 = vpop.f32.mrb[2].mxu0  ;;  %v150_v13 = vmul.f32 %v102_v7, %v102_v7 }
  0xe8   :  { %v202_v9 = vpack.c.bf16 %v222_v8, %v221_v6  ;;  %v105_v10 = vpop.f32.mrb[3].mxu0  ;;  %v153_v14 = vmul.f32 %v222_v8, %v222_v8 }
  0xe9   :  { %v197_v11 = vpack.c.bf16 %v105_v10, %v102_v7  ;;  %v151_v12 = vmul.f32 %v105_v10, %v105_v10 }
  0xea   :  { %204 = vst [vmem:[%s312_s2 + $0x8] sm:$0xff] %v202_v9   ;;  %143 = vadd.xlane.f32.xlu1 %v222_v8 }
  0xeb   :  { %198 = vst [vmem:[%s312_s2] sm:$0xff] %v197_v11   ;;  %139 = vadd.xlane.f32.xlu0 %v105_v10 }
  0xee   :  { %156 = vadd.xlane.f32.xlu1 %v151_v12 }
  0xef   :  { %154 = vadd.xlane.f32.xlu0 %v150_v13 }
  0xf2   :  { %160 = vadd.xlane.f32.xlu1 %v153_v14 }
  0xf3   :  { %158 = vadd.xlane.f32.xlu0 %v152_v15 }
 0x173   :  { %v142_v16 = vpop.xlane.xlu1 %141 }
 0x174   :  { %148 = vst.msk [vmem:[%s313_s3 + $0x10] sm:$0xff] %vm145_vm1, %v142_v16  ;;  %v138_v17 = vpop.xlane.xlu0 %137 }
 0x175   :  { %146 = vst.msk [vmem:[%s313_s3] sm:$0xff] %vm145_vm1, %v138_v17 }
 0x177   :  { %v144_v18 = vpop.xlane.xlu1 %143 }
 0x178   :  { %149 = vst.msk [vmem:[%s313_s3 + $0x18] sm:$0xff] %vm145_vm1, %v144_v18  ;;  %v140_v19 = vpop.xlane.xlu0 %139 }
 0x179   :  { %147 = vst.msk [vmem:[%s313_s3 + $0x8] sm:$0xff] %vm145_vm1, %v140_v19 }
 0x17b   :  { %v157_v20 = vpop.xlane.xlu1 %156 }
 0x17c   :  { %163 = vst.msk [vmem:[%s314_s4 + $0x8] sm:$0xff] %vm145_vm1, %v157_v20  ;;  %v155_v21 = vpop.xlane.xlu0 %154 }
 0x17d   :  { %162 = vst.msk [vmem:[%s314_s4] sm:$0xff] %vm145_vm1, %v155_v21 }
 0x17f   :  { %v161_v22 = vpop.xlane.xlu1 %160 }
 0x180   :  { %165 = vst.msk [vmem:[%s314_s4 + $0x18] sm:$0xff] %vm145_vm1, %v161_v22  ;;  %v159_v23 = vpop.xlane.xlu0 %158 }
 0x181   :  { %164 = vst.msk [vmem:[%s314_s4 + $0x10] sm:$0xff] %vm145_vm1, %v159_v23 }

// kernel: learning_conv.53
= control target key start
LH: loop header
LB: loop body
LE: loop exit
PB: predicated region body
PF: predicated region fallthrough
CT: control target
= control target key end

     0   :  { %s351_s15 = smov 0   ;;  %s377_s0 = inlined_call_operand.vmem [shape: bf16[8,512], index: 0, kind: input, shape index: {}]   ;;  %s378_s1 = inlined_call_operand.vmem [shape: f32[8,1], index: 1, kind: input, shape index: {}]   ;;  %s379_s2 = inlined_call_operand.vmem [shape: f32[8,1], index: 2, kind: input, shape index: {}]   ;;  %s380_s3 = inlined_call_operand.vmem [shape: bf16[8,512], index: 3, kind: input, shape index: {}]   ;;  %s381_s4 = inlined_call_operand.vmem [shape: bf16[8,512], index: 4, kind: output, shape index: {}]  }
   0x1 LB: > { %s297_s16 = sadd.s32 4294967295, %s323_s15   ;;  %p301_p0 = scmp.ge.s32.totalorder %s323_s15, 1  ;;  %s323_s15 = sphi %s351_s15, %s14_s15  }
   0x2   : > { %p170_p1 = scmp.lt.s32.totalorder %s323_s15, 5 }
   0x4   : > { %p171_p2 = pnand %p301_p0, %p170_p1 }
   0x5   : > { %v212_v0 = vld [vmem:[%s378_s1] sm:$0xff] (!%p171_p2)  ;;  %v325_v1 = vmov (!%p171_p2), 0   ;;  %p198_p3 = scmp.lt.s32.totalorder (!%p171_p2), %s297_s16, 3 }
   0x6   : > { %174 = sbr.rel (%p171_p2) target bundleno = 148 (0x94), region = 36  ;;  %316 = vset.pattern.permute.xlu0 (!%p171_p2), %v325_v1  ;;  %v219_v2 = vld [vmem:[%s379_s2] sm:$0xff] (!%p171_p2) }
   0x7   : > { %215 = vperm.xlu0 (!%p171_p2), %316, %v212_v0  }
   0xb   : > { %222 = vperm.xlu0 (!%p171_p2), %316, %v219_v2  }
   0xd   : > { %s383_s16 = smov (!%p198_p3, %s297_s16), 3 }
   0xe   : > { %s302_s21 = sshll.u32 %s383_s16, 2 }
   0xf   : > { %s201_s24 = scalar_lea.vmem %s377_s0, %s302_s21  ;;  %s205_s27 = scalar_lea.vmem %s380_s3, %s302_s21 }
  0x10   : > { %v210_v3 = vld [vmem:[%s201_s24] sm:$0xf]  ;;  %s209_s30 = scalar_lea.vmem %s381_s4, %s302_s21 }
  0x11   : > { %v211_v4 = vunpack.c.l.bf16 %v210_v3  ;;  %v227_v6 = vld [vmem:[%s205_s27] sm:$0xf] }
  0x12   : > { %v228_v10 = vunpack.c.l.bf16 %v227_v6 }
  0x86   : > { %v216_v5 = vpop.permute.xlu0 %215 }
  0x87   : > { %v218_v7 = vmul.f32 %v216_v5, %v211_v4 }
  0x8a   : > { %v223_v8 = vpop.permute.xlu0 %222 }
  0x8b   : > { %v225_v9 = vadd.f32 %v223_v8, %v218_v7 }
  0x8d   : > { %v226_v11 = vmax.f32 %v225_v9, 0.0 }
  0x8f   : > { %v229_v12 = vmin.f32 %v226_v11, %v228_v10 }
  0x91   : > { %v230_v13 = vpack.c.bf16 %v229_v12, %v229_v12 }
  0x93   : > { %231 = vst [vmem:[%s209_s30] sm:$0xf] %v230_v13 }
  0x94 PF: > { %s14_s15 = sadd.s32 1, %s323_s15  }
  0x95   : > { %p11_p4 = scmp.ge.s32.totalorder %s14_s15, 6  }
  0x97   :  { %13 = sbr.rel (!%p11_p4) target bundleno = 1 (0x1), region = 69 }

// kernel: learning_conv.79
= control target key start
LH: loop header
LB: loop body
LE: loop exit
PB: predicated region body
PF: predicated region fallthrough
CT: control target
= control target key end

     0   :  { %s286_s12 = smov 0   ;;  %s309_s0 = inlined_call_operand.vmem [shape: bf16[4,512], index: 0, kind: input, shape index: {}]   ;;  %s310_s1 = inlined_call_operand.vmem [shape: f32[4,1], index: 1, kind: input, shape index: {}]   ;;  %s311_s2 = inlined_call_operand.vmem [shape: f32[4,1], index: 2, kind: input, shape index: {}]   ;;  %s312_s3 = inlined_call_operand.vmem [shape: bf16[4,512], index: 3, kind: output, shape index: {}]  }
   0x1 LB: > { %s238_s13 = sadd.s32 4294967295, %s263_s12   ;;  %p242_p0 = scmp.ge.s32.totalorder %s263_s12, 1  ;;  %s263_s12 = sphi %s286_s12, %s13_s12  }
   0x2   : > { %p136_p1 = scmp.lt.s32.totalorder %s263_s12, 5 }
   0x4   : > { %p137_p2 = pnand %p242_p0, %p136_p1 }
   0x5   : > { %v168_v0 = vld [vmem:[%s310_s1] sm:$0xf] (!%p137_p2)  ;;  %v265_v1 = vmov (!%p137_p2), 0   ;;  %p158_p3 = scmp.lt.s32.totalorder (!%p137_p2), %s238_s13, 3 }
   0x6   : > { %140 = sbr.rel (%p137_p2) target bundleno = 146 (0x92), region = 32  ;;  %256 = vset.pattern.permute.xlu0 (!%p137_p2), %v265_v1  ;;  %v175_v2 = vld [vmem:[%s311_s2] sm:$0xf] (!%p137_p2) }
   0x7   : > { %171 = vperm.xlu0 (!%p137_p2), %256, %v168_v0  }
   0xb   : > { %178 = vperm.xlu0 (!%p137_p2), %256, %v175_v2  }
   0xd   : > { %s314_s13 = smov (!%p158_p3, %s238_s13), 3 }
   0xe   : > { %s243_s18 = sshll.u32 %s314_s13, 1 }
   0xf   : > { %s161_s21 = scalar_lea.vmem %s309_s0, %s243_s18  ;;  %s165_s24 = scalar_lea.vmem %s312_s3, %s243_s18 }
  0x10   : > { %v166_v3 = vld [vmem:[%s161_s21] sm:$0x3] }
  0x11   : > { %v167_v4 = vunpack.c.l.bf16 %v166_v3 }
  0x86   : > { %v172_v5 = vpop.permute.xlu0 %171 }
  0x87   : > { %v174_v6 = vmul.f32 %v172_v5, %v167_v4 }
  0x8a   : > { %v179_v7 = vpop.permute.xlu0 %178 }
  0x8b   : > { %v181_v8 = vadd.f32 %v179_v7, %v174_v6 }
  0x8d   : > { %v182_v9 = vmax.f32 %v181_v8, 0.0 }
  0x8f   : > { %v183_v10 = vpack.c.bf16 %v182_v9, %v182_v9 }
  0x91   : > { %184 = vst [vmem:[%s165_s24] sm:$0x3] %v183_v10 }
  0x92 PF: > { %s13_s12 = sadd.s32 1, %s263_s12  }
  0x93   : > { %p10_p4 = scmp.ge.s32.totalorder %s13_s12, 6  }
  0x95   :  { %12 = sbr.rel (!%p10_p4) target bundleno = 1 (0x1), region = 62 }

// kernel: learning_conv.78
= control target key start
LH: loop header
LB: loop body
LE: loop exit
PB: predicated region body
PF: predicated region fallthrough
CT: control target
= control target key end

     0   :  { %s630_s15 = smov 0   ;;  %s632_s16 = smov 0   ;;  %s696_s0 = inlined_call_operand.vmem [shape: bf16[4,72], index: 0, kind: input, shape index: {}]   ;;  %s697_s1 = inlined_call_operand.vmem [shape: bf16[72,512], index: 1, kind: input, shape index: {}]   ;;  %s698_s2 = inlined_call_operand.vmem [shape: bf16[4,512], index: 2, kind: output, shape index: {0}]   ;;  %s699_s3 = inlined_call_operand.vmem [shape: f32[4,4,1], index: 3, kind: output, shape index: {1}]   ;;  %s700_s4 = inlined_call_operand.vmem [shape: f32[4,4,1], index: 4, kind: output, shape index: {2}]  }
   0x1   :  { %s634_s17 = smov 0  }
   0x2 LB: > { %s509_s18 = sadd.s32 4294967295, %s601_s17   ;;  %s647_s19 = sadd.s32 1, %s601_s17   ;;  %s601_s17 = sphi %s634_s17, %s703_s17   ;;  %s597_s16 = sphi %s632_s16, %s702_s16   ;;  %s593_s15 = sphi %s630_s15, %s701_s15  }
   0x3   : > { %s40_s20 = ssub.s32 %s601_s17, %s647_s19  ;;  %s43_s21 = sadd.s32 1, %s597_s16 }
   0x4   : > { %p41_p0 = scmp.eq.s32.totalorder %s40_s20, 0  ;;  %p50_p1 = scmp.ne.s32.totalorder %s597_s16, %s593_s15 }
   0x5   : > { %p51_p2 = scmp.eq.s32.totalorder %s601_s17, 0  ;;  %p512_p4 = scmp.ge.s32.totalorder %s601_s17, 4 }
   0x6   : > { %s656_s22 = scalar_select %p41_p0, %s597_s16, %s43_s21  }
   0x7   : > { %p52_p3 = por %p51_p2, %p50_p1  ;;  %157 = sbr.rel (%p512_p4) target bundleno = 24 (0x18), region = 20 }
   0xe   : > { %160 = sbr.rel (!%p52_p3) target bundleno = 24 (0x18), region = 24  ;;  %s162_s23 = sand.u32 (%p52_p3), 1, %s597_s16  }
   0xf   : > { %s513_s24 = sshll.u32 (%p52_p3), %s601_s17, 2  ;;  %s546_s25 = smul.u32 (%p52_p3), 36, %s162_s23 }
  0x10   : > { %s166_s28 = scalar_lea.vmem (%p52_p3), %s697_s1, %s513_s24 }
  0x11   : > { %v182_v0 = vld [vmem:[%s166_s28] sm:$0xf] (%p52_p3)  ;;  %v184_v1 = vld [vmem:[%s166_s28 + $0x10] sm:$0xf] (%p52_p3)  ;;  %s164_s29 = scalar_lea.vmem (%p52_p3), [#allocation2], %s546_s25 }
  0x12   : > { %v186_v2 = vld [vmem:[%s166_s28 + $0x20] sm:$0xf] (%p52_p3)  ;;  %v188_v3 = vld [vmem:[%s166_s28 + $0x30] sm:$0xf] (%p52_p3)  ;;  %183 = vst [vmem:[%s164_s29] sm:$0xf] (%p52_p3), %v182_v0 }
  0x13   : > { %v190_v4 = vld [vmem:[%s166_s28 + $0x40] sm:$0xf] (%p52_p3)  ;;  %185 = vst [vmem:[%s164_s29 + $0x4] sm:$0xf] (%p52_p3), %v184_v1  ;;  %187 = vst [vmem:[%s164_s29 + $0x8] sm:$0xf] (%p52_p3), %v186_v2 }
  0x14   : > { %189 = vst [vmem:[%s164_s29 + $0xc] sm:$0xf] (%p52_p3), %v188_v3  ;;  %191 = vst [vmem:[%s164_s29 + $0x10] sm:$0xf] (%p52_p3), %v190_v4  ;;  %v192_v5 = vld [vmem:[%s166_s28 + $0x50] sm:$0xf] (%p52_p3) }
  0x15   : > { %v194_v6 = vld [vmem:[%s166_s28 + $0x60] sm:$0xf]  ;;  %v196_v7 = vld [vmem:[%s166_s28 + $0x70] sm:$0xf]  ;;  %193 = vst [vmem:[%s164_s29 + $0x14] sm:$0xf] %v192_v5 }
  0x16   : > { %195 = vst [vmem:[%s164_s29 + $0x18] sm:$0xf] %v194_v6  ;;  %197 = vst [vmem:[%s164_s29 + $0x1c] sm:$0xf] %v196_v7  ;;  %v198_v8 = vld [vmem:[%s166_s28 + $0x80] sm:$0xf] }
  0x17   : > { %199 = vst [vmem:[%s164_s29 + $0x20] sm:$0xf] %v198_v8 }
  0x18 PF: > { %p514_p5 = scmp.ge.s32.totalorder %s601_s17, 1  ;;  %p239_p6 = scmp.lt.s32.totalorder %s601_s17, 5 }
  0x1a   : > { %p240_p7 = pnand %p514_p5, %p239_p6 }
  0x1b   : > { %s246_s30 = sand.u32 (!%p240_p7), 1, %s593_s15   ;;  %v603_v9 = vmov (!%p240_p7), 0.0   ;;  %vm604_vm0 = vmmov (!%p240_p7), 0   ;;  %vm332_vm1 = vcmask (!%p240_p7), 1043456   ;;  %v291_v16 = vld [vmem:[%s696_s0] sm:$0x3] (!%p240_p7) }
  0x1c   : > { %243 = sbr.rel (%p240_p7) target bundleno = 412 (0x19c), region = 65  ;;  %532 = vmatprep.subr.bf16.mxu0 (!%p240_p7), %v603_v9  ;;  %542 = vmatprep.mubr.msk.bf16.mxu0 (!%p240_p7), %vm604_vm0, %v603_v9  ;;  %vm328_vm2 = vcmask (!%p240_p7), 588800   ;;  %p278_p8 = scmp.lt.s32.totalorder (!%p240_p7), %s509_s18, 3  ;;  %vm381_vm3 = vcmask (!%p240_p7), 3072  }
  0x1d   : > { %s547_s5 = smul.u32 (!%p240_p7), 36, %s246_s30 }
  0x1f   : > { %s248_s6 = scalar_lea.vmem (!%p240_p7), [#allocation2], %s547_s5 }
  0x20   : > { %v574_v10 = vld [vmem:[%s248_s6] sm:$0xff] (!%p240_p7)   ;;  %v575_v11 = vld [vmem:[%s248_s6 + $0x8] sm:$0xff] (!%p240_p7)   ;;  %v576_v12 = vld [vmem:[%s248_s6 + $0x10] sm:$0xff] (!%p240_p7)  }
  0x21   : > { %533 = vmatpush3.bf16.msra.mxu0 (!%p240_p7), %v574_v10  ;;  %v577_v13 = vld [vmem:[%s248_s6 + $0x18] sm:$0xff] (!%p240_p7)   ;;  %v578_v14 = vld [vmem:[%s248_s6 + $0x20] ss:$0 sps:$4 sm:$0xff] (!%p240_p7)  }
  0x22   : > { %534 = vmatprep.subr.bf16.mxu0 (!%p240_p7), %v603_v9  ;;  %v334_v15 = vsel (!%p240_p7), %vm332_vm1, %v578_v14, 0 }
  0x23   : > { %s705_s18 = smov (!%p278_p8, %s509_s18), 3 }
  0x24   : > { %s515_s9 = sshll.u32 %s705_s18, 1  ;;  %s516_s13 = sshll.u32 %s705_s18, 2 }
  0x25   : > { %535 = vmatpush3.bf16.msra.mxu0 %v575_v11  ;;  %s281_s12 = scalar_lea.vmem %s698_s2, %s515_s9  ;;  %s285_s17 = scalar_lea.vmem %s699_s3, %s516_s13 }
  0x26   : > { %536 = vmatprep.subr.bf16.mxu0 %v603_v9  ;;  %s289_s23 = scalar_lea.vmem %s700_s4, %s516_s13 }
  0x29   : > { %537 = vmatpush3.bf16.msra.mxu0 %v576_v12 }
  0x2a   : > { %538 = vmatprep.subr.bf16.mxu0 %v603_v9 }
  0x2d   : > { %539 = vmatpush3.bf16.msra.mxu0 %v577_v13 }
  0x2e   : > { %540 = vmatprep.subr.bf16.mxu0 %v603_v9 }
  0x31   : > { %541 = vmatpush3.bf16.msra.mxu0 %v334_v15 }
  0x34   : > { %543 = vmatmul.mubr.msk.bf16.vlgmr.msra.gmra.mrb[0].mxu0 %vm328_vm2, %v291_v16 }
 0x107   : > { %v370_v17 = vpop.f32.mrb[0].mxu0 }
 0x108   : > { %v376_v18 = vpack.c.bf16 %v370_v17, %v370_v17  ;;  %v544_v19 = vpop.f32.mrb[1].mxu0  ;;  %v378_v20 = vsel %vm332_vm1, %v370_v17, 0.0  ;;  %v383_v21 = vmul.f32 %v370_v17, %v370_v17 }
 0x109   : > { %379 = vadd.xlane.f32.xlu0 %v378_v20  ;;  %v373_v22 = vpop.f32.mrb[2].mxu0 }
 0x10a   : > { %377 = vst [vmem:[%s281_s12] sm:$0x3] %v376_v18  ;;  %v545_v23 = vpop.f32.mrb[3].mxu0  ;;  %v384_v24 = vsel %vm332_vm1, %v383_v21, 0.0 }
 0x10d   : > { %385 = vadd.xlane.f32.xlu0 %v384_v24 }
 0x196   : > { %v380_v25 = vpop.xlane.xlu0 %379 }
 0x197   : > { %382 = vst.msk [vmem:[%s285_s17] sm:$0xf] %vm381_vm3, %v380_v25 }
 0x19a   : > { %v386_v26 = vpop.xlane.xlu0 %385 }
 0x19b   : > { %387 = vst.msk [vmem:[%s289_s23] sm:$0xf] %vm381_vm3, %v386_v26 }
 0x19c PF: > { %p12_p9 = scmp.ge.s32.totalorder %s647_s19, 6   ;;  %s701_s15 = smov %s597_s16 }
 0x19d   : > { %s702_s16 = smov %s656_s22  ;;  %s703_s17 = smov %s647_s19 }
 0x19e   :  { %14 = sbr.rel (!%p12_p9) target bundleno = 2 (0x2), region = 128 }

</bundles_post_ra>
